<compile_context>
chip_gen: v7x
topology: tpu7x:2x2x1
jax: 0.10.0
libtpu: 0.0.40
codegen_flags: <defaults>
</compile_context>

<pallas_src>
import numpy as np
import jax
import jax.numpy as jnp
from jax import lax
from jax.experimental import pallas as pl
from jax.experimental.pallas import tpu as pltpu


def _lstm_kernel(preact_ref, w_hh_ref, hn_ref):
    # preact_ref: (T, 4H, TB)  per-timestep x@W_ih + b, gate order (i, f, o, g)
    # w_hh_ref:   (4H, H)      hidden->gate weights, same gate order
    # hn_ref:     (H, TB)      final hidden state for this batch tile
    T = preact_ref.shape[0]
    TB = preact_ref.shape[2]
    H = w_hh_ref.shape[1]

    w_hh = w_hh_ref[...]  # (4H, H), loaded once, hoisted out of the loop

    h = jnp.zeros((H, TB), jnp.float32)
    c = jnp.zeros((H, TB), jnp.float32)

    # T is small and static -> full unroll, static leading-axis indices.
    for t in range(T):
        # One fused MXU matmul per step: (4H, H) @ (H, TB) -> (4H, TB)
        gates = preact_ref[t] + jnp.dot(w_hh, h, preferred_element_type=jnp.float32)
        # Gate order (i, f, o, g): one fused sigmoid over 3H sublanes, tanh over H.
        sig = jax.nn.sigmoid(gates[: 3 * H, :])
        i_g = sig[:H, :]
        f_g = sig[H:2 * H, :]
        o_g = sig[2 * H:3 * H, :]
        g_g = jnp.tanh(gates[3 * H:, :])
        c = f_g * c + i_g * g_g
        h = o_g * jnp.tanh(c)

    hn_ref[...] = h


def _round_up(a, m):
    return ((a + m - 1) // m) * m


def _repack_gates(w):
    """PyTorch stacks gates along dim 0 in order (i, f, g, o); repack to (i, f, o, g)."""
    i, f, g, o = jnp.split(w, 4, axis=0)
    return jnp.concatenate([i, f, o, g], axis=0)


def lstm_final_hidden(x, w_ih_p, w_hh_p, b_p, *, tb=None):
    """x: (B, T, in_dim) batch_first. Weights/bias already in (i, f, o, g) gate order:
       w_ih_p (4H, in_dim), w_hh_p (4H, H), b_p (4H,). Returns hn: (B, H)."""
    B, T, _ = x.shape
    H = w_hh_p.shape[1]

    if tb is None:
        # ~512 rows per tile, but keep >=2 tiles so v7x's 2 TensorCores both get work.
        n_tiles = max(2, _round_up(B, 512) // 512)
        tb = _round_up(_round_up(B, n_tiles) // n_tiles, 128)
    B_pad = _round_up(B, tb)

    # Hoisted input projection + bias (one XLA matmul), then time-major,
    # channels-on-sublanes / batch-on-lanes layout: (T, 4H, B_pad).
    preact = jnp.einsum('bti,hi->bth', x, w_ih_p) + b_p          # (B, T, 4H)
    preact = jnp.transpose(preact, (1, 2, 0))                    # (T, 4H, B)
    preact = jnp.pad(preact, ((0, 0), (0, 0), (0, B_pad - B)))   # (T, 4H, B_pad)

    hn = pl.pallas_call(
        _lstm_kernel,
        out_shape=jax.ShapeDtypeStruct((H, B_pad), jnp.float32),
        grid_spec=pltpu.PrefetchScalarGridSpec(
            num_scalar_prefetch=0,
            grid=(B_pad // tb,),
            in_specs=[
                pl.BlockSpec((T, 4 * H, tb), lambda bi: (0, 0, bi)),
                pl.BlockSpec((4 * H, H), lambda bi: (0, 0)),
            ],
            out_specs=pl.BlockSpec((H, tb), lambda bi: (0, bi)),
        ),
        compiler_params=pltpu.CompilerParams(
            dimension_semantics=("parallel",)),
    )(preact, w_hh_p)

    return hn[:, :B].T  # (B, H)


def lstm_module_forward(flow_x, w_ih_t, w_hh_t, b_ih, b_hh):
    """Mirrors LSTM.forward: view(-1, H, 1) -> lstm -> hn.reshape(-1, 23, 23, 1).
       Takes PyTorch-layout LSTM weights (4H, in_dim), (4H, H), (4H,), (4H,)."""
    bs, N, _, H_seq = flow_x.shape
    x = flow_x.reshape(-1, H_seq, 1)                  # (bs*N*N, seq, 1)

    w_ih_p = _repack_gates(w_ih_t)                    # (4H, in_dim), order (i, f, o, g)
    w_hh_p = _repack_gates(w_hh_t)                    # (4H, H)
    b_p = _repack_gates(b_ih + b_hh)                  # (4H,)

    hn = lstm_final_hidden(x, w_ih_p, w_hh_p, b_p)    # (bs*N*N, hidden)
    return hn.reshape(-1, 23, 23, 1)


def _ref_lstm_final_hidden(x, w_ih_t, w_hh_t, b_ih, b_hh, hidden_dim):
    """Pure-JAX reference matching torch.nn.LSTM (single layer, batch_first)."""
    B, T, _ = x.shape
    h = jnp.zeros((B, hidden_dim), jnp.float32)
    c = jnp.zeros((B, hidden_dim), jnp.float32)

    def step(carry, x_t):
        h, c = carry
        gates = x_t @ w_ih_t.T + h @ w_hh_t.T + b_ih + b_hh
        i, f, g, o = jnp.split(gates, 4, axis=-1)
        c = jax.nn.sigmoid(f) * c + jax.nn.sigmoid(i) * jnp.tanh(g)
        h = jax.nn.sigmoid(o) * jnp.tanh(c)
        return (h, c), None

    (h, _), _ = lax.scan(step, (h, c), jnp.transpose(x, (1, 0, 2)))
    return h


if __name__ == "__main__":
    # Small shapes consistent with the module: flow_x (bs, N, N, H_seq) with N=23
    # (hard-coded by the final reshape), LSTM in_dim=1, hidden_dim=32, seq=H_seq.
    bs, N, H_seq = 2, 23, 8
    in_dim, hidden_dim = 1, 32

    key = jax.random.PRNGKey(0)
    k1, k2, k3, k4, k5 = jax.random.split(key, 5)
    flow_x = jax.random.normal(k1, (bs, N, N, H_seq), jnp.float32)

    # Deterministic init mimicking torch.nn.LSTM (uniform(-1/sqrt(H), 1/sqrt(H))),
    # in the native PyTorch stacked layout / gate order (i, f, g, o).
    bound = 1.0 / np.sqrt(hidden_dim)
    w_ih_t = jax.random.uniform(k2, (4 * hidden_dim, in_dim), jnp.float32, -bound, bound)
    w_hh_t = jax.random.uniform(k3, (4 * hidden_dim, hidden_dim), jnp.float32, -bound, bound)
    b_ih = jax.random.uniform(k4, (4 * hidden_dim,), jnp.float32, -bound, bound)
    b_hh = jax.random.uniform(k5, (4 * hidden_dim,), jnp.float32, -bound, bound)

    out = lstm_module_forward(flow_x, w_ih_t, w_hh_t, b_ih, b_hh)
    out = jax.block_until_ready(out)
    assert out.shape == (bs * hidden_dim, 23, 23, 1)

    # Correctness check against a pure-JAX reference of nn.LSTM semantics.
    x_flat = flow_x.reshape(-1, H_seq, 1)
    hn_ref = _ref_lstm_final_hidden(x_flat, w_ih_t, w_hh_t, b_ih, b_hh, hidden_dim)
    out_ref = hn_ref.reshape(-1, 23, 23, 1)
    np.testing.assert_allclose(np.asarray(out), np.asarray(out_ref), rtol=1e-5, atol=1e-5)

    print("KERNEL_OK")
</pallas_src>

<mosaic_0001>
module attributes {stable_mosaic.version = 11 : i64} {
  func.func @_lstm_kernel(%arg0: i32, %arg1: memref<8x128x384xf32, #tpu.memory_space<vmem>>, %arg2: memref<128x32xf32, #tpu.memory_space<vmem>>, %arg3: memref<32x384xf32, #tpu.memory_space<vmem>>) attributes {dimension_semantics = [#tpu.dimension_semantics<parallel>], iteration_bounds = array<i64: 3>, scalar_prefetch = 0 : i64, scratch_operands = 0 : i64, tpu.core_type = #tpu.core_type<tc>, window_params = [{transform_indices = @transform_0, window_bounds = array<i64: 8, 128, 384>}, {pipeline_mode = #tpu.pipeline_mode<synchronous>, transform_indices = @transform_1, window_bounds = array<i64: 128, 32>}, {transform_indices = @transform_2, window_bounds = array<i64: 32, 384>}]} {
    %c0 = arith.constant 0 : index
    %c0_0 = arith.constant 0 : index
    %0 = vector.load %arg2[%c0, %c0_0] : memref<128x32xf32, #tpu.memory_space<vmem>>, vector<128x32xf32>
    %cst = arith.constant 0.000000e+00 : f32
    %1 = vector.broadcast %cst : f32 to vector<32x384xf32>
    %cst_1 = arith.constant 0.000000e+00 : f32
    %2 = vector.broadcast %cst_1 : f32 to vector<32x384xf32>
    %c0_2 = arith.constant 0 : index
    %c0_3 = arith.constant 0 : index
    %c0_4 = arith.constant 0 : index
    %3 = vector.load %arg1[%c0_2, %c0_3, %c0_4] : memref<8x128x384xf32, #tpu.memory_space<vmem>>, vector<1x128x384xf32>
    %4 = vector.shape_cast %3 : vector<1x128x384xf32> to vector<128x384xf32>
    %cst_5 = arith.constant dense<0.000000e+00> : vector<128x384xf32>
    %5 = tpu.matmul %0, %1, %cst_5 {dimension_numbers = #tpu.dot_dimension_numbers<[1], [0], [0], [1], [0, 0, 1, 1], [], []>} : vector<128x32xf32>, vector<32x384xf32>, vector<128x384xf32> -> vector<128x384xf32>
    %6 = arith.addf %4, %5 : vector<128x384xf32>
    %7 = vector.extract_strided_slice %6 {offsets = [0, 0], sizes = [96, 384], strides = [1, 1]} : vector<128x384xf32> to vector<96x384xf32>
    %8 = arith.negf %7 : vector<96x384xf32>
    %9 = math.exp %8 : vector<96x384xf32>
    %cst_6 = arith.constant 1.000000e+00 : f32
    %10 = vector.broadcast %cst_6 : f32 to vector<96x384xf32>
    %11 = arith.addf %10, %9 : vector<96x384xf32>
    %12 = arith.divf %10, %11 : vector<96x384xf32>
    %13 = vector.extract_strided_slice %12 {offsets = [0, 0], sizes = [32, 384], strides = [1, 1]} : vector<96x384xf32> to vector<32x384xf32>
    %14 = vector.extract_strided_slice %12 {offsets = [32, 0], sizes = [32, 384], strides = [1, 1]} : vector<96x384xf32> to vector<32x384xf32>
    %15 = vector.extract_strided_slice %12 {offsets = [64, 0], sizes = [32, 384], strides = [1, 1]} : vector<96x384xf32> to vector<32x384xf32>
    %16 = vector.extract_strided_slice %6 {offsets = [96, 0], sizes = [32, 384], strides = [1, 1]} : vector<128x384xf32> to vector<32x384xf32>
    %17 = math.tanh %16 : vector<32x384xf32>
    %18 = arith.mulf %14, %2 : vector<32x384xf32>
    %19 = arith.mulf %13, %17 : vector<32x384xf32>
    %20 = arith.addf %18, %19 : vector<32x384xf32>
    %21 = math.tanh %20 : vector<32x384xf32>
    %22 = arith.mulf %15, %21 : vector<32x384xf32>
    %c1 = arith.constant 1 : index
    %c0_7 = arith.constant 0 : index
    %c0_8 = arith.constant 0 : index
    %23 = vector.load %arg1[%c1, %c0_7, %c0_8] : memref<8x128x384xf32, #tpu.memory_space<vmem>>, vector<1x128x384xf32>
    %24 = vector.shape_cast %23 : vector<1x128x384xf32> to vector<128x384xf32>
    %cst_9 = arith.constant dense<0.000000e+00> : vector<128x384xf32>
    %25 = tpu.matmul %0, %22, %cst_9 {dimension_numbers = #tpu.dot_dimension_numbers<[1], [0], [0], [1], [0, 0, 1, 1], [], []>} : vector<128x32xf32>, vector<32x384xf32>, vector<128x384xf32> -> vector<128x384xf32>
    %26 = arith.addf %24, %25 : vector<128x384xf32>
    %27 = vector.extract_strided_slice %26 {offsets = [0, 0], sizes = [96, 384], strides = [1, 1]} : vector<128x384xf32> to vector<96x384xf32>
    %28 = arith.negf %27 : vector<96x384xf32>
    %29 = math.exp %28 : vector<96x384xf32>
    %cst_10 = arith.constant 1.000000e+00 : f32
    %30 = vector.broadcast %cst_10 : f32 to vector<96x384xf32>
    %31 = arith.addf %30, %29 : vector<96x384xf32>
    %32 = arith.divf %30, %31 : vector<96x384xf32>
    %33 = vector.extract_strided_slice %32 {offsets = [0, 0], sizes = [32, 384], strides = [1, 1]} : vector<96x384xf32> to vector<32x384xf32>
    %34 = vector.extract_strided_slice %32 {offsets = [32, 0], sizes = [32, 384], strides = [1, 1]} : vector<96x384xf32> to vector<32x384xf32>
    %35 = vector.extract_strided_slice %32 {offsets = [64, 0], sizes = [32, 384], strides = [1, 1]} : vector<96x384xf32> to vector<32x384xf32>
    %36 = vector.extract_strided_slice %26 {offsets = [96, 0], sizes = [32, 384], strides = [1, 1]} : vector<128x384xf32> to vector<32x384xf32>
    %37 = math.tanh %36 : vector<32x384xf32>
    %38 = arith.mulf %34, %20 : vector<32x384xf32>
    %39 = arith.mulf %33, %37 : vector<32x384xf32>
    %40 = arith.addf %38, %39 : vector<32x384xf32>
    %41 = math.tanh %40 : vector<32x384xf32>
    %42 = arith.mulf %35, %41 : vector<32x384xf32>
    %c2 = arith.constant 2 : index
    %c0_11 = arith.constant 0 : index
    %c0_12 = arith.constant 0 : index
    %43 = vector.load %arg1[%c2, %c0_11, %c0_12] : memref<8x128x384xf32, #tpu.memory_space<vmem>>, vector<1x128x384xf32>
    %44 = vector.shape_cast %43 : vector<1x128x384xf32> to vector<128x384xf32>
    %cst_13 = arith.constant dense<0.000000e+00> : vector<128x384xf32>
    %45 = tpu.matmul %0, %42, %cst_13 {dimension_numbers = #tpu.dot_dimension_numbers<[1], [0], [0], [1], [0, 0, 1, 1], [], []>} : vector<128x32xf32>, vector<32x384xf32>, vector<128x384xf32> -> vector<128x384xf32>
    %46 = arith.addf %44, %45 : vector<128x384xf32>
    %47 = vector.extract_strided_slice %46 {offsets = [0, 0], sizes = [96, 384], strides = [1, 1]} : vector<128x384xf32> to vector<96x384xf32>
    %48 = arith.negf %47 : vector<96x384xf32>
    %49 = math.exp %48 : vector<96x384xf32>
    %cst_14 = arith.constant 1.000000e+00 : f32
    %50 = vector.broadcast %cst_14 : f32 to vector<96x384xf32>
    %51 = arith.addf %50, %49 : vector<96x384xf32>
    %52 = arith.divf %50, %51 : vector<96x384xf32>
    %53 = vector.extract_strided_slice %52 {offsets = [0, 0], sizes = [32, 384], strides = [1, 1]} : vector<96x384xf32> to vector<32x384xf32>
    %54 = vector.extract_strided_slice %52 {offsets = [32, 0], sizes = [32, 384], strides = [1, 1]} : vector<96x384xf32> to vector<32x384xf32>
    %55 = vector.extract_strided_slice %52 {offsets = [64, 0], sizes = [32, 384], strides = [1, 1]} : vector<96x384xf32> to vector<32x384xf32>
    %56 = vector.extract_strided_slice %46 {offsets = [96, 0], sizes = [32, 384], strides = [1, 1]} : vector<128x384xf32> to vector<32x384xf32>
    %57 = math.tanh %56 : vector<32x384xf32>
    %58 = arith.mulf %54, %40 : vector<32x384xf32>
    %59 = arith.mulf %53, %57 : vector<32x384xf32>
    %60 = arith.addf %58, %59 : vector<32x384xf32>
    %61 = math.tanh %60 : vector<32x384xf32>
    %62 = arith.mulf %55, %61 : vector<32x384xf32>
    %c3 = arith.constant 3 : index
    %c0_15 = arith.constant 0 : index
    %c0_16 = arith.constant 0 : index
    %63 = vector.load %arg1[%c3, %c0_15, %c0_16] : memref<8x128x384xf32, #tpu.memory_space<vmem>>, vector<1x128x384xf32>
    %64 = vector.shape_cast %63 : vector<1x128x384xf32> to vector<128x384xf32>
    %cst_17 = arith.constant dense<0.000000e+00> : vector<128x384xf32>
    %65 = tpu.matmul %0, %62, %cst_17 {dimension_numbers = #tpu.dot_dimension_numbers<[1], [0], [0], [1], [0, 0, 1, 1], [], []>} : vector<128x32xf32>, vector<32x384xf32>, vector<128x384xf32> -> vector<128x384xf32>
    %66 = arith.addf %64, %65 : vector<128x384xf32>
    %67 = vector.extract_strided_slice %66 {offsets = [0, 0], sizes = [96, 384], strides = [1, 1]} : vector<128x384xf32> to vector<96x384xf32>
    %68 = arith.negf %67 : vector<96x384xf32>
    %69 = math.exp %68 : vector<96x384xf32>
    %cst_18 = arith.constant 1.000000e+00 : f32
    %70 = vector.broadcast %cst_18 : f32 to vector<96x384xf32>
    %71 = arith.addf %70, %69 : vector<96x384xf32>
    %72 = arith.divf %70, %71 : vector<96x384xf32>
    %73 = vector.extract_strided_slice %72 {offsets = [0, 0], sizes = [32, 384], strides = [1, 1]} : vector<96x384xf32> to vector<32x384xf32>
    %74 = vector.extract_strided_slice %72 {offsets = [32, 0], sizes = [32, 384], strides = [1, 1]} : vector<96x384xf32> to vector<32x384xf32>
    %75 = vector.extract_strided_slice %72 {offsets = [64, 0], sizes = [32, 384], strides = [1, 1]} : vector<96x384xf32> to vector<32x384xf32>
    %76 = vector.extract_strided_slice %66 {offsets = [96, 0], sizes = [32, 384], strides = [1, 1]} : vector<128x384xf32> to vector<32x384xf32>
    %77 = math.tanh %76 : vector<32x384xf32>
    %78 = arith.mulf %74, %60 : vector<32x384xf32>
    %79 = arith.mulf %73, %77 : vector<32x384xf32>
    %80 = arith.addf %78, %79 : vector<32x384xf32>
    %81 = math.tanh %80 : vector<32x384xf32>
    %82 = arith.mulf %75, %81 : vector<32x384xf32>
    %c4 = arith.constant 4 : index
    %c0_19 = arith.constant 0 : index
    %c0_20 = arith.constant 0 : index
    %83 = vector.load %arg1[%c4, %c0_19, %c0_20] : memref<8x128x384xf32, #tpu.memory_space<vmem>>, vector<1x128x384xf32>
    %84 = vector.shape_cast %83 : vector<1x128x384xf32> to vector<128x384xf32>
    %cst_21 = arith.constant dense<0.000000e+00> : vector<128x384xf32>
    %85 = tpu.matmul %0, %82, %cst_21 {dimension_numbers = #tpu.dot_dimension_numbers<[1], [0], [0], [1], [0, 0, 1, 1], [], []>} : vector<128x32xf32>, vector<32x384xf32>, vector<128x384xf32> -> vector<128x384xf32>
    %86 = arith.addf %84, %85 : vector<128x384xf32>
    %87 = vector.extract_strided_slice %86 {offsets = [0, 0], sizes = [96, 384], strides = [1, 1]} : vector<128x384xf32> to vector<96x384xf32>
    %88 = arith.negf %87 : vector<96x384xf32>
    %89 = math.exp %88 : vector<96x384xf32>
    %cst_22 = arith.constant 1.000000e+00 : f32
    %90 = vector.broadcast %cst_22 : f32 to vector<96x384xf32>
    %91 = arith.addf %90, %89 : vector<96x384xf32>
    %92 = arith.divf %90, %91 : vector<96x384xf32>
    %93 = vector.extract_strided_slice %92 {offsets = [0, 0], sizes = [32, 384], strides = [1, 1]} : vector<96x384xf32> to vector<32x384xf32>
    %94 = vector.extract_strided_slice %92 {offsets = [32, 0], sizes = [32, 384], strides = [1, 1]} : vector<96x384xf32> to vector<32x384xf32>
    %95 = vector.extract_strided_slice %92 {offsets = [64, 0], sizes = [32, 384], strides = [1, 1]} : vector<96x384xf32> to vector<32x384xf32>
    %96 = vector.extract_strided_slice %86 {offsets = [96, 0], sizes = [32, 384], strides = [1, 1]} : vector<128x384xf32> to vector<32x384xf32>
    %97 = math.tanh %96 : vector<32x384xf32>
    %98 = arith.mulf %94, %80 : vector<32x384xf32>
    %99 = arith.mulf %93, %97 : vector<32x384xf32>
    %100 = arith.addf %98, %99 : vector<32x384xf32>
    %101 = math.tanh %100 : vector<32x384xf32>
    %102 = arith.mulf %95, %101 : vector<32x384xf32>
    %c5 = arith.constant 5 : index
    %c0_23 = arith.constant 0 : index
    %c0_24 = arith.constant 0 : index
    %103 = vector.load %arg1[%c5, %c0_23, %c0_24] : memref<8x128x384xf32, #tpu.memory_space<vmem>>, vector<1x128x384xf32>
    %104 = vector.shape_cast %103 : vector<1x128x384xf32> to vector<128x384xf32>
    %cst_25 = arith.constant dense<0.000000e+00> : vector<128x384xf32>
    %105 = tpu.matmul %0, %102, %cst_25 {dimension_numbers = #tpu.dot_dimension_numbers<[1], [0], [0], [1], [0, 0, 1, 1], [], []>} : vector<128x32xf32>, vector<32x384xf32>, vector<128x384xf32> -> vector<128x384xf32>
    %106 = arith.addf %104, %105 : vector<128x384xf32>
    %107 = vector.extract_strided_slice %106 {offsets = [0, 0], sizes = [96, 384], strides = [1, 1]} : vector<128x384xf32> to vector<96x384xf32>
    %108 = arith.negf %107 : vector<96x384xf32>
    %109 = math.exp %108 : vector<96x384xf32>
    %cst_26 = arith.constant 1.000000e+00 : f32
    %110 = vector.broadcast %cst_26 : f32 to vector<96x384xf32>
    %111 = arith.addf %110, %109 : vector<96x384xf32>
    %112 = arith.divf %110, %111 : vector<96x384xf32>
    %113 = vector.extract_strided_slice %112 {offsets = [0, 0], sizes = [32, 384], strides = [1, 1]} : vector<96x384xf32> to vector<32x384xf32>
    %114 = vector.extract_strided_slice %112 {offsets = [32, 0], sizes = [32, 384], strides = [1, 1]} : vector<96x384xf32> to vector<32x384xf32>
    %115 = vector.extract_strided_slice %112 {offsets = [64, 0], sizes = [32, 384], strides = [1, 1]} : vector<96x384xf32> to vector<32x384xf32>
    %116 = vector.extract_strided_slice %106 {offsets = [96, 0], sizes = [32, 384], strides = [1, 1]} : vector<128x384xf32> to vector<32x384xf32>
    %117 = math.tanh %116 : vector<32x384xf32>
    %118 = arith.mulf %114, %100 : vector<32x384xf32>
    %119 = arith.mulf %113, %117 : vector<32x384xf32>
    %120 = arith.addf %118, %119 : vector<32x384xf32>
    %121 = math.tanh %120 : vector<32x384xf32>
    %122 = arith.mulf %115, %121 : vector<32x384xf32>
    %c6 = arith.constant 6 : index
    %c0_27 = arith.constant 0 : index
    %c0_28 = arith.constant 0 : index
    %123 = vector.load %arg1[%c6, %c0_27, %c0_28] : memref<8x128x384xf32, #tpu.memory_space<vmem>>, vector<1x128x384xf32>
    %124 = vector.shape_cast %123 : vector<1x128x384xf32> to vector<128x384xf32>
    %cst_29 = arith.constant dense<0.000000e+00> : vector<128x384xf32>
    %125 = tpu.matmul %0, %122, %cst_29 {dimension_numbers = #tpu.dot_dimension_numbers<[1], [0], [0], [1], [0, 0, 1, 1], [], []>} : vector<128x32xf32>, vector<32x384xf32>, vector<128x384xf32> -> vector<128x384xf32>
    %126 = arith.addf %124, %125 : vector<128x384xf32>
    %127 = vector.extract_strided_slice %126 {offsets = [0, 0], sizes = [96, 384], strides = [1, 1]} : vector<128x384xf32> to vector<96x384xf32>
    %128 = arith.negf %127 : vector<96x384xf32>
    %129 = math.exp %128 : vector<96x384xf32>
    %cst_30 = arith.constant 1.000000e+00 : f32
    %130 = vector.broadcast %cst_30 : f32 to vector<96x384xf32>
    %131 = arith.addf %130, %129 : vector<96x384xf32>
    %132 = arith.divf %130, %131 : vector<96x384xf32>
    %133 = vector.extract_strided_slice %132 {offsets = [0, 0], sizes = [32, 384], strides = [1, 1]} : vector<96x384xf32> to vector<32x384xf32>
    %134 = vector.extract_strided_slice %132 {offsets = [32, 0], sizes = [32, 384], strides = [1, 1]} : vector<96x384xf32> to vector<32x384xf32>
    %135 = vector.extract_strided_slice %132 {offsets = [64, 0], sizes = [32, 384], strides = [1, 1]} : vector<96x384xf32> to vector<32x384xf32>
    %136 = vector.extract_strided_slice %126 {offsets = [96, 0], sizes = [32, 384], strides = [1, 1]} : vector<128x384xf32> to vector<32x384xf32>
    %137 = math.tanh %136 : vector<32x384xf32>
    %138 = arith.mulf %134, %120 : vector<32x384xf32>
    %139 = arith.mulf %133, %137 : vector<32x384xf32>
    %140 = arith.addf %138, %139 : vector<32x384xf32>
    %141 = math.tanh %140 : vector<32x384xf32>
    %142 = arith.mulf %135, %141 : vector<32x384xf32>
    %c7 = arith.constant 7 : index
    %c0_31 = arith.constant 0 : index
    %c0_32 = arith.constant 0 : index
    %143 = vector.load %arg1[%c7, %c0_31, %c0_32] : memref<8x128x384xf32, #tpu.memory_space<vmem>>, vector<1x128x384xf32>
    %144 = vector.shape_cast %143 : vector<1x128x384xf32> to vector<128x384xf32>
    %cst_33 = arith.constant dense<0.000000e+00> : vector<128x384xf32>
    %145 = tpu.matmul %0, %142, %cst_33 {dimension_numbers = #tpu.dot_dimension_numbers<[1], [0], [0], [1], [0, 0, 1, 1], [], []>} : vector<128x32xf32>, vector<32x384xf32>, vector<128x384xf32> -> vector<128x384xf32>
    %146 = arith.addf %144, %145 : vector<128x384xf32>
    %147 = vector.extract_strided_slice %146 {offsets = [0, 0], sizes = [96, 384], strides = [1, 1]} : vector<128x384xf32> to vector<96x384xf32>
    %148 = arith.negf %147 : vector<96x384xf32>
    %149 = math.exp %148 : vector<96x384xf32>
    %cst_34 = arith.constant 1.000000e+00 : f32
    %150 = vector.broadcast %cst_34 : f32 to vector<96x384xf32>
    %151 = arith.addf %150, %149 : vector<96x384xf32>
    %152 = arith.divf %150, %151 : vector<96x384xf32>
    %153 = vector.extract_strided_slice %152 {offsets = [0, 0], sizes = [32, 384], strides = [1, 1]} : vector<96x384xf32> to vector<32x384xf32>
    %154 = vector.extract_strided_slice %152 {offsets = [32, 0], sizes = [32, 384], strides = [1, 1]} : vector<96x384xf32> to vector<32x384xf32>
    %155 = vector.extract_strided_slice %152 {offsets = [64, 0], sizes = [32, 384], strides = [1, 1]} : vector<96x384xf32> to vector<32x384xf32>
    %156 = vector.extract_strided_slice %146 {offsets = [96, 0], sizes = [32, 384], strides = [1, 1]} : vector<128x384xf32> to vector<32x384xf32>
    %157 = math.tanh %156 : vector<32x384xf32>
    %158 = arith.mulf %154, %140 : vector<32x384xf32>
    %159 = arith.mulf %153, %157 : vector<32x384xf32>
    %160 = arith.addf %158, %159 : vector<32x384xf32>
    %161 = math.tanh %160 : vector<32x384xf32>
    %162 = arith.mulf %155, %161 : vector<32x384xf32>
    %c0_35 = arith.constant 0 : index
    %c0_36 = arith.constant 0 : index
    %163 = vector.load %arg3[%c0_35, %c0_36] : memref<32x384xf32, #tpu.memory_space<vmem>>, vector<32x384xf32>
    tpu.vector_store %arg3[%c0_35, %c0_36], %162 {strides = array<i32>} : memref<32x384xf32, #tpu.memory_space<vmem>>, vector<32x384xf32>,
    return
  }
  func.func @transform_0(%arg0: i32) -> (i32, i32, i32) {
    %c0_i32 = arith.constant 0 : i32
    %c0_i32_0 = arith.constant 0 : i32
    %c0_i32_1 = arith.constant 0 : i32
    return %c0_i32, %c0_i32_0, %arg0 : i32, i32, i32
  }
  func.func @transform_1(%arg0: i32) -> (i32, i32) {
    %c0_i32 = arith.constant 0 : i32
    %c0_i32_0 = arith.constant 0 : i32
    %c0_i32_1 = arith.constant 0 : i32
    return %c0_i32, %c0_i32_0 : i32, i32
  }
  func.func @transform_2(%arg0: i32) -> (i32, i32) {
    %c0_i32 = arith.constant 0 : i32
    %c0_i32_0 = arith.constant 0 : i32
    return %c0_i32, %arg0 : i32, i32
  }
}

</mosaic_0001>

<bundles_post_ra>
// kernel: tpu_custom_call.1
= control target key start
LH: loop header
LB: loop body
LE: loop exit
PB: predicated region body
PF: predicated region fallthrough
CT: control target
= control target key end

     0   :  { %7 = vsyncpa [#allocation3], 0  ;;  %s11259_s0 = inlined_call_operand.hbm [shape: f32[8,128,1152], index: 0, kind: input, shape index: {}]   ;;  %s11260_s1 = inlined_call_operand.vmem [shape: f32[128,32], index: 1, kind: input, shape index: {}]   ;;  %s11261_s2 = inlined_call_operand.hbm [shape: f32[32,1152], index: 2, kind: output, shape index: {}]  }
   0x1   :  { %9 = vsyncpa [#allocation3 + $0x1], 0 }
   0x2   :  { %10 = vsyncpa [#allocation4], 0 }
   0x3   :  { %12 = vsyncpa [#allocation4 + $0x1], 0  ;;  %s8913_s9 = smov 0   ;;  %s8915_s10 = smov 0  }
   0x4   :  { %s8917_s11 = smov 0   ;;  %s8919_s12 = smov 0  }
   0x5 LB: > { %s8934_s13 = sadd.s32 4294967295, %s8887_s12   ;;  %s5710_s14 = sadd.s32 4294967294, %s8887_s12   ;;  %s8887_s12 = sphi %s8919_s12, %s11273_s12   ;;  %s8883_s11 = sphi %s8917_s11, %s11272_s11   ;;  %s8879_s10 = sphi %s8915_s10, %s11271_s10   ;;  %s8875_s9 = sphi %s8913_s9, %s11270_s9  }
   0x6   : > { %s8938_s15 = sadd.s32 1, %s8887_s12   ;;  %s25_s16 = sadd.s32 1, %s8883_s11 }
   0x7   : > { %s22_s17 = ssub.s32 %s8887_s12, %s8938_s15  ;;  %p32_p0 = scmp.ne.s32.totalorder %s8883_s11, %s8879_s10 }
   0x8   : > { %p23_p1 = scmp.eq.s32.totalorder %s22_s17, 0  ;;  %p33_p2 = scmp.eq.s32.totalorder %s8887_s12, 0 }
   0x9   : > { %p38_p3 = scmp.ne.s32.totalorder %s8879_s10, %s8875_s9  ;;  %p39_p4 = scmp.eq.s32.totalorder %s8934_s13, 0 }
   0xa   : > { %s8950_s18 = scalar_select %p23_p1, %s8883_s11, %s25_s16  }
   0xb   : > { %p34_p5 = por %p33_p2, %p32_p0  ;;  %p8952_p6 = por %p39_p4, %p38_p3 }
   0xc   : > { %p83_p7 = scmp.eq.s32.totalorder %s8934_s13, 2  ;;  %p89_p8 = scmp.eq.s32.totalorder %s5710_s14, 2 }
   0xd   : > { %p7118_p9 = scmp.lt.s32.totalorder %s8887_s12, 3  ;;  %s112_s22 = sand.u32 1, %s8883_s11  }
   0xe   : > { %p8958_p10 = por %p83_p7, %p32_p0  ;;  %p8962_p11 = por %p89_p8, %p38_p3 }
   0xf   : > { %s6582_s23 = smul.u32 384, %s8887_s12  ;;  %p8973_p12 = pnand %p7118_p9, %p34_p5 }
  0x10   : > { %s11264_s20 = scalar_select %p8958_p10, 1, 0 }
  0x11   : > { %s11265_s21 = scalar_select %p8962_p11, 1, 0 }
  0x12   : > { %s7103_s24 = smul.u32 3072, %s112_s22  ;;  %s8971_s27 = scalar_lea.hbm %s11259_s0, %s6582_s23 }
  0x13   : > { %s8980_s3 = scalar_lea.sflag [#allocation3], %s112_s22  ;;  %s8791_s4 = scalar_lea.hbm %s8971_s27, 49152 }
  0x14   : > { %s116_s29 = scalar_lea.vmem [#allocation2], %s7103_s24  ;;  %p8792_p0 = scmp.ne.s32.totalorder %s8971_s27, %s8791_s4 }
  0x15   : > { %s123_s30 = sshll.u32 %s116_s29, 4  ;;  %p8793_p1 = pneg %p8973_p12  ;;  %s8977_s30 = int_to_ptr.vmem [resolvable:$true] %s123_s30 }
  0x16   : > { %s8796_s7 = scalar_lea.hbm %s11259_s0, 147456  ;;  %p8797_p4 = scmp.lt.u32.totalorder %s8971_s27, %s11259_s0 }
  0x17   : > { %p8794_p2 = pnand %p8793_p1, %p8792_p0  ;;  %p8798_p5 = scmp.lt.u32.totalorder %s8796_s7, %s8791_s4 }
  0x18   : > { %p8800_p8 = scmp.lt.u32.totalorder %s8791_s4, %s8971_s27 }
  0x19   : > { %p8795_p3 = pneg %p8794_p2  ;;  %p8799_p7 = por %p8798_p5, %p8797_p4 }
  0x1b   : > { %p8801_p9 = por %p8800_p8, %p8799_p7 }
  0x1d   : > { %p8802_p13 = pnand %p8801_p9, %p8795_p3 }
  0x1f   : > { %8805 = shalt.err (!%p8802_p13)
}
  0x20   : > { %s8806_s16 = scalar_lea.vmem %s8977_s30, 49152  ;;  %s8889_s17 = smov [#allocation2]  }
  0x21   : > { %p8807_p0 = scmp.ne.s32.totalorder %s8977_s30, %s8806_s16  ;;  %s8811_s22 = sshll.u32 %s8889_s17, 4  ;;  %s8812_s22 = int_to_ptr.vmem [resolvable:$false] %s8811_s22 }
  0x22   : > { %s8813_s23 = scalar_lea.vmem %s8812_s22, 98304  ;;  %p8814_p10 = scmp.lt.s32.totalorder %s8977_s30, %s8812_s22 }
  0x23   : > { %p8809_p2 = pnand %p8807_p0, %p8793_p1  ;;  %p8815_p4 = scmp.lt.s32.totalorder %s8813_s23, %s8806_s16 }
  0x25   : > { %p8810_p11 = pneg %p8809_p2  ;;  %p8816_p5 = por %p8815_p4, %p8814_p10 }
  0x27   : > { %p8817_p7 = pnand %p8816_p5, %p8810_p11 }
  0x29   : > { %8820 = shalt.err (!%p8817_p7)
}
  0x2a   : > { %s8890_s24 = smov 1152   ;;  %s8891_s25 = smov 384  }
  0x2b   : > { %s8892_s26 = smov 24   ;;  %p131_p13 = scmp.lt.s32.totalorder %s8887_s12, 4 }
  0x2c   : > { %7113 = dma.hbm_to_vmem [thread:$0]  (!%p8973_p12), %s8971_s27, 49152, %s8977_s30, %s8980_s3, %s8890_s24, %s8891_s25, %s8892_s26  }
  0x2d   : > { %p11267_p1 = scmp.ge.s32.totalorder %s8887_s12, 1 }
  0x2f   : > { %p132_p3 = pnand %p11267_p1, %p131_p13 }
  0x30   : > { %s9012_s29 = sand.u32 (!%p132_p3), 1, %s8879_s10  }
  0x31   : > { %135 = sbr.rel (%p132_p3) target bundleno = 2561 (0xa01), region = 28  ;;  %s138_s5 = scalar_lea.sflag (!%p132_p3), [#allocation3], %s9012_s29 }
  0x32   : > { %s7104_s4 = smul.u32 (!%p132_p3), 3072, %s9012_s29 }
  0x34   : > { %s9016_s6 = scalar_lea.vmem (!%p132_p3), [#allocation2], %s7104_s4 }
  0x38   : > { %8866 = dma.done.wait (%p8952_p6), %s138_s5, 49152  }
  0x39   : > { %8868 = vsyncadd (%p8952_p6), %s138_s5, 4294918144  ;;  %v8893_v0 = vmov 0.0   ;;  %vm228_vm0 = vcmask 261120   ;;  %v9028_v1 = vld [vmem:[%s11260_s1] sm:$0xff]  ;;  %v9033_v2 = vld [vmem:[%s11260_s1 + $0x8] sm:$0xff]  ;;  %s7105_s3 = smul.u32 96, %s9012_s29 }
  0x3a   : > { %6741 = vmatprep.subr.mxu0 %v8893_v0  ;;  %887 = vmatprep.mubr.f32.mxu1 %v8893_v0  ;;  %v9038_v3 = vld [vmem:[%s11260_s1 + $0x10] sm:$0xff]  ;;  %v9049_v4 = vld [vmem:[%s11260_s1 + $0x18] sm:$0xff]  ;;  %v9054_v5 = vld [vmem:[%s11260_s1 + $0x20] sm:$0xff]  ;;  %p11268_p10 = scmp.ne.s32.totalorder %s11264_s20, 0  ;;  %s8894_s22 = smov [#allocation5]  }
  0x3b   : > { %6742 = vmatpush3.msra.mxu0 %v8893_v0  ;;  %6743 = vmatprep.mubr.msk.f32.mxu0 %vm228_vm0, %v9028_v1  ;;  %v9063_v6 = vld [vmem:[%s11260_s1 + $0x28] sm:$0xff]  ;;  %v9068_v7 = vld [vmem:[%s11260_s1 + $0x30] sm:$0xff]  ;;  %v9077_v8 = vld [vmem:[%s11260_s1 + $0x38] sm:$0xff]  ;;  %s11131_s19 = scalar_lea.vmem [#allocation5], %s7105_s3  ;;  %s8825_s23 = sshll.u32 %s8894_s22, 4  ;;  %s8826_s23 = int_to_ptr.vmem [resolvable:$false] %s8825_s23 }
  0x3c   : > { %6744 = vmatmul.mubr.msk.f32.vlgmr.msra.gmra.mrb[0].mxu0 %vm228_vm0, %v9033_v2  ;;  %v9082_v9 = vld [vmem:[%s11260_s1 + $0x40] sm:$0xff]  ;;  %v9091_v10 = vld [vmem:[%s11260_s1 + $0x48] sm:$0xff]  ;;  %v9096_v11 = vld [vmem:[%s11260_s1 + $0x50] sm:$0xff]  ;;  %s5637_s7 = sshll.u32 %s11131_s19, 4  ;;  %s8827_s24 = scalar_lea.vmem %s8826_s23, 3072  ;;  %s11213_s7 = int_to_ptr.vmem [resolvable:$true] %s5637_s7 }
  0x3d   : > { %6746 = vmatprep.mubr.msk.f32.mxu0 %vm228_vm0, %v9038_v3  ;;  %v9105_v12 = vld [vmem:[%s11260_s1 + $0x58] sm:$0xff]  ;;  %v9110_v13 = vld [vmem:[%s11260_s1 + $0x60] sm:$0xff]  ;;  %v9119_v14 = vld [vmem:[%s11260_s1 + $0x68] sm:$0xff]  ;;  %s8821_s17 = scalar_lea.vmem %s11213_s7, 1536  ;;  %p8828_p8 = scmp.lt.s32.totalorder %s11213_s7, %s8826_s23 }
  0x3e   : > { %v9124_v15 = vld [vmem:[%s11260_s1 + $0x70] sm:$0xff]  ;;  %v9133_v16 = vld [vmem:[%s11260_s1 + $0x78] sm:$0xff]  ;;  %v181_v17 = vld [vmem:[%s9016_s6 + $0x8] sm:$0xff]  ;;  %p8822_p6 = scmp.ne.s32.totalorder %s11213_s7, %s8821_s17  ;;  %p8829_p9 = scmp.lt.s32.totalorder %s8827_s24, %s8821_s17 }
  0x3f   : > { %v184_v18 = vld [vmem:[%s9016_s6 + $0x20] sm:$0xff]  ;;  %v193_v19 = vld [vmem:[%s9016_s6 + $0x68] sm:$0xff]  ;;  %v5732_v21 = vmul.f32 -1.442695, %v181_v17  ;;  %v187_v62 = vld [vmem:[%s9016_s6 + $0x38] sm:$0xff] }
  0x40   : > { %6747 = vmatmul.mubr.msk.f32.gmra.mrb[2].mxu0 %vm228_vm0, %v9049_v4  ;;  %v196_v20 = vld [vmem:[%s9016_s6 + $0x80] sm:$0xff]  ;;  %v5735_v22 = vmul.f32 -1.442695, %v184_v18  ;;  %v5744_v23 = vmul.f32 -1.442695, %v193_v19  ;;  %v205_v29 = vld [vmem:[%s9016_s6 + $0xc8] sm:$0xff]  ;;  %p8823_p11 = pnand %p8822_p6, %p11268_p10  ;;  %p8830_p0 = por %p8829_p9, %p8828_p8 }
  0x41   : > { %6749 = vmatprep.mubr.msk.f32.mxu0 %vm228_vm0, %v9054_v5  ;;  %v5747_v24 = vmul.f32 -1.442695, %v196_v20  ;;  %7159 = vpow2.f32 %v5732_v21  ;;  %v208_v30 = vld [vmem:[%s9016_s6 + $0xe0] sm:$0xff]  ;;  %v5756_v33 = vmul.f32 -1.442695, %v205_v29  ;;  %v217_v37 = vld [vmem:[%s9016_s6 + $0x128] sm:$0xff] }
  0x42   : > { %7161 = vpow2.f32 %v5735_v22  ;;  %v5759_v34 = vmul.f32 -1.442695, %v208_v30  ;;  %v220_v38 = vld [vmem:[%s9016_s6 + $0x140] sm:$0xff]  ;;  %v190_v63 = vld [vmem:[%s9016_s6 + $0x50] sm:$0xff]  ;;  %v199_v17 = vld [vmem:[%s9016_s6 + $0x98] sm:$0xff]  ;;  %p8824_p12 = pneg %p8823_p11 }
  0x43   : > { %7163 = vpow2.f32 %v5744_v23  ;;  %v202_v18 = vld [vmem:[%s9016_s6 + $0xb0] sm:$0xff]  ;;  %v5738_v19 = vmul.f32 -1.442695, %v187_v62  ;;  %v5741_v20 = vmul.f32 -1.442695, %v190_v63  ;;  %v211_v30 = vld [vmem:[%s9016_s6 + $0xf8] sm:$0xff] }
  0x44   : > { %6750 = vmatmul.mubr.msk.f32.gmra.mrb[4].mxu0 %vm228_vm0, %v9063_v6  ;;  %7165 = vpow2.f32 %v5747_v24  ;;  %v5750_v21 = vmul.f32 -1.442695, %v199_v17  ;;  %v5753_v22 = vmul.f32 -1.442695, %v202_v18  ;;  %v195_v17 = vld [vmem:[%s9016_s6 + $0x78] sm:$0xff]  ;;  %p8831_p2 = pnand %p8830_p0, %p8824_p12 }
  0x45   : > { %6752 = vmatprep.mubr.msk.f32.mxu0 %vm228_vm0, %v9068_v7 }
  0x48   : > { %6753 = vmatmul.mubr.msk.f32.gmra.mrb[6].mxu0 %vm228_vm0, %v9077_v8 }
  0x49   : > { %6755 = vmatprep.mubr.msk.f32.mxu0 %vm228_vm0, %v9082_v9 }
  0x4b   : > { %v7160_v25 = vpop.eup %7159 }
  0x4c   : > { %6756 = vmatmul.mubr.msk.f32.gmra.mrb[8].mxu0 %vm228_vm0, %v9091_v10  ;;  %v7162_v26 = vpop.eup %7161  ;;  %v595_v27 = vadd.f32 1.0, %v7160_v25 }
  0x4d   : > { %6758 = vmatprep.mubr.msk.f32.mxu0 %vm228_vm0, %v9096_v11  ;;  %v7164_v28 = vpop.eup %7163  ;;  %v598_v31 = vadd.f32 1.0, %v7162_v26 }
  0x4e   : > { %v7166_v32 = vpop.eup %7165  ;;  %v607_v35 = vadd.f32 1.0, %v7164_v28  ;;  %7167 = vrcp.f32 %v595_v27 }
  0x4f   : > { %v610_v36 = vadd.f32 1.0, %v7166_v32  ;;  %7169 = vrcp.f32 %v598_v31  ;;  %v214_v32 = vld [vmem:[%s9016_s6 + $0x110] sm:$0xff] }
  0x50   : > { %6759 = vmatmul.mubr.msk.f32.gmra.mrb[10].mxu0 %vm228_vm0, %v9105_v12  ;;  %7171 = vpow2.f32 %v5756_v33  ;;  %v223_v33 = vld [vmem:[%s9016_s6 + $0x158] sm:$0xff] }
  0x51   : > { %6761 = vmatprep.mubr.msk.f32.mxu0 %vm228_vm0, %v9110_v13  ;;  %7173 = vpow2.f32 %v5759_v34  ;;  %v226_v34 = vld [vmem:[%s9016_s6 + $0x170] sm:$0xff] }
  0x52   : > { %7175 = vrcp.f32 %v607_v35  ;;  %v5762_v35 = vmul.f32 -1.442695, %v211_v30  ;;  %v197_v30 = vld [vmem:[%s9016_s6 + $0x88] sm:$0xff] }
  0x53   : > { %7177 = vrcp.f32 %v610_v36  ;;  %v5765_v36 = vmul.f32 -1.442695, %v214_v32 }
  0x54   : > { %6762 = vmatmul.mubr.msk.f32.gmra.mrb[12].mxu0 %vm228_vm0, %v9119_v14  ;;  %7179 = vtanh.f32 %v217_v37  ;;  %v183_v37 = vld [vmem:[%s9016_s6 + $0x18] sm:$0xff] }
  0x55   : > { %6764 = vmatprep.mubr.msk.f32.mxu0 %vm228_vm0, %v9124_v15  ;;  %7181 = vtanh.f32 %v220_v38  ;;  %v185_v38 = vld [vmem:[%s9016_s6 + $0x28] sm:$0xff] }
  0x58   : > { %6765 = vmatmul.mubr.msk.f32.gmra.mrb[14].mxu0 %vm228_vm0, %v9133_v16  ;;  %v7168_v39 = vpop.eup %7167 }
  0x59   : > { %6775 = vmatprep.mubr.msk.f32.mxu0 %vm228_vm0, %v9028_v1  ;;  %v7170_v40 = vpop.eup %7169 }
  0x5a   : > { %v7172_v41 = vpop.eup %7171 }
  0x5b   : > { %v7174_v42 = vpop.eup %7173  ;;  %v619_v45 = vadd.f32 1.0, %v7172_v41  ;;  %v182_v41 = vld [vmem:[%s9016_s6 + $0x10] sm:$0xff] }
  0x5c   : > { %v7176_v43 = vpop.eup %7175  ;;  %v622_v48 = vadd.f32 1.0, %v7174_v42 }
  0x5d   : > { %v7178_v44 = vpop.eup %7177  ;;  %v715_v46 = vmul.f32 0.0, %v7176_v43  ;;  %7183 = vrcp.f32 %v619_v45 }
  0x5e   : > { %v7180_v47 = vpop.eup %7179  ;;  %v718_v49 = vmul.f32 0.0, %v7178_v44  ;;  %7185 = vrcp.f32 %v622_v48 }
  0x5f   : > { %v7182_v50 = vpop.eup %7181  ;;  %v727_v51 = vmul.f32 %v7180_v47, %v7168_v39  ;;  %v180_v39 = vld [vmem:[%s9016_s6] sm:$0xff]  ;;  %v191_v47 = vld [vmem:[%s9016_s6 + $0x58] sm:$0xff] }
  0x60   : > { %v730_v52 = vmul.f32 %v7182_v50, %v7170_v40 }
  0x61   : > { %v9147_v53 = vadd.f32 %v727_v51, %v715_v46  ;;  %v189_v46 = vld [vmem:[%s9016_s6 + $0x48] sm:$0xff] }
  0x62   : > { %v9149_v54 = vadd.f32 %v730_v52, %v718_v49  ;;  %v186_v49 = vld [vmem:[%s9016_s6 + $0x30] sm:$0xff] }
  0x63   : > { %7187 = vtanh.f32 %v9147_v53 }
  0x64   : > { %7189 = vtanh.f32 %v9149_v54 }
  0x65   : > { %7191 = vpow2.f32 %v5738_v19 }
  0x66   : > { %7193 = vpow2.f32 %v5741_v20 }
  0x67   : > { %v7184_v55 = vpop.eup %7183  ;;  %7195 = vpow2.f32 %v5750_v21 }
  0x68   : > { %v7186_v56 = vpop.eup %7185  ;;  %7197 = vpow2.f32 %v5753_v22 }
  0x6d   : > { %v7188_v57 = vpop.eup %7187 }
  0x6e   : > { %v7190_v58 = vpop.eup %7189  ;;  %v763_v59 = vmul.f32 %v7188_v57, %v7184_v55  ;;  %v188_v55 = vld [vmem:[%s9016_s6 + $0x40] sm:$0xff] }
  0x6f   : > { %v766_v60 = vmul.f32 %v7190_v58, %v7186_v56  ;;  %v7192_v23 = vpop.eup %7191 }
  0x70   : > { %v7194_v24 = vpop.eup %7193  ;;  %v601_v27 = vadd.f32 1.0, %v7192_v23 }
  0x71   : > { %v6991_v61 = vpack.c.bf16 %v766_v60, %v763_v59  ;;  %v7196_v25 = vpop.eup %7195  ;;  %v604_v28 = vadd.f32 1.0, %v7194_v24 }
  0x72   : > { %v7198_v26 = vpop.eup %7197  ;;  %v613_v29 = vadd.f32 1.0, %v7196_v25  ;;  %7199 = vrcp.f32 %v601_v27 }
  0x73   : > { %6992 = vmatprep.subr.bf16.mxu1 %v6991_v61  ;;  %v616_v31 = vadd.f32 1.0, %v7198_v26  ;;  %7201 = vrcp.f32 %v604_v28 }
  0x74   : > { %7203 = vrcp.f32 %v613_v29 }
  0x75   : > { %7205 = vrcp.f32 %v616_v31 }
  0x76   : > { %7207 = vtanh.f32 %v223_v33  ;;  %v192_v33 = vld [vmem:[%s9016_s6 + $0x60] sm:$0xff] }
  0x77   : > { %7209 = vtanh.f32 %v226_v34 }
  0x78   : > { %7211 = vpow2.f32 %v5762_v35 }
  0x79   : > { %7213 = vpow2.f32 %v5765_v36 }
  0x7c   : > { %v7200_v50 = vpop.eup %7199 }
  0x7d   : > { %v7202_v56 = vpop.eup %7201 }
  0x7e   : > { %v7204_v61 = vpop.eup %7203 }
  0x7f   : > { %v7206_v18 = vpop.eup %7205  ;;  %v721_v34 = vmul.f32 0.0, %v7204_v61 }
  0x80   : > { %v7208_v21 = vpop.eup %7207 }
  0x81   : > { %v7210_v24 = vpop.eup %7209  ;;  %v733_v35 = vmul.f32 %v7208_v21, %v7200_v50 }
  0x82   : > { %v7212_v28 = vpop.eup %7211 }
  0x83   : > { %v7214_v31 = vpop.eup %7213 }
 0x10f   : > { %v6745_v40 = vpop.f32.mrb[0].mxu0 }
 0x110   : > { %v441_v42 = vadd.f32 %v6745_v40, %v183_v37  ;;  %v443_v43 = vadd.f32 %v6745_v40, %v185_v38  ;;  %v343_v44 = vpop.f32.mrb[1].mxu0  ;;  %v194_v37 = vld [vmem:[%s9016_s6 + $0x70] sm:$0xff]  ;;  %v736_v40 = vmul.f32 %v7210_v24, %v7202_v56 }
 0x111   : > { %v438_v45 = vadd.f32 %v343_v44, %v180_v39  ;;  %v440_v48 = vadd.f32 %v343_v44, %v182_v41  ;;  %v724_v39 = vmul.f32 0.0, %v7206_v18  ;;  %v625_v44 = vadd.f32 1.0, %v7212_v28 }
 0x112   : > { %v5734_v51 = vmul.f32 -1.442695, %v441_v42  ;;  %v5736_v57 = vmul.f32 -1.442695, %v443_v43  ;;  %v201_v42 = vld [vmem:[%s9016_s6 + $0xa8] sm:$0xff] }
 0x113   : > { %v6748_v52 = vpop.f32.mrb[2].mxu0  ;;  %v5731_v62 = vmul.f32 -1.442695, %v438_v45  ;;  %v5733_v19 = vmul.f32 -1.442695, %v440_v48  ;;  %v9174_v48 = vadd.f32 %v733_v35, %v721_v34  ;;  %v207_v35 = vld [vmem:[%s9016_s6 + $0xd8] sm:$0xff] }
 0x114   : > { %v447_v58 = vadd.f32 %v6748_v52, %v189_v46  ;;  %v449_v59 = vadd.f32 %v6748_v52, %v191_v47  ;;  %v355_v60 = vpop.f32.mrb[3].mxu0  ;;  %7215 = vpow2.f32 %v5734_v51  ;;  %v628_v46 = vadd.f32 1.0, %v7214_v31 }
 0x115   : > { %v444_v63 = vadd.f32 %v355_v60, %v186_v49  ;;  %v446_v20 = vadd.f32 %v355_v60, %v188_v55  ;;  %7217 = vpow2.f32 %v5736_v57  ;;  %v9178_v51 = vadd.f32 %v736_v40, %v724_v39 }
 0x116   : > { %v5740_v22 = vmul.f32 -1.442695, %v447_v58  ;;  %v5742_v25 = vmul.f32 -1.442695, %v449_v59  ;;  %7219 = vpow2.f32 %v5731_v62 }
 0x117   : > { %v6751_v23 = vpop.f32.mrb[4].mxu0  ;;  %v5737_v29 = vmul.f32 -1.442695, %v444_v63  ;;  %7221 = vpow2.f32 %v5733_v19  ;;  %v5739_v32 = vmul.f32 -1.442695, %v446_v20 }
 0x118   : > { %v453_v26 = vadd.f32 %v6751_v23, %v195_v17  ;;  %v367_v27 = vpop.f32.mrb[5].mxu0  ;;  %7223 = vpow2.f32 %v5740_v22  ;;  %v455_v41 = vadd.f32 %v6751_v23, %v197_v30  ;;  %v203_v23 = vld [vmem:[%s9016_s6 + $0xb8] sm:$0xff]  ;;  %v200_v30 = vld [vmem:[%s9016_s6 + $0xa0] sm:$0xff] }
 0x119   : > { %7225 = vpow2.f32 %v5742_v25  ;;  %v450_v45 = vadd.f32 %v367_v27, %v192_v33  ;;  %v452_v47 = vadd.f32 %v367_v27, %v194_v37 }
 0x11a   : > { %v5746_v36 = vmul.f32 -1.442695, %v453_v26  ;;  %7227 = vpow2.f32 %v5737_v29  ;;  %v5748_v52 = vmul.f32 -1.442695, %v455_v41  ;;  %v198_v26 = vld [vmem:[%s9016_s6 + $0x90] sm:$0xff] }
 0x11b   : > { %v6754_v38 = vpop.f32.mrb[6].mxu0  ;;  %7229 = vpow2.f32 %v5739_v32  ;;  %v5743_v57 = vmul.f32 -1.442695, %v450_v45  ;;  %v5745_v59 = vmul.f32 -1.442695, %v452_v47 }
 0x11c   : > { %v379_v43 = vpop.f32.mrb[7].mxu0  ;;  %7231 = vpow2.f32 %v5746_v36  ;;  %v459_v49 = vadd.f32 %v6754_v38, %v201_v42  ;;  %v461_v34 = vadd.f32 %v6754_v38, %v203_v23  ;;  %v206_v23 = vld [vmem:[%s9016_s6 + $0xd0] sm:$0xff] }
 0x11d   : > { %7233 = vrcp.f32 %v625_v44  ;;  %v456_v39 = vadd.f32 %v379_v43, %v198_v26  ;;  %v458_v42 = vadd.f32 %v379_v43, %v200_v30 }
 0x11e   : > { %v7216_v56 = vpop.eup %7215  ;;  %7235 = vrcp.f32 %v628_v46  ;;  %v5752_v61 = vmul.f32 -1.442695, %v459_v49 }
 0x11f   : > { %v9176_v50 = vpop.f32.mrb[8].mxu0  ;;  %v7218_v58 = vpop.eup %7217  ;;  %7237 = vtanh.f32 %v9174_v48  ;;  %v597_v17 = vadd.f32 1.0, %v7216_v56 }
 0x120   : > { %v9180_v55 = vpop.f32.mrb[9].mxu0  ;;  %v7220_v60 = vpop.eup %7219  ;;  %7239 = vtanh.f32 %v9178_v51  ;;  %v599_v20 = vadd.f32 1.0, %v7218_v58  ;;  %v465_v38 = vadd.f32 %v9176_v50, %v207_v35  ;;  %v5751_v58 = vmul.f32 -1.442695, %v458_v42 }
 0x121   : > { %v7222_v63 = vpop.eup %7221  ;;  %7241 = vpow2.f32 %v5748_v52  ;;  %v594_v22 = vadd.f32 1.0, %v7220_v60  ;;  %v5754_v52 = vmul.f32 -1.442695, %v461_v34  ;;  %v221_v34 = vld [vmem:[%s9016_s6 + $0x148] sm:$0xff] }
 0x122   : > { %v7224_v19 = vpop.eup %7223  ;;  %7243 = vpow2.f32 %v5743_v57  ;;  %v596_v25 = vadd.f32 1.0, %v7222_v63  ;;  %v5749_v57 = vmul.f32 -1.442695, %v456_v39 }
 0x123   : > { %v9183_v62 = vpop.f32.mrb[10].mxu0  ;;  %v7226_v21 = vpop.eup %7225  ;;  %7245 = vpow2.f32 %v5745_v59  ;;  %v603_v29 = vadd.f32 1.0, %v7224_v19  ;;  %v209_v59 = vld [vmem:[%s9016_s6 + $0xe8] sm:$0xff]  ;;  %v204_v19 = vld [vmem:[%s9016_s6 + $0xc0] sm:$0xff] }
 0x124   : > { %v9186_v18 = vpop.f32.mrb[11].mxu0  ;;  %v7228_v24 = vpop.eup %7227  ;;  %7247 = vpow2.f32 %v5752_v61  ;;  %v605_v33 = vadd.f32 1.0, %v7226_v21  ;;  %v5758_v61 = vmul.f32 -1.442695, %v465_v38  ;;  %v212_v38 = vld [vmem:[%s9016_s6 + $0x100] sm:$0xff] }
 0x125   : > { %v7230_v28 = vpop.eup %7229  ;;  %7249 = vrcp.f32 %v597_v17  ;;  %v600_v37 = vadd.f32 1.0, %v7228_v24  ;;  %v219_v24 = vld [vmem:[%s9016_s6 + $0x138] sm:$0xff] }
 0x126   : > { %v7232_v32 = vpop.eup %7231  ;;  %7251 = vrcp.f32 %v599_v20  ;;  %v602_v41 = vadd.f32 1.0, %v7230_v28  ;;  %v213_v28 = vld [vmem:[%s9016_s6 + $0x108] sm:$0xff] }
 0x127   : > { %v9190_v27 = vpop.f32.mrb[12].mxu0  ;;  %v9196_v36 = vpop.eup %7233  ;;  %7253 = vrcp.f32 %v594_v22  ;;  %v609_v46 = vadd.f32 1.0, %v7232_v32  ;;  %v467_v22 = vadd.f32 %v9176_v50, %v209_v59  ;;  %v462_v32 = vadd.f32 %v9180_v55, %v204_v19 }
 0x128   : > { %v9193_v31 = vpop.f32.mrb[13].mxu0  ;;  %v9198_v40 = vpop.eup %7235  ;;  %7255 = vrcp.f32 %v596_v25  ;;  %v464_v50 = vadd.f32 %v9180_v55, %v206_v23  ;;  %v477_v39 = vadd.f32 %v9190_v27, %v219_v24 }
 0x129   : > { %v9202_v45 = vpop.eup %7237  ;;  %7257 = vrcp.f32 %v603_v29  ;;  %v5760_v42 = vmul.f32 -1.442695, %v467_v22  ;;  %v5755_v55 = vmul.f32 -1.442695, %v462_v32 }
 0x12a   : > { %v9207_v49 = vpop.eup %7239  ;;  %7259 = vrcp.f32 %v605_v33  ;;  %v215_v33 = vld [vmem:[%s9016_s6 + $0x118] sm:$0xff] }
 0x12b   : > { %v9200_v44 = vpop.f32.mrb[14].mxu0  ;;  %v7242_v56 = vpop.eup %7241  ;;  %7261 = vrcp.f32 %v600_v37  ;;  %v210_v37 = vld [vmem:[%s9016_s6 + $0xf0] sm:$0xff] }
 0x12c   : > { %v9205_v47 = vpop.f32.mrb[15].mxu0  ;;  %v7244_v43 = vpop.eup %7243  ;;  %7263 = vrcp.f32 %v602_v41  ;;  %v611_v17 = vadd.f32 1.0, %v7242_v56  ;;  %v473_v56 = vadd.f32 %v9183_v62, %v215_v33 }
 0x12d   : > { %v7246_v60 = vpop.eup %7245  ;;  %7265 = vrcp.f32 %v609_v46  ;;  %v606_v21 = vadd.f32 1.0, %v7244_v43  ;;  %v471_v46 = vadd.f32 %v9183_v62, %v213_v28 }
 0x12e   : > { %v7248_v63 = vpop.eup %7247  ;;  %7267 = vpow2.f32 %v5754_v52  ;;  %v608_v26 = vadd.f32 1.0, %v7246_v60  ;;  %v5757_v60 = vmul.f32 -1.442695, %v464_v50  ;;  %v5766_v62 = vmul.f32 -1.442695, %v473_v56  ;;  %v227_v56 = vld [vmem:[%s9016_s6 + $0x178] sm:$0xff] }
 0x12f   : > { %v9211_v20 = vpop.eup %7249  ;;  %7269 = vpow2.f32 %v5749_v57  ;;  %v615_v30 = vadd.f32 1.0, %v7248_v63  ;;  %v479_v57 = vadd.f32 %v9190_v27, %v221_v34  ;;  %v218_v34 = vld [vmem:[%s9016_s6 + $0x130] sm:$0xff] }
 0x130   : > { %v9216_v25 = vpop.eup %7251  ;;  %7271 = vpow2.f32 %v5751_v58  ;;  %v468_v58 = vadd.f32 %v9186_v18, %v210_v37 }
 0x131   : > { %v9219_v29 = vpop.eup %7253  ;;  %7273 = vpow2.f32 %v5758_v61  ;;  %v470_v61 = vadd.f32 %v9186_v18, %v212_v38 }
 0x132   : > { %v9224_v35 = vpop.eup %7255  ;;  %7275 = vrcp.f32 %v611_v17  ;;  %v5764_v17 = vmul.f32 -1.442695, %v471_v46 }
 0x133   : > { %v9229_v41 = vpop.eup %7257  ;;  %7277 = vrcp.f32 %v606_v21  ;;  %v5761_v21 = vmul.f32 -1.442695, %v468_v58  ;;  %v5763_v23 = vmul.f32 -1.442695, %v470_v61  ;;  %v222_v58 = vld [vmem:[%s9016_s6 + $0x150] sm:$0xff] }
 0x134   : > { %v9233_v52 = vpop.eup %7259  ;;  %7279 = vrcp.f32 %v608_v26 }
 0x135   : > { %v9237_v43 = vpop.eup %7261  ;;  %7281 = vrcp.f32 %v615_v30  ;;  %v216_v30 = vld [vmem:[%s9016_s6 + $0x120] sm:$0xff] }
 0x136   : > { %v9240_v59 = vpop.eup %7263  ;;  %7283 = vtanh.f32 %v477_v39  ;;  %v225_v39 = vld [vmem:[%s9016_s6 + $0x168] sm:$0xff]  ;;  %v474_v38 = vadd.f32 %v9193_v31, %v216_v30 }
 0x137   : > { %v7266_v63 = vpop.eup %7265  ;;  %7285 = vpow2.f32 %v5760_v42 }
 0x138   : > { %v7268_v19 = vpop.eup %7267  ;;  %7287 = vtanh.f32 %v479_v57  ;;  %v717_v46 = vmul.f32 0.0, %v7266_v63  ;;  %v485_v63 = vadd.f32 %v9200_v44, %v227_v56 }
 0x139   : > { %v7270_v27 = vpop.eup %7269  ;;  %7289 = vpow2.f32 %v5755_v55  ;;  %v617_v26 = vadd.f32 1.0, %v7268_v19  ;;  %v476_v55 = vadd.f32 %v9193_v31, %v218_v34  ;;  %v483_v19 = vadd.f32 %v9200_v44, %v225_v39 }
 0x13a   : > { %v7272_v22 = vpop.eup %7271  ;;  %7291 = vpow2.f32 %v5757_v60  ;;  %v612_v28 = vadd.f32 1.0, %v7270_v27  ;;  %v480_v31 = vadd.f32 %v9205_v47, %v222_v58 }
 0x13b   : > { %v7274_v24 = vpop.eup %7273  ;;  %7293 = vpow2.f32 %v5764_v17  ;;  %v614_v33 = vadd.f32 1.0, %v7272_v22 }
 0x13c   : > { %v7276_v18 = vpop.eup %7275  ;;  %7295 = vpow2.f32 %v5766_v62  ;;  %v621_v37 = vadd.f32 1.0, %v7274_v24  ;;  %v224_v62 = vld [vmem:[%s9016_s6 + $0x160] sm:$0xff] }
 0x13d   : > { %v7278_v32 = vpop.eup %7277  ;;  %7297 = vpow2.f32 %v5761_v21  ;;  %v719_v61 = vmul.f32 0.0, %v7276_v18 }
 0x13e   : > { %v7280_v50 = vpop.eup %7279  ;;  %7299 = vpow2.f32 %v5763_v23 }
 0x13f   : > { %v7282_v42 = vpop.eup %7281  ;;  %7301 = vrcp.f32 %v617_v26  ;;  %v482_v26 = vadd.f32 %v9205_v47, %v224_v62 }
 0x140   : > { %v7284_v57 = vpop.eup %7283  ;;  %7303 = vrcp.f32 %v612_v28 }
 0x141   : > { %v7286_v60 = vpop.eup %7285  ;;  %7305 = vrcp.f32 %v614_v33  ;;  %v729_v17 = vmul.f32 %v7284_v57, %v9211_v20  ;;  %v714_v57 = vmul.f32 0.0, %v7278_v32 }
 0x142   : > { %v7288_v27 = vpop.eup %7287  ;;  %7307 = vrcp.f32 %v621_v37  ;;  %v623_v18 = vadd.f32 1.0, %v7286_v60  ;;  %v716_v60 = vmul.f32 0.0, %v7280_v50 }
 0x143   : > { %v7290_v21 = vpop.eup %7289  ;;  %v731_v22 = vmul.f32 %v7288_v27, %v9216_v25  ;;  %v9255_v23 = vadd.f32 %v729_v17, %v717_v46  ;;  %7309 = vtanh.f32 %v474_v38 }
 0x144   : > { %v7292_v24 = vpop.eup %7291  ;;  %7311 = vtanh.f32 %v476_v55  ;;  %v618_v33 = vadd.f32 1.0, %v7290_v21 }
 0x145   : > { %v7294_v20 = vpop.eup %7293  ;;  %v9259_v28 = vadd.f32 %v731_v22, %v719_v61  ;;  %7313 = vtanh.f32 %v483_v19  ;;  %v620_v34 = vadd.f32 1.0, %v7292_v24  ;;  %v723_v19 = vmul.f32 0.0, %v7282_v42 }
 0x146   : > { %v7296_v30 = vpop.eup %7295  ;;  %7315 = vtanh.f32 %v485_v63  ;;  %v627_v37 = vadd.f32 1.0, %v7294_v20 }
 0x147   : > { %v7298_v44 = vpop.eup %7297  ;;  %7317 = vtanh.f32 %v480_v31  ;;  %v629_v46 = vadd.f32 1.0, %v7296_v30 }
 0x148   : > { %v7300_v25 = vpop.eup %7299  ;;  %7319 = vtanh.f32 %v482_v26  ;;  %v624_v55 = vadd.f32 1.0, %v7298_v44 }
 0x149   : > { %v7302_v39 = vpop.eup %7301  ;;  %7321 = vrcp.f32 %v623_v18  ;;  %v626_v61 = vadd.f32 1.0, %v7300_v25 }
 0x14a   : > { %v7304_v38 = vpop.eup %7303  ;;  %7323 = vrcp.f32 %v618_v33  ;;  %v725_v63 = vmul.f32 0.0, %v7302_v39 }
 0x14b   : > { %v7306_v47 = vpop.eup %7305  ;;  %7325 = vrcp.f32 %v620_v34  ;;  %v720_v32 = vmul.f32 0.0, %v7304_v38  ;;  %v769_v38 = vmul.f32 %v9202_v45, %v9196_v36 }
 0x14c   : > { %v7308_v56 = vpop.eup %7307  ;;  %7327 = vrcp.f32 %v627_v37  ;;  %v722_v26 = vmul.f32 0.0, %v7306_v47  ;;  %v772_v47 = vmul.f32 %v9207_v49, %v9198_v40 }
 0x14d   : > { %v7310_v58 = vpop.eup %7309  ;;  %7329 = vrcp.f32 %v629_v46 }
 0x14e   : > { %v7312_v17 = vpop.eup %7311  ;;  %v726_v62 = vmul.f32 %v7310_v58, %v9219_v29  ;;  %7331 = vtanh.f32 %v9255_v23 }
 0x14f   : > { %v7314_v27 = vpop.eup %7313  ;;  %v728_v21 = vmul.f32 %v7312_v17, %v9224_v35  ;;  %7333 = vtanh.f32 %v9259_v28 }
 0x150   : > { %v7316_v22 = vpop.eup %7315  ;;  %7335 = vrcp.f32 %v624_v55  ;;  %v9265_v31 = vadd.f32 %v726_v62, %v714_v57  ;;  %v735_v50 = vmul.f32 %v7314_v27, %v9229_v41  ;;  %v6995_v27 = vpack.c.bf16 %v772_v47, %v769_v38 }
 0x151   : > { %v7318_v24 = vpop.eup %7317  ;;  %7337 = vrcp.f32 %v626_v61  ;;  %v9268_v42 = vadd.f32 %v728_v21, %v716_v60  ;;  %v737_v29 = vmul.f32 %v7316_v22, %v9233_v52 }
 0x152   : > { %v7320_v20 = vpop.eup %7319  ;;  %v9271_v18 = vadd.f32 %v735_v50, %v723_v19  ;;  %v732_v35 = vmul.f32 %v7318_v24, %v9237_v43  ;;  %7339 = vtanh.f32 %v9265_v31 }
 0x153   : > { %v7322_v30 = vpop.eup %7321  ;;  %v9275_v33 = vadd.f32 %v737_v29, %v725_v63  ;;  %v734_v44 = vmul.f32 %v7320_v20, %v9240_v59  ;;  %7341 = vtanh.f32 %v9268_v42 }
 0x154   : > { %v7324_v41 = vpop.eup %7323  ;;  %v9279_v34 = vadd.f32 %v732_v35, %v720_v32  ;;  %7343 = vtanh.f32 %v9271_v18  ;;  %v5775_v35 = vld [vmem:[%s9016_s6 + $0x1c0] sm:$0xff] }
 0x155   : > { %v7326_v52 = vpop.eup %7325  ;;  %v9282_v25 = vadd.f32 %v734_v44, %v722_v26  ;;  %7345 = vtanh.f32 %v9275_v33 }
 0x156   : > { %v7328_v43 = vpop.eup %7327  ;;  %7347 = vtanh.f32 %v9279_v34 }
 0x157   : > { %v7330_v37 = vpop.eup %7329  ;;  %7349 = vtanh.f32 %v9282_v25 }
 0x158   : > { %v7332_v39 = vpop.eup %7331 }
 0x159   : > { %v7334_v59 = vpop.eup %7333  ;;  %v765_v55 = vmul.f32 %v7332_v39, %v7308_v56  ;;  %v5778_v56 = vld [vmem:[%s9016_s6 + $0x1d8] sm:$0xff] }
 0x15a   : > { %v7336_v46 = vpop.eup %7335  ;;  %v767_v60 = vmul.f32 %v7334_v59, %v7322_v30 }
 0x15b   : > { %v7338_v57 = vpop.eup %7337 }
 0x15c   : > { %v7340_v58 = vpop.eup %7339 }
 0x15d   : > { %v7342_v61 = vpop.eup %7341  ;;  %v762_v17 = vmul.f32 %v7340_v58, %v7324_v41 }
 0x15e   : > { %v7344_v19 = vpop.eup %7343  ;;  %v764_v62 = vmul.f32 %v7342_v61, %v7326_v52  ;;  %v5773_v52 = vld [vmem:[%s9016_s6 + $0x1b0] sm:$0xff] }
 0x15f   : > { %v7346_v63 = vpop.eup %7345  ;;  %v6993_v21 = vpack.c.bf16 %v765_v55, %v762_v17  ;;  %v771_v22 = vmul.f32 %v7344_v19, %v7328_v43  ;;  %v5774_v17 = vld [vmem:[%s9016_s6 + $0x1b8] sm:$0xff] }
 0x160   : > { %v7348_v32 = vpop.eup %7347  ;;  %v6999_v50 = vpack.c.bf16 %v767_v60, %v764_v62  ;;  %v773_v24 = vmul.f32 %v7346_v63, %v7330_v37 }
 0x161   : > { %v7350_v26 = vpop.eup %7349  ;;  %6994 = vmatpush1.bf16.msra.mxu1 %v6993_v21  ;;  %v768_v36 = vmul.f32 %v7348_v32, %v7336_v46 }
 0x162   : > { %7000 = vmatprep.subr.bf16.mxu0 %v6999_v50  ;;  %6996 = vmatprep.subr.bf16.mxu1 %v6995_v27  ;;  %v770_v40 = vmul.f32 %v7350_v26, %v7338_v57  ;;  %v5784_v27 = vld [vmem:[%s9016_s6 + $0x208] sm:$0xff] }
 0x163   : > { %7002 = vmatpush3.bf16.msra.mxu0 %v6999_v50  ;;  %v6997_v45 = vpack.c.bf16 %v771_v22, %v768_v36  ;;  %v5781_v22 = vld [vmem:[%s9016_s6 + $0x1f0] sm:$0xff] }
 0x164   : > { %v7003_v49 = vpack.c.bf16 %v773_v24, %v770_v40  ;;  %v5776_v24 = vld [vmem:[%s9016_s6 + $0x1c8] sm:$0xff] }
 0x165   : > { %6998 = vmatpush1.bf16.msra.mxu1 %v6997_v45 }
 0x166   : > { %7004 = vmatprep.subr.bf16.mxu0 %v7003_v49 }
 0x167   : > { %7006 = vmatpush3.bf16.msra.mxu0 %v7003_v49 }
 0x168   : > { %5815 = vmatmul.mubr.msk.f32.vlgmr.msra.gmra.mrb[0].mxu1 %vm228_vm0, %v9028_v1 }
 0x169   : > { %893 = vmatprep.mubr.f32.mxu1 %v8893_v0 }
 0x16a   : > { %6776 = vmatmul.mubr.msk.f32.vlgmr.msra.gmra.mrb[16].mxu0 %vm228_vm0, %v9033_v2 }
 0x16b   : > { %6778 = vmatprep.mubr.msk.f32.mxu0 %vm228_vm0, %v9038_v3 }
 0x16c   : > { %5816 = vmatmul.mubr.msk.f32.gmra.mrb[2].mxu1 %vm228_vm0, %v9033_v2  ;;  %v5767_v2 = vld [vmem:[%s9016_s6 + $0x180] sm:$0xff] }
 0x16d   : > { %899 = vmatprep.mubr.f32.mxu1 %v8893_v0 }
 0x16e   : > { %6779 = vmatmul.mubr.msk.f32.gmra.mrb[18].mxu0 %vm228_vm0, %v9049_v4 }
 0x16f   : > { %6781 = vmatprep.mubr.msk.f32.mxu0 %vm228_vm0, %v9054_v5 }
 0x170   : > { %5817 = vmatmul.mubr.msk.f32.gmra.mrb[4].mxu1 %vm228_vm0, %v9038_v3  ;;  %v5768_v3 = vld [vmem:[%s9016_s6 + $0x188] sm:$0xff] }
 0x171   : > { %905 = vmatprep.mubr.f32.mxu1 %v8893_v0 }
 0x172   : > { %6782 = vmatmul.mubr.msk.f32.gmra.mrb[20].mxu0 %vm228_vm0, %v9063_v6 }
 0x173   : > { %6784 = vmatprep.mubr.msk.f32.mxu0 %vm228_vm0, %v9068_v7 }
 0x174   : > { %5818 = vmatmul.mubr.msk.f32.gmra.mrb[6].mxu1 %vm228_vm0, %v9049_v4 }
 0x175   : > { %911 = vmatprep.mubr.f32.mxu1 %v8893_v0 }
 0x176   : > { %6785 = vmatmul.mubr.msk.f32.gmra.mrb[22].mxu0 %vm228_vm0, %v9077_v8 }
 0x177   : > { %6787 = vmatprep.mubr.msk.f32.mxu0 %vm228_vm0, %v9082_v9 }
 0x178   : > { %5819 = vmatmul.mubr.msk.f32.gmra.mrb[8].mxu1 %vm228_vm0, %v9054_v5  ;;  %v5772_v5 = vld [vmem:[%s9016_s6 + $0x1a8] sm:$0xff] }
 0x179   : > { %917 = vmatprep.mubr.f32.mxu1 %v8893_v0 }
 0x17a   : > { %6788 = vmatmul.mubr.msk.f32.gmra.mrb[24].mxu0 %vm228_vm0, %v9091_v10 }
 0x17b   : > { %6790 = vmatprep.mubr.msk.f32.mxu0 %vm228_vm0, %v9096_v11 }
 0x17c   : > { %5820 = vmatmul.mubr.msk.f32.gmra.mrb[10].mxu1 %vm228_vm0, %v9063_v6 }
 0x17d   : > { %923 = vmatprep.mubr.f32.mxu1 %v8893_v0 }
 0x17e   : > { %6791 = vmatmul.mubr.msk.f32.gmra.mrb[26].mxu0 %vm228_vm0, %v9105_v12 }
 0x17f   : > { %6793 = vmatprep.mubr.msk.f32.mxu0 %vm228_vm0, %v9110_v13 }
 0x180   : > { %5821 = vmatmul.mubr.msk.f32.gmra.mrb[12].mxu1 %vm228_vm0, %v9068_v7 }
 0x181   : > { %929 = vmatprep.mubr.f32.mxu1 %v8893_v0 }
 0x182   : > { %6794 = vmatmul.mubr.msk.f32.gmra.mrb[28].mxu0 %vm228_vm0, %v9119_v14 }
 0x183   : > { %6796 = vmatprep.mubr.msk.f32.mxu0 %vm228_vm0, %v9124_v15 }
 0x184   : > { %5822 = vmatmul.mubr.msk.f32.gmra.mrb[14].mxu1 %vm228_vm0, %v9077_v8  ;;  %v5769_v8 = vld [vmem:[%s9016_s6 + $0x190] sm:$0xff] }
 0x185   : > { %935 = vmatprep.mubr.f32.mxu1 %v8893_v0 }
 0x186   : > { %6797 = vmatmul.mubr.msk.f32.gmra.mrb[30].mxu0 %vm228_vm0, %v9133_v16 }
 0x187   : > { %1578 = vmatprep.mubr.f32.mxu0 %v8893_v0 }
 0x188   : > { %5823 = vmatmul.mubr.msk.f32.gmra.mrb[16].mxu1 %vm228_vm0, %v9082_v9 }
 0x189   : > { %941 = vmatprep.mubr.f32.mxu1 %v8893_v0 }
 0x18c   : > { %5824 = vmatmul.mubr.msk.f32.gmra.mrb[18].mxu1 %vm228_vm0, %v9091_v10  ;;  %v5770_v10 = vld [vmem:[%s9016_s6 + $0x198] sm:$0xff] }
 0x18d   : > { %947 = vmatprep.mubr.f32.mxu1 %v8893_v0 }
 0x190   : > { %5825 = vmatmul.mubr.msk.f32.gmra.mrb[20].mxu1 %vm228_vm0, %v9096_v11 }
 0x191   : > { %953 = vmatprep.mubr.f32.mxu1 %v8893_v0 }
 0x194   : > { %5826 = vmatmul.mubr.msk.f32.gmra.mrb[22].mxu1 %vm228_vm0, %v9105_v12  ;;  %v5771_v12 = vld [vmem:[%s9016_s6 + $0x1a0] sm:$0xff] }
 0x195   : > { %959 = vmatprep.mubr.f32.mxu1 %v8893_v0 }
 0x198   : > { %5827 = vmatmul.mubr.msk.f32.gmra.mrb[24].mxu1 %vm228_vm0, %v9110_v13 }
 0x199   : > { %965 = vmatprep.mubr.f32.mxu1 %v8893_v0 }
 0x19c   : > { %5828 = vmatmul.mubr.msk.f32.gmra.mrb[26].mxu1 %vm228_vm0, %v9119_v14 }
 0x19d   : > { %971 = vmatprep.mubr.f32.mxu1 %v8893_v0 }
 0x1a0   : > { %5829 = vmatmul.mubr.msk.f32.gmra.mrb[28].mxu1 %vm228_vm0, %v9124_v15 }
 0x1a1   : > { %977 = vmatprep.mubr.f32.mxu1 %v8893_v0 }
 0x1a4   : > { %5830 = vmatmul.mubr.msk.f32.gmra.mrb[30].mxu1 %vm228_vm0, %v9133_v16 }
 0x1a5   : > { %6807 = vmatprep.mubr.msk.f32.mxu1 %vm228_vm0, %v9028_v1 }
 0x23b   : > { %v889_v4 = vpop.f32.mrb[0].mxu1 }
 0x23c   : > { %v1129_v6 = vadd.f32 %v5767_v2, %v889_v4  ;;  %v891_v7 = vpop.f32.mrb[1].mxu1 }
 0x23d   : > { %v1130_v9 = vadd.f32 %v5768_v3, %v891_v7  ;;  %v6777_v11 = vpop.f32.mrb[16].mxu0 }
 0x23e   : > { %v1134_v13 = vadd.f32 %v6777_v11, %v5772_v5  ;;  %v1050_v14 = vpop.f32.mrb[17].mxu0  ;;  %v5847_v1 = vmul.f32 -1.442695, %v1129_v6 }
 0x23f   : > { %v895_v15 = vpop.f32.mrb[2].mxu1  ;;  %v1131_v16 = vadd.f32 %v5769_v8, %v1050_v14  ;;  %v5848_v30 = vmul.f32 -1.442695, %v1130_v9 }
 0x240   : > { %v1132_v29 = vadd.f32 %v5770_v10, %v895_v15  ;;  %v897_v20 = vpop.f32.mrb[3].mxu1  ;;  %v5852_v43 = vmul.f32 -1.442695, %v1134_v13  ;;  %7351 = vpow2.f32 %v5847_v1 }
 0x241   : > { %v1133_v44 = vadd.f32 %v5771_v12, %v897_v20  ;;  %v6780_v41 = vpop.f32.mrb[18].mxu0  ;;  %v5849_v59 = vmul.f32 -1.442695, %v1131_v16  ;;  %7353 = vpow2.f32 %v5848_v30 }
 0x242   : > { %v1140_v37 = vadd.f32 %v6780_v41, %v5778_v56  ;;  %v1060_v39 = vpop.f32.mrb[19].mxu0  ;;  %v5850_v47 = vmul.f32 -1.442695, %v1132_v29  ;;  %7355 = vpow2.f32 %v5852_v43 }
 0x243   : > { %v901_v46 = vpop.f32.mrb[4].mxu1  ;;  %v1137_v38 = vadd.f32 %v5775_v35, %v1060_v39  ;;  %v5851_v58 = vmul.f32 -1.442695, %v1133_v44  ;;  %7357 = vpow2.f32 %v5849_v59  ;;  %v5777_v44 = vld [vmem:[%s9016_s6 + $0x1d0] sm:$0xff] }
 0x244   : > { %v1135_v57 = vadd.f32 %v5773_v52, %v901_v46  ;;  %v903_v55 = vpop.f32.mrb[5].mxu1  ;;  %v5858_v61 = vmul.f32 -1.442695, %v1140_v37  ;;  %7359 = vpow2.f32 %v5850_v47  ;;  %v5790_v37 = vld [vmem:[%s9016_s6 + $0x238] sm:$0xff] }
 0x245   : > { %v6783_v60 = vpop.f32.mrb[20].mxu0  ;;  %v5855_v62 = vmul.f32 -1.442695, %v1137_v38  ;;  %7361 = vpow2.f32 %v5851_v58  ;;  %v1136_v50 = vadd.f32 %v5774_v17, %v903_v55  ;;  %v5787_v38 = vld [vmem:[%s9016_s6 + $0x220] sm:$0xff] }
 0x246   : > { %v1070_v19 = vpop.f32.mrb[21].mxu0  ;;  %v5853_v21 = vmul.f32 -1.442695, %v1135_v57  ;;  %7363 = vpow2.f32 %v5858_v61  ;;  %v1146_v36 = vadd.f32 %v6783_v60, %v5784_v27  ;;  %v5779_v60 = vld [vmem:[%s9016_s6 + $0x1e0] sm:$0xff] }
 0x247   : > { %v907_v63 = vpop.f32.mrb[6].mxu1  ;;  %7365 = vpow2.f32 %v5855_v62  ;;  %v1143_v45 = vadd.f32 %v5781_v22, %v1070_v19  ;;  %v5854_v4 = vmul.f32 -1.442695, %v1136_v50  ;;  %v5780_v62 = vld [vmem:[%s9016_s6 + $0x1e8] sm:$0xff] }
 0x248   : > { %v909_v32 = vpop.f32.mrb[7].mxu1  ;;  %7367 = vpow2.f32 %v5853_v21  ;;  %v1138_v2 = vadd.f32 %v5776_v24, %v907_v63  ;;  %v5864_v7 = vmul.f32 -1.442695, %v1146_v36 }
 0x249   : > { %v6786_v26 = vpop.f32.mrb[22].mxu0  ;;  %v5861_v10 = vmul.f32 -1.442695, %v1143_v45  ;;  %7369 = vpow2.f32 %v5854_v4  ;;  %v1139_v58 = vadd.f32 %v5777_v44, %v909_v32  ;;  %v5793_v44 = vld [vmem:[%s9016_s6 + $0x250] sm:$0xff] }
 0x24a   : > { %v1080_v40 = vpop.f32.mrb[23].mxu0  ;;  %v7352_v6 = vpop.eup %7351  ;;  %v5856_v13 = vmul.f32 -1.442695, %v1138_v2  ;;  %7371 = vpow2.f32 %v5864_v7  ;;  %v1152_v19 = vadd.f32 %v6786_v26, %v5790_v37  ;;  %v5782_v2 = vld [vmem:[%s9016_s6 + $0x1f8] sm:$0xff]  ;;  %v5783_v7 = vld [vmem:[%s9016_s6 + $0x200] sm:$0xff] }
 0x24b   : > { %v913_v49 = vpop.f32.mrb[8].mxu1  ;;  %v7354_v9 = vpop.eup %7353  ;;  %v1285_v16 = vadd.f32 1.0, %v7352_v6  ;;  %7373 = vpow2.f32 %v5861_v10  ;;  %v1149_v21 = vadd.f32 %v5787_v38, %v1080_v40  ;;  %v5857_v36 = vmul.f32 -1.442695, %v1139_v58 }
 0x24c   : > { %v915_v3 = vpop.f32.mrb[9].mxu1  ;;  %v7356_v12 = vpop.eup %7355  ;;  %v1286_v29 = vadd.f32 1.0, %v7354_v9  ;;  %7375 = vpow2.f32 %v5856_v13  ;;  %v1141_v24 = vadd.f32 %v5779_v60, %v913_v49  ;;  %v5870_v6 = vmul.f32 -1.442695, %v1152_v19 }
 0x24d   : > { %v9384_v5 = vpop.f32.mrb[24].mxu0  ;;  %v7358_v15 = vpop.eup %7357  ;;  %v1290_v30 = vadd.f32 1.0, %v7356_v12  ;;  %7377 = vrcp.f32 %v1285_v16  ;;  %v1142_v45 = vadd.f32 %v5780_v62, %v915_v3  ;;  %v5867_v10 = vmul.f32 -1.442695, %v1149_v21  ;;  %v5786_v21 = vld [vmem:[%s9016_s6 + $0x218] sm:$0xff] }
 0x24e   : > { %v9386_v8 = vpop.f32.mrb[25].mxu0  ;;  %v7360_v1 = vpop.eup %7359  ;;  %v1287_v43 = vadd.f32 1.0, %v7358_v15  ;;  %7379 = vrcp.f32 %v1286_v29  ;;  %v5859_v3 = vmul.f32 -1.442695, %v1141_v24  ;;  %v5796_v29 = vld [vmem:[%s9016_s6 + $0x268] sm:$0xff] }
 0x24f   : > { %v9388_v11 = vpop.f32.mrb[10].mxu1  ;;  %v7362_v35 = vpop.eup %7361  ;;  %v1288_v46 = vadd.f32 1.0, %v7360_v1  ;;  %7381 = vrcp.f32 %v1290_v30  ;;  %v5860_v16 = vmul.f32 -1.442695, %v1142_v45  ;;  %v1158_v38 = vadd.f32 %v9384_v5, %v5796_v29 }
 0x250   : > { %v9390_v14 = vpop.f32.mrb[11].mxu1  ;;  %v7364_v52 = vpop.eup %7363  ;;  %v1289_v55 = vadd.f32 1.0, %v7362_v35  ;;  %7383 = vrcp.f32 %v1287_v43  ;;  %v1144_v13 = vadd.f32 %v5782_v2, %v9388_v11  ;;  %v5802_v11 = vld [vmem:[%s9016_s6 + $0x298] sm:$0xff]  ;;  %v1155_v60 = vadd.f32 %v5793_v44, %v9386_v8 }
 0x251   : > { %v9392_v56 = vpop.f32.mrb[26].mxu0  ;;  %v7366_v59 = vpop.eup %7365  ;;  %v1296_v17 = vadd.f32 1.0, %v7364_v52  ;;  %7385 = vrcp.f32 %v1288_v46  ;;  %v1145_v1 = vadd.f32 %v5783_v7, %v9390_v14  ;;  %v5876_v8 = vmul.f32 -1.442695, %v1158_v38 }
 0x252   : > { %v9394_v20 = vpop.f32.mrb[27].mxu0  ;;  %v7368_v57 = vpop.eup %7367  ;;  %v1293_v63 = vadd.f32 1.0, %v7366_v59  ;;  %7387 = vrcp.f32 %v1289_v55  ;;  %v5862_v14 = vmul.f32 -1.442695, %v1144_v13 }
 0x253   : > { %v9397_v41 = vpop.f32.mrb[12].mxu1  ;;  %v1291_v50 = vadd.f32 1.0, %v7368_v57  ;;  %v7370_v26 = vpop.eup %7369  ;;  %7389 = vrcp.f32 %v1296_v17  ;;  %v5785_v57 = vld [vmem:[%s9016_s6 + $0x210] sm:$0xff]  ;;  %v5863_v58 = vmul.f32 -1.442695, %v1145_v1  ;;  %v5799_v17 = vld [vmem:[%s9016_s6 + $0x280] sm:$0xff] }
 0x254   : > { %v9400_v39 = vpop.f32.mrb[13].mxu1  ;;  %v7372_v40 = vpop.eup %7371  ;;  %7391 = vrcp.f32 %v1293_v63  ;;  %v1292_v30 = vadd.f32 1.0, %v7370_v26  ;;  %v1164_v63 = vadd.f32 %v9392_v56, %v5802_v11  ;;  %v1161_v26 = vadd.f32 %v5799_v17, %v9394_v20  ;;  %v5805_v17 = vld [vmem:[%s9016_s6 + $0x2b0] sm:$0xff] }
 0x255   : > { %v9403_v47 = vpop.f32.mrb[28].mxu0  ;;  %v7374_v12 = vpop.eup %7373  ;;  %7393 = vrcp.f32 %v1291_v50  ;;  %v1302_v37 = vadd.f32 1.0, %v7372_v40  ;;  %v5873_v56 = vmul.f32 -1.442695, %v1155_v60  ;;  %v1148_v7 = vadd.f32 %v5786_v21, %v9400_v39 }
 0x256   : > { %v9406_v61 = vpop.f32.mrb[29].mxu0  ;;  %v7376_v15 = vpop.eup %7375  ;;  %7395 = vpow2.f32 %v5857_v36  ;;  %v1299_v62 = vadd.f32 1.0, %v7374_v12  ;;  %v1147_v36 = vadd.f32 %v5785_v57, %v9397_v41  ;;  %v5879_v20 = vmul.f32 -1.442695, %v1161_v26  ;;  %v5808_v57 = vld [vmem:[%s9016_s6 + $0x2c8] sm:$0xff] }
 0x257   : > { %v9409_v27 = vpop.f32.mrb[14].mxu1  ;;  %v9426_v35 = vpop.eup %7377  ;;  %7397 = vpow2.f32 %v5870_v6  ;;  %v1294_v5 = vadd.f32 1.0, %v7376_v15  ;;  %v5866_v1 = vmul.f32 -1.442695, %v1148_v7  ;;  %v5814_v7 = vld [vmem:[%s9016_s6 + $0x2f8] sm:$0xff] }
 0x258   : > { %v9411_v22 = vpop.f32.mrb[15].mxu1  ;;  %v9431_v43 = vpop.eup %7379  ;;  %7399 = vpow2.f32 %v5867_v10  ;;  %v5882_v10 = vmul.f32 -1.442695, %v1164_v63 }
 0x259   : > { %v9413_v32 = vpop.f32.mrb[30].mxu0  ;;  %v9436_v46 = vpop.eup %7381  ;;  %7401 = vpow2.f32 %v5859_v3  ;;  %v5865_v3 = vmul.f32 -1.442695, %v1147_v36  ;;  %v1170_v36 = vadd.f32 %v9403_v47, %v5808_v57 }
 0x25a   : > { %v9416_v4 = vpop.f32.mrb[31].mxu0  ;;  %v9440_v55 = vpop.eup %7383  ;;  %7403 = vpow2.f32 %v5860_v16 }
 0x25b   : > { %v9419_v9 = vpop.f32.mrb[16].mxu1  ;;  %v9444_v19 = vpop.eup %7385  ;;  %7405 = vrcp.f32 %v1292_v30 }
 0x25c   : > { %v9421_v49 = vpop.f32.mrb[17].mxu1  ;;  %v9450_v24 = vpop.eup %7387  ;;  %7407 = vrcp.f32 %v1302_v37 }
 0x25d   : > { %v9455_v2 = vpop.eup %7389  ;;  %7409 = vpow2.f32 %v5862_v14 }
 0x25e   : > { %v9458_v6 = vpop.eup %7391  ;;  %7411 = vpow2.f32 %v5863_v58 }
 0x25f   : > { %v9429_v52 = vpop.f32.mrb[18].mxu1  ;;  %v9461_v40 = vpop.eup %7393  ;;  %7413 = vrcp.f32 %v1299_v62 }
 0x260   : > { %v9434_v59 = vpop.f32.mrb[19].mxu1  ;;  %v7396_v41 = vpop.eup %7395  ;;  %7415 = vrcp.f32 %v1294_v5 }
 0x261   : > { %v7398_v15 = vpop.eup %7397  ;;  %7417 = vpow2.f32 %v5876_v8  ;;  %v1295_v29 = vadd.f32 1.0, %v7396_v41 }
 0x262   : > { %v7400_v16 = vpop.eup %7399  ;;  %7419 = vpow2.f32 %v5873_v56  ;;  %v1308_v37 = vadd.f32 1.0, %v7398_v15  ;;  %v1167_v56 = vadd.f32 %v5805_v17, %v9406_v61 }
 0x263   : > { %v9448_v50 = vpop.f32.mrb[20].mxu1  ;;  %v7402_v39 = vpop.eup %7401  ;;  %7421 = vpow2.f32 %v5882_v10  ;;  %v1305_v38 = vadd.f32 1.0, %v7400_v16  ;;  %v5788_v16 = vld [vmem:[%s9016_s6 + $0x228] sm:$0xff] }
 0x264   : > { %v9453_v45 = vpop.f32.mrb[21].mxu1  ;;  %v7404_v44 = vpop.eup %7403  ;;  %7423 = vpow2.f32 %v5865_v3  ;;  %v1297_v60 = vadd.f32 1.0, %v7402_v39  ;;  %v5811_v3 = vld [vmem:[%s9016_s6 + $0x2e0] sm:$0xff]  ;;  %v5789_v39 = vld [vmem:[%s9016_s6 + $0x230] sm:$0xff]  ;;  %v1150_v17 = vadd.f32 %v5788_v16, %v9409_v27  ;;  %v5792_v27 = vld [vmem:[%s9016_s6 + $0x248] sm:$0xff] }
 0x265   : > { %v9471_v14 = vpop.eup %7405  ;;  %7425 = vpow2.f32 %v5879_v20  ;;  %v1298_v63 = vadd.f32 1.0, %v7404_v44 }
 0x266   : > { %v9474_v58 = vpop.eup %7407  ;;  %7427 = vpow2.f32 %v5866_v1 }
 0x267   : > { %v9463_v12 = vpop.f32.mrb[22].mxu1  ;;  %v7410_v62 = vpop.eup %7409  ;;  %7429 = vrcp.f32 %v1295_v29  ;;  %v1176_v29 = vadd.f32 %v9413_v32, %v5814_v7 }
 0x268   : > { %v9465_v13 = vpop.f32.mrb[23].mxu1  ;;  %v7412_v5 = vpop.eup %7411  ;;  %7431 = vrcp.f32 %v1308_v37  ;;  %v1300_v41 = vadd.f32 1.0, %v7410_v62  ;;  %v1173_v37 = vadd.f32 %v5811_v3, %v9416_v4 }
 0x269   : > { %v7414_v26 = vpop.eup %7413  ;;  %7433 = vrcp.f32 %v1305_v38  ;;  %v1301_v20 = vadd.f32 1.0, %v7412_v5  ;;  %v5791_v38 = vld [vmem:[%s9016_s6 + $0x240] sm:$0xff]  ;;  %v1151_v5 = vadd.f32 %v5789_v39, %v9411_v22 }
 0x26a   : > { %v9484_v10 = vpop.eup %7415  ;;  %7435 = vrcp.f32 %v1297_v60  ;;  %v1153_v4 = vadd.f32 %v5791_v38, %v9419_v9 }
 0x26b   : > { %v9467_v30 = vpop.f32.mrb[24].mxu1  ;;  %v7418_v15 = vpop.eup %7417  ;;  %7437 = vrcp.f32 %v1298_v63  ;;  %v5869_v16 = vmul.f32 -1.442695, %v1151_v5 }
 0x26c   : > { %v9469_v11 = vpop.f32.mrb[25].mxu1  ;;  %v7420_v47 = vpop.eup %7419  ;;  %7439 = vtanh.f32 %v1170_v36  ;;  %v1314_v60 = vadd.f32 1.0, %v7418_v15  ;;  %v5871_v9 = vmul.f32 -1.442695, %v1153_v4 }
 0x26d   : > { %v7422_v61 = vpop.eup %7421  ;;  %7441 = vtanh.f32 %v1167_v56  ;;  %v1311_v63 = vadd.f32 1.0, %v7420_v47  ;;  %v5803_v47 = vld [vmem:[%s9016_s6 + $0x2a0] sm:$0xff] }
 0x26e   : > { %v7424_v57 = vpop.eup %7423  ;;  %7443 = vrcp.f32 %v1300_v41  ;;  %v1320_v7 = vadd.f32 1.0, %v7422_v61 }
 0x26f   : > { %v9477_v21 = vpop.f32.mrb[26].mxu1  ;;  %v7426_v62 = vpop.eup %7425  ;;  %7445 = vrcp.f32 %v1301_v20  ;;  %v1303_v3 = vadd.f32 1.0, %v7424_v57  ;;  %v5868_v20 = vmul.f32 -1.442695, %v1150_v17  ;;  %v5794_v57 = vld [vmem:[%s9016_s6 + $0x258] sm:$0xff]  ;;  %v1407_v17 = vmul.f32 %v7414_v26, %v9268_v42 }
 0x270   : > { %v9480_v8 = vpop.f32.mrb[27].mxu1  ;;  %v7428_v32 = vpop.eup %7427  ;;  %7447 = vtanh.f32 %v1176_v29  ;;  %v1154_v29 = vadd.f32 %v5792_v27, %v9421_v49  ;;  %v1317_v38 = vadd.f32 1.0, %v7426_v62  ;;  %v5795_v49 = vld [vmem:[%s9016_s6 + $0x260] sm:$0xff]  ;;  %v1156_v62 = vadd.f32 %v5794_v57, %v9429_v52  ;;  %v5798_v27 = vld [vmem:[%s9016_s6 + $0x278] sm:$0xff] }
 0x271   : > { %v9503_v41 = vpop.eup %7429  ;;  %7449 = vtanh.f32 %v1173_v37  ;;  %v1410_v37 = vmul.f32 %v9474_v58, %v9259_v28  ;;  %v1304_v26 = vadd.f32 1.0, %v7428_v32  ;;  %v5801_v32 = vld [vmem:[%s9016_s6 + $0x290] sm:$0xff] }
 0x272   : > { %v7432_v15 = vpop.eup %7431  ;;  %7451 = vrcp.f32 %v1314_v60  ;;  %v5872_v58 = vmul.f32 -1.442695, %v1154_v29 }
 0x273   : > { %v9488_v1 = vpop.f32.mrb[28].mxu1  ;;  %v7434_v22 = vpop.eup %7433  ;;  %7453 = vrcp.f32 %v1311_v63  ;;  %v1165_v63 = vadd.f32 %v5803_v47, %v9467_v30  ;;  %v1416_v30 = vmul.f32 %v7432_v15, %v9275_v33 }
 0x274   : > { %v9492_v44 = vpop.f32.mrb[29].mxu1  ;;  %v9507_v39 = vpop.eup %7435  ;;  %7455 = vrcp.f32 %v1320_v7 }
 0x275   : > { %v9510_v61 = vpop.eup %7437  ;;  %7457 = vrcp.f32 %v1303_v3  ;;  %v5797_v3 = vld [vmem:[%s9016_s6 + $0x270] sm:$0xff] }
 0x276   : > { %v7440_v60 = vpop.eup %7439  ;;  %7459 = vpow2.f32 %v5868_v20  ;;  %v1159_v33 = vadd.f32 %v5797_v3, %v9448_v50 }
 0x277   : > { %v9498_v36 = vpop.f32.mrb[30].mxu1  ;;  %v7442_v5 = vpop.eup %7441  ;;  %v1422_v7 = vmul.f32 %v7440_v60, %v9436_v46  ;;  %7461 = vpow2.f32 %v5869_v16  ;;  %v1413_v16 = vmul.f32 %v7434_v22, %v9282_v25  ;;  %v1160_v25 = vadd.f32 %v5798_v27, %v9453_v45 }
 0x278   : > { %v9501_v56 = vpop.f32.mrb[31].mxu1  ;;  %v9519_v4 = vpop.eup %7443  ;;  %v1419_v28 = vmul.f32 %v7442_v5, %v9440_v55  ;;  %7463 = vpow2.f32 %v5871_v9  ;;  %v1157_v55 = vadd.f32 %v5795_v49, %v9434_v59  ;;  %v5800_v9 = vld [vmem:[%s9016_s6 + $0x288] sm:$0xff]  ;;  %v5877_v45 = vmul.f32 -1.442695, %v1159_v33  ;;  %v5809_v33 = vld [vmem:[%s9016_s6 + $0x2d0] sm:$0xff] }
 0x279   : > { %v9524_v42 = vpop.eup %7445  ;;  %7465 = vrcp.f32 %v1317_v38  ;;  %v9527_v46 = vadd.f32 %v1422_v7, %v1410_v37  ;;  %v5874_v38 = vmul.f32 -1.442695, %v1156_v62  ;;  %v1162_v57 = vadd.f32 %v5800_v9, %v9463_v12  ;;  %v5804_v62 = vld [vmem:[%s9016_s6 + $0x2a8] sm:$0xff]  ;;  %v5807_v9 = vld [vmem:[%s9016_s6 + $0x2c0] sm:$0xff] }
 0x27a   : > { %v7448_v20 = vpop.eup %7447  ;;  %v9531_v47 = vadd.f32 %v1419_v28, %v1407_v17  ;;  %7467 = vtanh.f32 %v1165_v63  ;;  %v5875_v50 = vmul.f32 -1.442695, %v1157_v55  ;;  %v5878_v5 = vmul.f32 -1.442695, %v1160_v25 }
 0x27b   : > { %v7450_v52 = vpop.eup %7449  ;;  %7469 = vtanh.f32 %v9527_v46  ;;  %v1428_v29 = vmul.f32 %v7448_v20, %v9455_v2  ;;  %v1163_v2 = vadd.f32 %v5801_v32, %v9465_v13  ;;  %v5880_v12 = vmul.f32 -1.442695, %v1162_v57 }
 0x27c   : > { %v7452_v15 = vpop.eup %7451  ;;  %7471 = vtanh.f32 %v9531_v47  ;;  %v1425_v37 = vmul.f32 %v7450_v52, %v9458_v6  ;;  %v1405_v20 = vmul.f32 %v9507_v39, %v9265_v31  ;;  %v5810_v39 = vld [vmem:[%s9016_s6 + $0x2d8] sm:$0xff] }
 0x27d   : > { %v7454_v22 = vpop.eup %7453  ;;  %7473 = vrcp.f32 %v1304_v26  ;;  %v9542_v59 = vadd.f32 %v1428_v29, %v1416_v30  ;;  %v5881_v28 = vmul.f32 -1.442695, %v1163_v2  ;;  %v5806_v26 = vld [vmem:[%s9016_s6 + $0x2b8] sm:$0xff]  ;;  %v1166_v29 = vadd.f32 %v5804_v62, %v9469_v11 }
 0x27e   : > { %v7456_v60 = vpop.eup %7455  ;;  %v9545_v17 = vadd.f32 %v1425_v37, %v1413_v16  ;;  %7475 = vpow2.f32 %v5872_v58  ;;  %v1168_v31 = vadd.f32 %v5806_v26, %v9477_v21  ;;  %v1171_v11 = vadd.f32 %v5809_v33, %v9488_v1 }
 0x27f   : > { %v9548_v63 = vpop.eup %7457  ;;  %7477 = vtanh.f32 %v9542_v59  ;;  %v1406_v33 = vmul.f32 %v9510_v61, %v9147_v53  ;;  %v9603_v53 = vld [vmem:[%s11260_s1 + $0x18] sm:$0xff] }
 0x280   : > { %v7460_v6 = vpop.eup %7459  ;;  %7479 = vtanh.f32 %v9545_v17 }
 0x281   : > { %v7462_v7 = vpop.eup %7461  ;;  %7481 = vpow2.f32 %v5874_v38  ;;  %v1306_v13 = vadd.f32 1.0, %v7460_v6 }
 0x282   : > { %v7464_v49 = vpop.eup %7463  ;;  %7483 = vpow2.f32 %v5875_v50  ;;  %v1307_v30 = vadd.f32 1.0, %v7462_v7  ;;  %v5812_v50 = vld [vmem:[%s9016_s6 + $0x2e8] sm:$0xff] }
 0x283   : > { %v7466_v58 = vpop.eup %7465  ;;  %7485 = vpow2.f32 %v5877_v45  ;;  %v1309_v16 = vadd.f32 1.0, %v7464_v49  ;;  %v1174_v21 = vadd.f32 %v5812_v50, %v9498_v36 }
 0x284   : > { %v7468_v3 = vpop.eup %7467  ;;  %7487 = vpow2.f32 %v5878_v5  ;;  %v1172_v5 = vadd.f32 %v5810_v39, %v9492_v44  ;;  %v1408_v39 = vmul.f32 %v9519_v4, %v9255_v23 }
 0x285   : > { %v7470_v27 = vpop.eup %7469  ;;  %7489 = vpow2.f32 %v5880_v12  ;;  %v1417_v55 = vmul.f32 %v7468_v3, %v9426_v35  ;;  %v1169_v35 = vadd.f32 %v5807_v9, %v9480_v8 }
 0x286   : > { %v7472_v52 = vpop.eup %7471  ;;  %7491 = vpow2.f32 %v5881_v28  ;;  %v1458_v32 = vmul.f32 %v7470_v27, %v7452_v15  ;;  %v5813_v15 = vld [vmem:[%s9016_s6 + $0x2f0] sm:$0xff] }
 0x287   : > { %v9560_v37 = vpop.eup %7473  ;;  %7493 = vrcp.f32 %v1306_v13  ;;  %v9562_v25 = vadd.f32 %v1417_v55, %v1405_v20  ;;  %v1455_v38 = vmul.f32 %v7472_v52, %v7454_v22  ;;  %v1175_v8 = vadd.f32 %v5813_v15, %v9501_v56  ;;  %v9578_v55 = vld [vmem:[%s11260_s1 + $0x8] sm:$0xff]  ;;  %v9585_v52 = vld [vmem:[%s11260_s1 + $0x10] sm:$0xff] }
 0x288   : > { %v7476_v57 = vpop.eup %7475  ;;  %7495 = vrcp.f32 %v1307_v30  ;;  %v1412_v4 = vmul.f32 %v9560_v37, %v9174_v48 }
 0x289   : > { %v7478_v2 = vpop.eup %7477  ;;  %7497 = vrcp.f32 %v1309_v16  ;;  %v7015_v45 = vpack.c.bf16 %v1458_v32, %v1455_v38  ;;  %v1310_v1 = vadd.f32 1.0, %v7476_v57 }
 0x28a   : > { %v7480_v6 = vpop.eup %7479  ;;  %7499 = vtanh.f32 %v1166_v29  ;;  %v1464_v7 = vmul.f32 %v7478_v2, %v7456_v60 }
 0x28b   : > { %v7482_v12 = vpop.eup %7481  ;;  %7501 = vtanh.f32 %v1168_v31  ;;  %7016 = vmatprep.subr.bf16.mxu1 %v7015_v45  ;;  %v1461_v22 = vmul.f32 %v7480_v6, %v7466_v58 }
 0x28c   : > { %v7484_v49 = vpop.eup %7483  ;;  %7503 = vtanh.f32 %v1169_v35  ;;  %7018 = vmatpush3.bf16.msra.mxu1 %v7015_v45  ;;  %v1312_v3 = vadd.f32 1.0, %v7482_v12  ;;  %v1409_v35 = vmul.f32 %v9524_v42, %v9149_v54 }
 0x28d   : > { %v7486_v28 = vpop.eup %7485  ;;  %7505 = vtanh.f32 %v1171_v11  ;;  %v7019_v13 = vpack.c.bf16 %v1464_v7, %v1461_v22  ;;  %v1313_v60 = vadd.f32 1.0, %v7484_v49  ;;  %v9668_v49 = vld [vmem:[%s11260_s1 + $0x40] sm:$0xff] }
 0x28e   : > { %v7488_v62 = vpop.eup %7487  ;;  %7507 = vtanh.f32 %v1172_v5  ;;  %v1315_v26 = vadd.f32 1.0, %v7486_v28 }
 0x28f   : > { %v7490_v44 = vpop.eup %7489  ;;  %7509 = vtanh.f32 %v1174_v21  ;;  %7020 = vmatprep.subr.bf16.mxu1 %v7019_v13  ;;  %v1316_v58 = vadd.f32 1.0, %v7488_v62  ;;  %v9661_v21 = vld [vmem:[%s11260_s1 + $0x38] sm:$0xff] }
 0x290   : > { %v7492_v30 = vpop.eup %7491  ;;  %7511 = vtanh.f32 %v1175_v8  ;;  %7022 = vmatpush3.bf16.msra.mxu1 %v7019_v13  ;;  %v1318_v56 = vadd.f32 1.0, %v7490_v44  ;;  %v9675_v13 = vld [vmem:[%s11260_s1 + $0x48] sm:$0xff] }
 0x291   : > { %v7494_v36 = vpop.eup %7493  ;;  %7513 = vrcp.f32 %v1310_v1  ;;  %v1319_v16 = vadd.f32 1.0, %v7492_v30 }
 0x292   : > { %v7496_v27 = vpop.eup %7495  ;;  %7515 = vrcp.f32 %v1312_v3  ;;  %v9682_v3 = vld [vmem:[%s11260_s1 + $0x50] sm:$0xff] }
 0x293   : > { %v9573_v20 = vpop.eup %7497  ;;  %7517 = vrcp.f32 %v1313_v60  ;;  %6808 = vmatmul.mubr.msk.f32.vlgmr.msra.gmra.mrb[32].mxu1 %vm228_vm0, %v9578_v55  ;;  %v1415_v6 = vmul.f32 %v7496_v27, %v9178_v51  ;;  %v9649_v51 = vld [vmem:[%s11260_s1 + $0x30] sm:$0xff] }
 0x294   : > { %v7500_v9 = vpop.eup %7499  ;;  %7519 = vrcp.f32 %v1315_v26  ;;  %6810 = vmatprep.mubr.msk.f32.mxu1 %vm228_vm0, %v9585_v52 }
 0x295   : > { %v7502_v29 = vpop.eup %7501  ;;  %7521 = vrcp.f32 %v1316_v58  ;;  %v1418_v32 = vmul.f32 %v7500_v9, %v9431_v43  ;;  %v1411_v43 = vmul.f32 %v9548_v63, %v9279_v34 }
 0x296   : > { %v7504_v31 = vpop.eup %7503  ;;  %7523 = vrcp.f32 %v1318_v56  ;;  %v1420_v38 = vmul.f32 %v7502_v29, %v9444_v19 }
 0x297   : > { %v7506_v57 = vpop.eup %7505  ;;  %7525 = vrcp.f32 %v1319_v16  ;;  %v9597_v50 = vadd.f32 %v1418_v32, %v1406_v33  ;;  %v1421_v2 = vmul.f32 %v7504_v31, %v9450_v24  ;;  %6811 = vmatmul.mubr.msk.f32.gmra.mrb[34].mxu1 %vm228_vm0, %v9603_v53  ;;  %v9616_v24 = vld [vmem:[%s11260_s1 + $0x20] sm:$0xff]  ;;  %v9690_v16 = vld [vmem:[%s11260_s1 + $0x58] sm:$0xff] }
 0x298   : > { %v7508_v23 = vpop.eup %7507  ;;  %7527 = vtanh.f32 %v9562_v25  ;;  %v9610_v54 = vadd.f32 %v1420_v38, %v1408_v39  ;;  %v1423_v19 = vmul.f32 %v7506_v57, %v9461_v40  ;;  %6813 = vmatprep.mubr.msk.f32.mxu1 %vm228_vm0, %v9616_v24  ;;  %v1414_v40 = vmul.f32 %v7494_v36, %v9271_v18  ;;  %v9704_v57 = vld [vmem:[%s11260_s1 + $0x68] sm:$0xff] }
 0x299   : > { %v7510_v61 = vpop.eup %7509  ;;  %7529 = vtanh.f32 %v9597_v50  ;;  %v9623_v34 = vadd.f32 %v1421_v2, %v1409_v35  ;;  %v1424_v42 = vmul.f32 %v7508_v23, %v9471_v14  ;;  %v9639_v14 = vld [vmem:[%s11260_s1 + $0x28] sm:$0xff]  ;;  %v9711_v23 = vld [vmem:[%s11260_s1 + $0x70] sm:$0xff] }
 0x29a   : > { %v7512_v63 = vpop.eup %7511  ;;  %7531 = vtanh.f32 %v9610_v54  ;;  %v9628_v11 = vadd.f32 %v1423_v19, %v1411_v43  ;;  %v1426_v45 = vmul.f32 %v7510_v61, %v9484_v10  ;;  %v9718_v43 = vld [vmem:[%s11260_s1 + $0x78] sm:$0xff]  ;;  %v8710_v19 = vld [vmem:[%s11260_s1] sm:$0xff]  ;;  %v5888_v61 = vld [vmem:[%s9016_s6 + $0x328] sm:$0xff] }
 0x29b   : > { %v7514_v15 = vpop.eup %7513  ;;  %7533 = vtanh.f32 %v9623_v34  ;;  %v9633_v48 = vadd.f32 %v1424_v42, %v1412_v4  ;;  %v1427_v37 = vmul.f32 %v7512_v63, %v9503_v41  ;;  %6814 = vmatmul.mubr.msk.f32.gmra.mrb[36].mxu1 %vm228_vm0, %v9639_v14  ;;  %v5885_v4 = vld [vmem:[%s9016_s6 + $0x310] sm:$0xff] }
 0x29c   : > { %v7516_v18 = vpop.eup %7515  ;;  %7535 = vtanh.f32 %v9628_v11  ;;  %v9644_v10 = vadd.f32 %v1426_v45, %v1414_v40  ;;  %6816 = vmatprep.mubr.msk.f32.mxu1 %vm228_vm0, %v9649_v51 }
 0x29d   : > { %v7518_v41 = vpop.eup %7517  ;;  %7537 = vtanh.f32 %v9633_v48  ;;  %v9654_v5 = vadd.f32 %v1427_v37, %v1415_v6  ;;  %v5891_v37 = vld [vmem:[%s9016_s6 + $0x340] sm:$0xff] }
 0x29e   : > { %v7520_v7 = vpop.eup %7519  ;;  %7539 = vtanh.f32 %v9644_v10 }
 0x29f   : > { %v7522_v12 = vpop.eup %7521  ;;  %7541 = vtanh.f32 %v9654_v5  ;;  %6817 = vmatmul.mubr.msk.f32.gmra.mrb[38].mxu1 %vm228_vm0, %v9661_v21 }
 0x2a0   : > { %v7524_v22 = vpop.eup %7523  ;;  %6819 = vmatprep.mubr.msk.f32.mxu1 %vm228_vm0, %v9668_v49 }
 0x2a1   : > { %v7526_v8 = vpop.eup %7525 }
 0x2a2   : > { %v7528_v28 = vpop.eup %7527 }
 0x2a3   : > { %v7530_v1 = vpop.eup %7529  ;;  %6820 = vmatmul.mubr.msk.f32.gmra.mrb[40].mxu1 %vm228_vm0, %v9675_v13  ;;  %v1453_v60 = vmul.f32 %v7528_v28, %v9573_v20  ;;  %v9697_v20 = vld [vmem:[%s11260_s1 + $0x60] sm:$0xff] }
 0x2a4   : > { %v7532_v62 = vpop.eup %7531  ;;  %6822 = vmatprep.mubr.msk.f32.mxu1 %vm228_vm0, %v9682_v3  ;;  %v1454_v36 = vmul.f32 %v7530_v1, %v7514_v15  ;;  %v5894_v15 = vld [vmem:[%s9016_s6 + $0x358] sm:$0xff]  ;;  %v5897_v1 = vld [vmem:[%s9016_s6 + $0x370] sm:$0xff] }
 0x2a5   : > { %v7534_v44 = vpop.eup %7533  ;;  %v1456_v30 = vmul.f32 %v7532_v62, %v7516_v18 }
 0x2a6   : > { %v7536_v26 = vpop.eup %7535  ;;  %v1457_v58 = vmul.f32 %v7534_v44, %v7518_v41 }
 0x2a7   : > { %v7538_v27 = vpop.eup %7537  ;;  %v7009_v56 = vpack.c.bf16 %v1456_v30, %v1453_v60  ;;  %6823 = vmatmul.mubr.msk.f32.gmra.mrb[42].mxu1 %vm228_vm0, %v9690_v16  ;;  %v1459_v32 = vmul.f32 %v7536_v26, %v7520_v7 }
 0x2a8   : > { %v7540_v9 = vpop.eup %7539  ;;  %v7007_v29 = vpack.c.bf16 %v1457_v58, %v1454_v36  ;;  %6825 = vmatprep.mubr.msk.f32.mxu1 %vm228_vm0, %v9697_v20  ;;  %v1460_v39 = vmul.f32 %v7538_v27, %v7522_v12  ;;  %v5906_v36 = vld [vmem:[%s9016_s6 + $0x3b8] sm:$0xff]  ;;  %v5903_v27 = vld [vmem:[%s9016_s6 + $0x3a0] sm:$0xff] }
 0x2a9   : > { %v7542_v33 = vpop.eup %7541  ;;  %v1462_v31 = vmul.f32 %v7540_v9, %v7524_v22 }
 0x2aa   : > { %7008 = vmatprep.subr.bf16.mxu0 %v7007_v29  ;;  %v1463_v38 = vmul.f32 %v7542_v33, %v7526_v8  ;;  %v5900_v8 = vld [vmem:[%s9016_s6 + $0x388] sm:$0xff] }
 0x2ab   : > { %7010 = vmatpush1.bf16.msra.mxu0 %v7009_v56  ;;  %6826 = vmatmul.mubr.msk.f32.gmra.mrb[44].mxu1 %vm228_vm0, %v9704_v57  ;;  %v7013_v35 = vpack.c.bf16 %v1462_v31, %v1459_v32  ;;  %v5912_v31 = vld [vmem:[%s9016_s6 + $0x3e8] sm:$0xff] }
 0x2ac   : > { %v7011_v2 = vpack.c.bf16 %v1463_v38, %v1460_v39  ;;  %6828 = vmatprep.mubr.msk.f32.mxu1 %vm228_vm0, %v9711_v23 }
 0x2ae   : > { %7012 = vmatprep.subr.bf16.mxu0 %v7011_v2 }
 0x2af   : > { %7014 = vmatpush1.bf16.msra.mxu0 %v7013_v35  ;;  %6829 = vmatmul.mubr.msk.f32.gmra.mrb[46].mxu1 %vm228_vm0, %v9718_v43  ;;  %v5909_v35 = vld [vmem:[%s9016_s6 + $0x3d0] sm:$0xff] }
 0x2b0   : > { %2269 = vmatprep.mubr.f32.mxu1 %v8893_v0 }
 0x2b2   : > { %5931 = vmatmul.mubr.msk.f32.vlgmr.msra.gmra.mrb[32].mxu0 %vm228_vm0, %v8710_v19 }
 0x2b3   : > { %1584 = vmatprep.mubr.f32.mxu0 %v8893_v0 }
 0x2b6   : > { %5932 = vmatmul.mubr.msk.f32.gmra.mrb[34].mxu0 %vm228_vm0, %v9578_v55 }
 0x2b7   : > { %1590 = vmatprep.mubr.f32.mxu0 %v8893_v0 }
 0x2ba   : > { %5933 = vmatmul.mubr.msk.f32.gmra.mrb[36].mxu0 %vm228_vm0, %v9585_v52 }
 0x2bb   : > { %1596 = vmatprep.mubr.f32.mxu0 %v8893_v0 }
 0x2be   : > { %5934 = vmatmul.mubr.msk.f32.gmra.mrb[38].mxu0 %vm228_vm0, %v9603_v53 }
 0x2bf   : > { %1602 = vmatprep.mubr.f32.mxu0 %v8893_v0 }
 0x2c2   : > { %5935 = vmatmul.mubr.msk.f32.gmra.mrb[40].mxu0 %vm228_vm0, %v9616_v24 }
 0x2c3   : > { %1608 = vmatprep.mubr.f32.mxu0 %v8893_v0 }
 0x2c6   : > { %5936 = vmatmul.mubr.msk.f32.gmra.mrb[42].mxu0 %vm228_vm0, %v9639_v14 }
 0x2c7   : > { %1614 = vmatprep.mubr.f32.mxu0 %v8893_v0 }
 0x2ca   : > { %5937 = vmatmul.mubr.msk.f32.gmra.mrb[44].mxu0 %vm228_vm0, %v9649_v51 }
 0x2cb   : > { %1620 = vmatprep.mubr.f32.mxu0 %v8893_v0 }
 0x2ce   : > { %5938 = vmatmul.mubr.msk.f32.gmra.mrb[46].mxu0 %vm228_vm0, %v9661_v21 }
 0x2cf   : > { %1626 = vmatprep.mubr.f32.mxu0 %v8893_v0 }
 0x2d2   : > { %5939 = vmatmul.mubr.msk.f32.gmra.mrb[48].mxu0 %vm228_vm0, %v9668_v49 }
 0x2d3   : > { %1632 = vmatprep.mubr.f32.mxu0 %v8893_v0 }
 0x2d6   : > { %5940 = vmatmul.mubr.msk.f32.gmra.mrb[50].mxu0 %vm228_vm0, %v9675_v13 }
 0x2d7   : > { %1638 = vmatprep.mubr.f32.mxu0 %v8893_v0 }
 0x2da   : > { %5941 = vmatmul.mubr.msk.f32.gmra.mrb[52].mxu0 %vm228_vm0, %v9682_v3 }
 0x2db   : > { %1644 = vmatprep.mubr.f32.mxu0 %v8893_v0 }
 0x2de   : > { %5942 = vmatmul.mubr.msk.f32.gmra.mrb[54].mxu0 %vm228_vm0, %v9690_v16 }
 0x2df   : > { %1650 = vmatprep.mubr.f32.mxu0 %v8893_v0 }
 0x2e2   : > { %5943 = vmatmul.mubr.msk.f32.gmra.mrb[56].mxu0 %vm228_vm0, %v9697_v20 }
 0x2e3   : > { %1656 = vmatprep.mubr.f32.mxu0 %v8893_v0 }
 0x2e6   : > { %5944 = vmatmul.mubr.msk.f32.gmra.mrb[58].mxu0 %vm228_vm0, %v9704_v57 }
 0x2e7   : > { %1662 = vmatprep.mubr.f32.mxu0 %v8893_v0 }
 0x2ea   : > { %5945 = vmatmul.mubr.msk.f32.gmra.mrb[60].mxu0 %vm228_vm0, %v9711_v23 }
 0x2eb   : > { %1668 = vmatprep.mubr.f32.mxu0 %v8893_v0 }
 0x2ee   : > { %5946 = vmatmul.mubr.msk.f32.gmra.mrb[62].mxu0 %vm228_vm0, %v9718_v43 }
 0x2ef   : > { %6839 = vmatprep.mubr.msk.f32.mxu0 %vm228_vm0, %v8710_v19 }
 0x366   : > { %v6809_v42 = vpop.f32.mrb[32].mxu1 }
 0x367   : > { %v1825_v63 = vadd.f32 %v6809_v42, %v5888_v61  ;;  %v1741_v40 = vpop.f32.mrb[33].mxu1 }
 0x368   : > { %v1822_v45 = vadd.f32 %v5885_v4, %v1741_v40 }
 0x369   : > { %v5968_v6 = vmul.f32 -1.442695, %v1825_v63 }
 0x36a   : > { %v5965_v18 = vmul.f32 -1.442695, %v1822_v45  ;;  %v6812_v41 = vpop.f32.mrb[34].mxu1 }
 0x36b   : > { %7543 = vpow2.f32 %v5968_v6  ;;  %v1831_v7 = vadd.f32 %v6812_v41, %v5894_v15  ;;  %v1751_v12 = vpop.f32.mrb[35].mxu1  ;;  %v5918_v15 = vld [vmem:[%s9016_s6 + $0x418] sm:$0xff] }
 0x36c   : > { %7545 = vpow2.f32 %v5965_v18  ;;  %v1828_v22 = vadd.f32 %v5891_v37, %v1751_v12  ;;  %v5915_v18 = vld [vmem:[%s9016_s6 + $0x400] sm:$0xff] }
 0x36d   : > { %v5974_v28 = vmul.f32 -1.442695, %v1831_v7 }
 0x36e   : > { %v5971_v62 = vmul.f32 -1.442695, %v1828_v22  ;;  %v6815_v44 = vpop.f32.mrb[36].mxu1 }
 0x36f   : > { %7547 = vpow2.f32 %v5974_v28  ;;  %v1837_v60 = vadd.f32 %v6815_v44, %v5900_v8  ;;  %v1761_v30 = vpop.f32.mrb[37].mxu1  ;;  %v5924_v44 = vld [vmem:[%s9016_s6 + $0x448] sm:$0xff] }
 0x370   : > { %7549 = vpow2.f32 %v5971_v62  ;;  %v1834_v26 = vadd.f32 %v5897_v1, %v1761_v30 }
 0x371   : > { %v5980_v58 = vmul.f32 -1.442695, %v1837_v60 }
 0x372   : > { %v5977_v56 = vmul.f32 -1.442695, %v1834_v26  ;;  %v6818_v9 = vpop.f32.mrb[38].mxu1 }
 0x373   : > { %7551 = vpow2.f32 %v5980_v58  ;;  %v1843_v29 = vadd.f32 %v6818_v9, %v5906_v36  ;;  %v1771_v33 = vpop.f32.mrb[39].mxu1 }
 0x374   : > { %7553 = vpow2.f32 %v5977_v56  ;;  %v1840_v32 = vadd.f32 %v5903_v27, %v1771_v33  ;;  %v5921_v56 = vld [vmem:[%s9016_s6 + $0x430] sm:$0xff] }
 0x375   : > { %v7544_v39 = vpop.eup %7543  ;;  %v5986_v38 = vmul.f32 -1.442695, %v1843_v29 }
 0x376   : > { %v7546_v2 = vpop.eup %7545  ;;  %v1981_v19 = vadd.f32 1.0, %v7544_v39  ;;  %v5983_v61 = vmul.f32 -1.442695, %v1840_v32  ;;  %v6821_v4 = vpop.f32.mrb[40].mxu1  ;;  %v5930_v32 = vld [vmem:[%s9016_s6 + $0x478] sm:$0xff] }
 0x377   : > { %v1978_v42 = vadd.f32 1.0, %v7546_v2  ;;  %7555 = vpow2.f32 %v5986_v38  ;;  %v1849_v63 = vadd.f32 %v6821_v4, %v5912_v31  ;;  %v1781_v40 = vpop.f32.mrb[41].mxu1 }
 0x378   : > { %7557 = vrcp.f32 %v1981_v19  ;;  %v1846_v45 = vadd.f32 %v5909_v35, %v1781_v40  ;;  %v5927_v19 = vld [vmem:[%s9016_s6 + $0x460] sm:$0xff] }
 0x379   : > { %v7548_v6 = vpop.eup %7547  ;;  %7559 = vrcp.f32 %v1978_v42  ;;  %v5992_v37 = vmul.f32 -1.442695, %v1849_v63  ;;  %v5883_v40 = vld [vmem:[%s9016_s6 + $0x300] sm:$0xff] }
 0x37a   : > { %v7550_v41 = vpop.eup %7549  ;;  %v1987_v7 = vadd.f32 1.0, %v7548_v6  ;;  %7561 = vpow2.f32 %v5983_v61  ;;  %v5989_v12 = vmul.f32 -1.442695, %v1846_v45  ;;  %v6824_v22 = vpop.f32.mrb[42].mxu1 }
 0x37b   : > { %v1984_v8 = vadd.f32 1.0, %v7550_v41  ;;  %7563 = vpow2.f32 %v5992_v37  ;;  %v1855_v28 = vadd.f32 %v6824_v22, %v5918_v15  ;;  %v1791_v1 = vpop.f32.mrb[43].mxu1 }
 0x37c   : > { %7565 = vrcp.f32 %v1987_v7  ;;  %v1852_v62 = vadd.f32 %v5915_v18, %v1791_v1 }
 0x37d   : > { %v7552_v60 = vpop.eup %7551  ;;  %7567 = vrcp.f32 %v1984_v8  ;;  %v5998_v30 = vmul.f32 -1.442695, %v1855_v28  ;;  %v5884_v8 = vld [vmem:[%s9016_s6 + $0x308] sm:$0xff] }
 0x37e   : > { %v7554_v26 = vpop.eup %7553  ;;  %v1993_v36 = vadd.f32 1.0, %v7552_v60  ;;  %7569 = vpow2.f32 %v5989_v12  ;;  %v5995_v58 = vmul.f32 -1.442695, %v1852_v62  ;;  %v6827_v27 = vpop.f32.mrb[44].mxu1 }
 0x37f   : > { %v1990_v9 = vadd.f32 1.0, %v7554_v26  ;;  %7571 = vpow2.f32 %v5998_v30  ;;  %v1861_v29 = vadd.f32 %v6827_v27, %v5924_v44  ;;  %v1801_v33 = vpop.f32.mrb[45].mxu1 }
 0x380   : > { %7573 = vrcp.f32 %v1993_v36  ;;  %v1858_v39 = vadd.f32 %v5921_v56, %v1801_v33 }
 0x381   : > { %v7556_v31 = vpop.eup %7555  ;;  %7575 = vrcp.f32 %v1990_v9  ;;  %v5886_v9 = vld [vmem:[%s9016_s6 + $0x318] sm:$0xff] }
 0x382   : > { %v7558_v38 = vpop.eup %7557  ;;  %v1999_v35 = vadd.f32 1.0, %v7556_v31  ;;  %7577 = vpow2.f32 %v5995_v58  ;;  %v6830_v2 = vpop.f32.mrb[46].mxu1 }
 0x383   : > { %v7560_v61 = vpop.eup %7559  ;;  %7579 = vtanh.f32 %v1861_v29  ;;  %v1867_v4 = vadd.f32 %v6830_v2, %v5930_v32  ;;  %v1811_v42 = vpop.f32.mrb[47].mxu1  ;;  %v5887_v2 = vld [vmem:[%s9016_s6 + $0x320] sm:$0xff] }
 0x384   : > { %v7562_v63 = vpop.eup %7561  ;;  %7581 = vrcp.f32 %v1999_v35  ;;  %v1864_v6 = vadd.f32 %v5927_v19, %v1811_v42 }
 0x385   : > { %v7564_v45 = vpop.eup %7563  ;;  %v1996_v15 = vadd.f32 1.0, %v7562_v63  ;;  %7583 = vtanh.f32 %v1858_v39  ;;  %v1580_v37 = vpop.f32.mrb[32].mxu0 }
 0x386   : > { %v7566_v18 = vpop.eup %7565  ;;  %7585 = vtanh.f32 %v1867_v4  ;;  %v1582_v41 = vpop.f32.mrb[33].mxu0  ;;  %v1820_v12 = vadd.f32 %v5883_v40, %v1580_v37  ;;  %v2005_v44 = vadd.f32 1.0, %v7564_v45  ;;  %v5889_v40 = vld [vmem:[%s9016_s6 + $0x330] sm:$0xff]  ;;  %v5890_v37 = vld [vmem:[%s9016_s6 + $0x338] sm:$0xff] }
 0x387   : > { %v7568_v7 = vpop.eup %7567  ;;  %7587 = vrcp.f32 %v1996_v15  ;;  %v1821_v36 = vadd.f32 %v5884_v8, %v1582_v41 }
 0x388   : > { %v7570_v22 = vpop.eup %7569  ;;  %7589 = vtanh.f32 %v1864_v6  ;;  %v5963_v26 = vmul.f32 -1.442695, %v1820_v12 }
 0x389   : > { %v7572_v28 = vpop.eup %7571  ;;  %v1586_v1 = vpop.f32.mrb[34].mxu0  ;;  %v2002_v56 = vadd.f32 1.0, %v7570_v22  ;;  %7591 = vrcp.f32 %v2005_v44  ;;  %v5892_v22 = vld [vmem:[%s9016_s6 + $0x348] sm:$0xff] }
 0x38a   : > { %v7574_v62 = vpop.eup %7573  ;;  %v1588_v60 = vpop.f32.mrb[35].mxu0  ;;  %v2011_v33 = vadd.f32 1.0, %v7572_v28  ;;  %7593 = vpow2.f32 %v5963_v26  ;;  %v1823_v63 = vadd.f32 %v5886_v9, %v1586_v1  ;;  %v5895_v9 = vld [vmem:[%s9016_s6 + $0x360] sm:$0xff] }
 0x38b   : > { %v7576_v30 = vpop.eup %7575  ;;  %v2101_v27 = vmul.f32 %v7574_v62, %v9527_v46  ;;  %v5964_v46 = vmul.f32 -1.442695, %v1821_v36  ;;  %7595 = vrcp.f32 %v2002_v56  ;;  %v1824_v12 = vadd.f32 %v5887_v2, %v1588_v60  ;;  %v5893_v36 = vld [vmem:[%s9016_s6 + $0x350] sm:$0xff] }
 0x38c   : > { %v7578_v58 = vpop.eup %7577  ;;  %v2098_v39 = vmul.f32 %v7576_v30, %v9531_v47  ;;  %7597 = vrcp.f32 %v2011_v33  ;;  %v5966_v30 = vmul.f32 -1.442695, %v1823_v63  ;;  %v5899_v63 = vld [vmem:[%s9016_s6 + $0x380] sm:$0xff] }
 0x38d   : > { %v7580_v29 = vpop.eup %7579  ;;  %v1592_v32 = vpop.f32.mrb[36].mxu0  ;;  %v2008_v47 = vadd.f32 1.0, %v7578_v58 }
 0x38e   : > { %v7582_v31 = vpop.eup %7581  ;;  %v2113_v35 = vmul.f32 %v7580_v29, %v7558_v38  ;;  %v1594_v19 = vpop.f32.mrb[37].mxu0  ;;  %v1826_v1 = vadd.f32 %v5889_v40, %v1592_v32 }
 0x38f   : > { %v7584_v4 = vpop.eup %7583  ;;  %v2107_v42 = vmul.f32 %v7582_v31, %v9542_v59  ;;  %v1827_v26 = vadd.f32 %v5890_v37, %v1594_v19  ;;  %v5896_v31 = vld [vmem:[%s9016_s6 + $0x368] sm:$0xff]  ;;  %v5898_v19 = vld [vmem:[%s9016_s6 + $0x378] sm:$0xff] }
 0x390   : > { %v7586_v45 = vpop.eup %7585  ;;  %v9797_v15 = vadd.f32 %v2113_v35, %v2101_v27  ;;  %v2110_v6 = vmul.f32 %v7584_v4, %v7560_v61  ;;  %v5969_v56 = vmul.f32 -1.442695, %v1826_v1 }
 0x391   : > { %v7588_v41 = vpop.eup %7587  ;;  %v2119_v38 = vmul.f32 %v7586_v45, %v7566_v18  ;;  %v1598_v8 = vpop.f32.mrb[38].mxu0  ;;  %v5970_v33 = vmul.f32 -1.442695, %v1827_v26 }
 0x392   : > { %v2104_v59 = vmul.f32 %v7588_v41, %v9545_v17  ;;  %7599 = vtanh.f32 %v9797_v15  ;;  %v9803_v28 = vadd.f32 %v2110_v6, %v2098_v39  ;;  %v1600_v62 = vpop.f32.mrb[39].mxu0  ;;  %v7590_v44 = vpop.eup %7589  ;;  %v1829_v60 = vadd.f32 %v5892_v22, %v1598_v8 }
 0x393   : > { %v9805_v61 = vadd.f32 %v2119_v38, %v2107_v42  ;;  %7601 = vpow2.f32 %v5964_v46  ;;  %v2116_v18 = vmul.f32 %v7590_v44, %v7568_v7  ;;  %v5967_v17 = vmul.f32 -1.442695, %v1824_v12  ;;  %v7592_v39 = vpop.eup %7591 }
 0x394   : > { %7603 = vtanh.f32 %v9803_v28  ;;  %v1830_v32 = vadd.f32 %v5893_v36, %v1600_v62  ;;  %v5972_v7 = vmul.f32 -1.442695, %v1829_v60  ;;  %v7594_v35 = vpop.eup %7593 }
 0x395   : > { %7605 = vtanh.f32 %v9805_v61  ;;  %v1604_v58 = vpop.f32.mrb[40].mxu0  ;;  %v9810_v27 = vadd.f32 %v2116_v18, %v2104_v59  ;;  %v7596_v42 = vpop.eup %7595  ;;  %v5902_v59 = vld [vmem:[%s9016_s6 + $0x398] sm:$0xff]  ;;  %v1976_v18 = vadd.f32 1.0, %v7594_v35 }
 0x396   : > { %7607 = vrcp.f32 %v2008_v47  ;;  %v1606_v29 = vpop.f32.mrb[41].mxu0  ;;  %v1832_v2 = vadd.f32 %v5895_v9, %v1604_v58  ;;  %v7598_v45 = vpop.eup %7597  ;;  %v5973_v6 = vmul.f32 -1.442695, %v1830_v32  ;;  %v5901_v47 = vld [vmem:[%s9016_s6 + $0x390] sm:$0xff] }
 0x397   : > { %7609 = vpow2.f32 %v5966_v30  ;;  %v1833_v46 = vadd.f32 %v5896_v31, %v1606_v29 }
 0x398   : > { %7611 = vtanh.f32 %v9810_v27  ;;  %v5975_v12 = vmul.f32 -1.442695, %v1832_v2 }
 0x399   : > { %7613 = vpow2.f32 %v5967_v17  ;;  %v1610_v4 = vpop.f32.mrb[42].mxu0  ;;  %v5976_v44 = vmul.f32 -1.442695, %v1833_v46 }
 0x39a   : > { %7615 = vpow2.f32 %v5969_v56  ;;  %v1612_v40 = vpop.f32.mrb[43].mxu0  ;;  %v1835_v41 = vadd.f32 %v5898_v19, %v1610_v4  ;;  %v5904_v4 = vld [vmem:[%s9016_s6 + $0x3a8] sm:$0xff] }
 0x39b   : > { %7617 = vpow2.f32 %v5970_v33  ;;  %v1836_v22 = vadd.f32 %v5899_v63, %v1612_v40  ;;  %v5905_v40 = vld [vmem:[%s9016_s6 + $0x3b0] sm:$0xff] }
 0x39c   : > { %v7600_v37 = vpop.eup %7599  ;;  %7619 = vpow2.f32 %v5972_v7  ;;  %v5978_v58 = vmul.f32 -1.442695, %v1835_v41 }
 0x39d   : > { %v7602_v38 = vpop.eup %7601  ;;  %v1616_v8 = vpop.f32.mrb[44].mxu0  ;;  %v2149_v1 = vmul.f32 %v7600_v37, %v7592_v39  ;;  %7621 = vpow2.f32 %v5973_v6  ;;  %v5979_v29 = vmul.f32 -1.442695, %v1836_v22  ;;  %v5907_v22 = vld [vmem:[%s9016_s6 + $0x3c0] sm:$0xff] }
 0x39e   : > { %v7604_v62 = vpop.eup %7603  ;;  %v1618_v30 = vpop.f32.mrb[45].mxu0  ;;  %v1838_v60 = vadd.f32 %v5901_v47, %v1616_v8  ;;  %7623 = vpow2.f32 %v5975_v12  ;;  %v1977_v7 = vadd.f32 1.0, %v7602_v38 }
 0x39f   : > { %v7606_v26 = vpop.eup %7605  ;;  %v2146_v36 = vmul.f32 %v7604_v62, %v7596_v42  ;;  %v1839_v56 = vadd.f32 %v5902_v59, %v1618_v30  ;;  %7625 = vpow2.f32 %v5976_v44 }
 0x3a0   : > { %v7608_v17 = vpop.eup %7607  ;;  %v2155_v31 = vmul.f32 %v7606_v26, %v7598_v45  ;;  %7627 = vrcp.f32 %v1976_v18  ;;  %v5981_v35 = vmul.f32 -1.442695, %v1838_v60  ;;  %v5908_v18 = vld [vmem:[%s9016_s6 + $0x3c8] sm:$0xff] }
 0x3a1   : > { %v7610_v9 = vpop.eup %7609  ;;  %v7031_v33 = vpack.c.bf16 %v2149_v1, %v2146_v36  ;;  %v1622_v32 = vpop.f32.mrb[46].mxu0  ;;  %7629 = vpow2.f32 %v5978_v58  ;;  %v5982_v63 = vmul.f32 -1.442695, %v1839_v56 }
 0x3a2   : > { %v7612_v39 = vpop.eup %7611  ;;  %v1624_v2 = vpop.f32.mrb[47].mxu0  ;;  %v1979_v37 = vadd.f32 1.0, %v7610_v9  ;;  %7631 = vpow2.f32 %v5979_v29  ;;  %v1841_v12 = vadd.f32 %v5904_v4, %v1622_v32  ;;  %v5910_v32 = vld [vmem:[%s9016_s6 + $0x3d8] sm:$0xff] }
 0x3a3   : > { %v7614_v19 = vpop.eup %7613  ;;  %7032 = vmatprep.subr.bf16.mxu0 %v7031_v33  ;;  %v2152_v42 = vmul.f32 %v7612_v39, %v7608_v17  ;;  %7633 = vrcp.f32 %v1977_v7  ;;  %v1842_v1 = vadd.f32 %v5905_v40, %v1624_v2  ;;  %v5913_v40 = vld [vmem:[%s9016_s6 + $0x3f0] sm:$0xff] }
 0x3a4   : > { %v7616_v46 = vpop.eup %7615  ;;  %7034 = vmatpush3.bf16.msra.mxu0 %v7031_v33  ;;  %v1980_v38 = vadd.f32 1.0, %v7614_v19  ;;  %7635 = vpow2.f32 %v5981_v35  ;;  %v5984_v36 = vmul.f32 -1.442695, %v1841_v12  ;;  %v5914_v12 = vld [vmem:[%s9016_s6 + $0x3f8] sm:$0xff] }
 0x3a5   : > { %v7618_v6 = vpop.eup %7617  ;;  %v7035_v45 = vpack.c.bf16 %v2155_v31, %v2152_v42  ;;  %v1628_v41 = vpop.f32.mrb[48].mxu0  ;;  %v1982_v59 = vadd.f32 1.0, %v7616_v46  ;;  %7637 = vpow2.f32 %v5982_v63  ;;  %v5985_v56 = vmul.f32 -1.442695, %v1842_v1  ;;  %v5911_v46 = vld [vmem:[%s9016_s6 + $0x3e0] sm:$0xff] }
 0x3a6   : > { %v7620_v47 = vpop.eup %7619  ;;  %v1630_v8 = vpop.f32.mrb[49].mxu0  ;;  %v1983_v62 = vadd.f32 1.0, %v7618_v6  ;;  %7639 = vrcp.f32 %v1979_v37  ;;  %v1844_v26 = vadd.f32 %v5907_v22, %v1628_v41 }
 0x3a7   : > { %7036 = vmatprep.subr.bf16.mxu0 %v7035_v45  ;;  %v7622_v44 = vpop.eup %7621  ;;  %v1985_v30 = vadd.f32 1.0, %v7620_v47  ;;  %7641 = vrcp.f32 %v1980_v38  ;;  %v1845_v33 = vadd.f32 %v5908_v18, %v1630_v8  ;;  %v5919_v18 = vld [vmem:[%s9016_s6 + $0x420] sm:$0xff] }
 0x3a8   : > { %7038 = vmatpush3.bf16.msra.mxu0 %v7035_v45  ;;  %v7624_v58 = vpop.eup %7623  ;;  %7643 = vrcp.f32 %v1982_v59  ;;  %v1986_v29 = vadd.f32 1.0, %v7622_v44  ;;  %v5987_v39 = vmul.f32 -1.442695, %v1844_v26  ;;  %v5916_v26 = vld [vmem:[%s9016_s6 + $0x408] sm:$0xff] }
 0x3a9   : > { %v1634_v60 = vpop.f32.mrb[50].mxu0  ;;  %v7626_v9 = vpop.eup %7625  ;;  %7645 = vrcp.f32 %v1983_v62  ;;  %v1988_v19 = vadd.f32 1.0, %v7624_v58  ;;  %v5988_v63 = vmul.f32 -1.442695, %v1845_v33 }
 0x3aa   : > { %v1636_v17 = vpop.f32.mrb[51].mxu0  ;;  %v9828_v31 = vpop.eup %7627  ;;  %7647 = vrcp.f32 %v1985_v30  ;;  %v1989_v4 = vadd.f32 1.0, %v7626_v9  ;;  %v1847_v42 = vadd.f32 %v5910_v32, %v1634_v60  ;;  %v5922_v32 = vld [vmem:[%s9016_s6 + $0x438] sm:$0xff] }
 0x3ab   : > { %6840 = vmatmul.mubr.msk.f32.vlgmr.msra.gmra.mrb[64].mxu0 %vm228_vm0, %v9578_v55  ;;  %v7630_v2 = vpop.eup %7629  ;;  %7649 = vpow2.f32 %v5984_v36  ;;  %v1848_v38 = vadd.f32 %v5911_v46, %v1636_v17  ;;  %v5925_v46 = vld [vmem:[%s9016_s6 + $0x450] sm:$0xff] }
 0x3ac   : > { %6842 = vmatprep.mubr.msk.f32.mxu0 %vm228_vm0, %v9585_v52  ;;  %v7632_v55 = vpop.eup %7631  ;;  %7651 = vpow2.f32 %v5985_v56  ;;  %v1991_v37 = vadd.f32 1.0, %v7630_v2  ;;  %v5990_v8 = vmul.f32 -1.442695, %v1847_v42  ;;  %v5917_v42 = vld [vmem:[%s9016_s6 + $0x410] sm:$0xff] }
 0x3ad   : > { %v1640_v7 = vpop.f32.mrb[52].mxu0  ;;  %v9833_v52 = vpop.eup %7633  ;;  %7653 = vrcp.f32 %v1986_v29  ;;  %v1992_v47 = vadd.f32 1.0, %v7632_v55 }
 0x3ae   : > { %v1642_v35 = vpop.f32.mrb[53].mxu0  ;;  %v7636_v6 = vpop.eup %7635  ;;  %7655 = vpow2.f32 %v5987_v39  ;;  %v1850_v59 = vadd.f32 %v5913_v40, %v1640_v7 }
 0x3af   : > { %6843 = vmatmul.mubr.msk.f32.gmra.mrb[66].mxu0 %vm228_vm0, %v9603_v53  ;;  %v7638_v41 = vpop.eup %7637  ;;  %7657 = vrcp.f32 %v1988_v19  ;;  %v1994_v1 = vadd.f32 1.0, %v7636_v6  ;;  %v1851_v30 = vadd.f32 %v5914_v12, %v1642_v35 }
 0x3b0   : > { %6845 = vmatprep.mubr.msk.f32.mxu0 %vm228_vm0, %v9616_v24  ;;  %v9839_v22 = vpop.eup %7639  ;;  %7659 = vrcp.f32 %v1989_v4  ;;  %v1995_v44 = vadd.f32 1.0, %v7638_v41  ;;  %v5993_v56 = vmul.f32 -1.442695, %v1850_v59  ;;  %v5926_v41 = vld [vmem:[%s9016_s6 + $0x458] sm:$0xff] }
 0x3b1   : > { %v1646_v45 = vpop.f32.mrb[54].mxu0  ;;  %v9843_v24 = vpop.eup %7641  ;;  %7661 = vpow2.f32 %v5988_v63  ;;  %v5994_v7 = vmul.f32 -1.442695, %v1851_v30 }
 0x3b2   : > { %v1648_v53 = vpop.f32.mrb[55].mxu0  ;;  %v9847_v62 = vpop.eup %7643  ;;  %7663 = vrcp.f32 %v1991_v37  ;;  %v1853_v29 = vadd.f32 %v5916_v26, %v1646_v45 }
 0x3b3   : > { %6846 = vmatmul.mubr.msk.f32.gmra.mrb[68].mxu0 %vm228_vm0, %v9639_v14  ;;  %v9851_v36 = vpop.eup %7645  ;;  %7665 = vrcp.f32 %v1992_v47  ;;  %v5991_v14 = vmul.f32 -1.442695, %v1848_v38  ;;  %v1854_v38 = vadd.f32 %v5917_v42, %v1648_v53 }
 0x3b4   : > { %6848 = vmatprep.mubr.msk.f32.mxu0 %vm228_vm0, %v9649_v51  ;;  %v9853_v58 = vpop.eup %7647  ;;  %7667 = vpow2.f32 %v5990_v8  ;;  %v5920_v51 = vld [vmem:[%s9016_s6 + $0x428] sm:$0xff]  ;;  %v5996_v40 = vmul.f32 -1.442695, %v1853_v29 }
 0x3b5   : > { %v1652_v60 = vpop.f32.mrb[56].mxu0  ;;  %v7650_v9 = vpop.eup %7649  ;;  %7669 = vrcp.f32 %v1994_v1 }
 0x3b6   : > { %v1654_v17 = vpop.f32.mrb[57].mxu0  ;;  %v1856_v33 = vadd.f32 %v5919_v18, %v1652_v60  ;;  %v7652_v39 = vpop.eup %7651  ;;  %7671 = vrcp.f32 %v1995_v44  ;;  %v1997_v59 = vadd.f32 1.0, %v7650_v9  ;;  %v5928_v44 = vld [vmem:[%s9016_s6 + $0x468] sm:$0xff]  ;;  %v5997_v60 = vmul.f32 -1.442695, %v1854_v38 }
 0x3b7   : > { %6849 = vmatmul.mubr.msk.f32.gmra.mrb[70].mxu0 %vm228_vm0, %v9661_v21  ;;  %v9861_v19 = vpop.eup %7653  ;;  %7673 = vpow2.f32 %v5991_v14  ;;  %v1857_v35 = vadd.f32 %v5920_v51, %v1654_v17  ;;  %v5923_v21 = vld [vmem:[%s9016_s6 + $0x440] sm:$0xff]  ;;  %v1998_v26 = vadd.f32 1.0, %v7652_v39  ;;  %v5929_v14 = vld [vmem:[%s9016_s6 + $0x470] sm:$0xff] }
 0x3b8   : > { %6851 = vmatprep.mubr.msk.f32.mxu0 %vm228_vm0, %v9668_v49  ;;  %v7656_v4 = vpop.eup %7655  ;;  %7675 = vpow2.f32 %v5993_v56 }
 0x3b9   : > { %v1658_v2 = vpop.f32.mrb[58].mxu0  ;;  %v7658_v63 = vpop.eup %7657  ;;  %7677 = vtanh.f32 %v1856_v33  ;;  %v2000_v9 = vadd.f32 1.0, %v7656_v4 }
 0x3ba   : > { %v1660_v55 = vpop.f32.mrb[59].mxu0  ;;  %v1859_v49 = vadd.f32 %v5922_v32, %v1658_v2  ;;  %v7660_v6 = vpop.eup %7659  ;;  %7679 = vpow2.f32 %v5994_v7  ;;  %v2096_v7 = vmul.f32 %v7658_v63, %v9562_v25 }
 0x3bb   : > { %6852 = vmatmul.mubr.msk.f32.gmra.mrb[72].mxu0 %vm228_vm0, %v9675_v13  ;;  %v1860_v37 = vadd.f32 %v5923_v21, %v1660_v55  ;;  %v7662_v47 = vpop.eup %7661  ;;  %7681 = vtanh.f32 %v1857_v35  ;;  %v2097_v21 = vmul.f32 %v7660_v6, %v9597_v50 }
 0x3bc   : > { %6854 = vmatprep.mubr.msk.f32.mxu0 %vm228_vm0, %v9682_v3  ;;  %v7664_v13 = vpop.eup %7663  ;;  %7683 = vtanh.f32 %v1859_v49  ;;  %v2001_v32 = vadd.f32 1.0, %v7662_v47 }
 0x3bd   : > { %v1664_v45 = vpop.f32.mrb[60].mxu0  ;;  %v7666_v1 = vpop.eup %7665  ;;  %7685 = vpow2.f32 %v5996_v40  ;;  %v2099_v42 = vmul.f32 %v7664_v13, %v9610_v54 }
 0x3be   : > { %v1862_v12 = vadd.f32 %v5925_v46, %v1664_v45  ;;  %v1666_v8 = vpop.f32.mrb[61].mxu0  ;;  %v7668_v30 = vpop.eup %7667  ;;  %7687 = vtanh.f32 %v1860_v37  ;;  %v2100_v40 = vmul.f32 %v7666_v1, %v9623_v34 }
 0x3bf   : > { %6855 = vmatmul.mubr.msk.f32.gmra.mrb[74].mxu0 %vm228_vm0, %v9690_v16  ;;  %v1863_v3 = vadd.f32 %v5926_v41, %v1666_v8  ;;  %v7670_v18 = vpop.eup %7669  ;;  %v2003_v2 = vadd.f32 1.0, %v7668_v30 }
 0x3c0   : > { %6857 = vmatprep.mubr.msk.f32.mxu0 %vm228_vm0, %v9697_v20  ;;  %7689 = vtanh.f32 %v1862_v12  ;;  %v7672_v56 = vpop.eup %7671  ;;  %v2102_v54 = vmul.f32 %v7670_v18, %v9628_v11 }
 0x3c1   : > { %v1670_v53 = vpop.f32.mrb[62].mxu0  ;;  %7691 = vrcp.f32 %v1997_v59  ;;  %v7674_v51 = vpop.eup %7673  ;;  %v2103_v41 = vmul.f32 %v7672_v56, %v9633_v48 }
 0x3c2   : > { %v1672_v17 = vpop.f32.mrb[63].mxu0  ;;  %v1865_v16 = vadd.f32 %v5928_v44, %v1670_v53  ;;  %7693 = vtanh.f32 %v1863_v3  ;;  %v7676_v20 = vpop.eup %7675 }
 0x3c3   : > { %6858 = vmatmul.mubr.msk.f32.gmra.mrb[76].mxu0 %vm228_vm0, %v9704_v57  ;;  %7695 = vrcp.f32 %v1998_v26  ;;  %v1866_v29 = vadd.f32 %v5929_v14, %v1672_v17  ;;  %v7678_v33 = vpop.eup %7677  ;;  %v2006_v37 = vadd.f32 1.0, %v7676_v20 }
 0x3c4   : > { %6860 = vmatprep.mubr.msk.f32.mxu0 %vm228_vm0, %v9711_v23  ;;  %7697 = vpow2.f32 %v5997_v60  ;;  %v7680_v39 = vpop.eup %7679  ;;  %v2108_v35 = vmul.f32 %v7678_v33, %v9828_v31 }
 0x3c5   : > { %7699 = vtanh.f32 %v1865_v16  ;;  %v7682_v57 = vpop.eup %7681  ;;  %v2007_v47 = vadd.f32 1.0, %v7680_v39 }
 0x3c6   : > { %7701 = vrcp.f32 %v2000_v9  ;;  %v7684_v23 = vpop.eup %7683  ;;  %v9887_v55 = vadd.f32 %v2108_v35, %v2096_v7  ;;  %v2109_v4 = vmul.f32 %v7682_v57, %v9833_v52 }
 0x3c7   : > { %6861 = vmatmul.mubr.msk.f32.gmra.mrb[78].mxu0 %vm228_vm0, %v9718_v43  ;;  %7703 = vtanh.f32 %v1866_v29  ;;  %v7686_v25 = vpop.eup %7685  ;;  %v2111_v31 = vmul.f32 %v7684_v23, %v9839_v22  ;;  %v2004_v43 = vadd.f32 1.0, %v7674_v51 }
 0x3c8   : > { %2960 = vmatprep.mubr.f32.mxu0 %v8893_v0  ;;  %7705 = vrcp.f32 %v2001_v32  ;;  %v7688_v49 = vpop.eup %7687  ;;  %v9892_v46 = vadd.f32 %v2109_v4, %v2097_v21  ;;  %v2009_v12 = vadd.f32 1.0, %v7686_v25 }
 0x3c9   : > { %7707 = vrcp.f32 %v2003_v2  ;;  %v9896_v50 = vadd.f32 %v2111_v31, %v2099_v42  ;;  %v2112_v52 = vmul.f32 %v7688_v49, %v9843_v24  ;;  %v8711_v49 = vld [vmem:[%s11260_s1] sm:$0xff] }
 0x3ca   : > { %v7690_v63 = vpop.eup %7689  ;;  %7709 = vtanh.f32 %v9887_v55 }
 0x3cb   : > { %v7692_v6 = vpop.eup %7691  ;;  %7711 = vtanh.f32 %v9892_v46  ;;  %v2114_v22 = vmul.f32 %v7690_v63, %v9847_v62  ;;  %v9904_v34 = vadd.f32 %v2112_v52, %v2100_v40  ;;  %v9940_v63 = vld [vmem:[%s11260_s1 + $0x10] sm:$0xff]  ;;  %v9948_v40 = vld [vmem:[%s11260_s1 + $0x18] sm:$0xff]  ;;  %v9956_v52 = vld [vmem:[%s11260_s1 + $0x20] sm:$0xff] }
 0x3cc   : > { %v7694_v45 = vpop.eup %7693  ;;  %7713 = vtanh.f32 %v9896_v50  ;;  %v2105_v59 = vmul.f32 %v7692_v6, %v9644_v10  ;;  %v9964_v6 = vld [vmem:[%s11260_s1 + $0x28] sm:$0xff] }
 0x3cd   : > { %v7696_v38 = vpop.eup %7695  ;;  %7715 = vrcp.f32 %v2004_v43  ;;  %v9906_v24 = vadd.f32 %v2114_v22, %v2102_v54  ;;  %v2115_v11 = vmul.f32 %v7694_v45, %v9851_v36  ;;  %v9932_v43 = vld [vmem:[%s11260_s1 + $0x8] sm:$0xff]  ;;  %v9972_v54 = vld [vmem:[%s11260_s1 + $0x30] sm:$0xff]  ;;  %v9988_v22 = vld [vmem:[%s11260_s1 + $0x40] sm:$0xff] }
 0x3ce   : > { %v7698_v8 = vpop.eup %7697  ;;  %7717 = vtanh.f32 %v9904_v34  ;;  %v2106_v26 = vmul.f32 %v7696_v38, %v9654_v5  ;;  %v9996_v45 = vld [vmem:[%s11260_s1 + $0x48] sm:$0xff]  ;;  %v10020_v38 = vld [vmem:[%s11260_s1 + $0x60] sm:$0xff] }
 0x3cf   : > { %v7700_v13 = vpop.eup %7699  ;;  %7719 = vrcp.f32 %v2006_v37  ;;  %v9910_v62 = vadd.f32 %v2115_v11, %v2103_v41  ;;  %v2010_v44 = vadd.f32 1.0, %v7698_v8  ;;  %v9980_v37 = vld [vmem:[%s11260_s1 + $0x38] sm:$0xff]  ;;  %v10004_v41 = vld [vmem:[%s11260_s1 + $0x50] sm:$0xff] }
 0x3d0   : > { %v7702_v48 = vpop.eup %7701  ;;  %7721 = vrcp.f32 %v2007_v47  ;;  %v2117_v1 = vmul.f32 %v7700_v13, %v9853_v58  ;;  %v10012_v47 = vld [vmem:[%s11260_s1 + $0x58] sm:$0xff]  ;;  %v10036_v11 = vld [vmem:[%s11260_s1 + $0x70] sm:$0xff]  ;;  %v6004_v13 = vld [vmem:[%s9016_s6 + $0x4a8] sm:$0xff] }
 0x3d1   : > { %v7704_v3 = vpop.eup %7703  ;;  %7723 = vrcp.f32 %v2009_v12  ;;  %v10028_v12 = vld [vmem:[%s11260_s1 + $0x68] sm:$0xff]  ;;  %v10044_v8 = vld [vmem:[%s11260_s1 + $0x78] sm:$0xff] }
 0x3d2   : > { %v7706_v30 = vpop.eup %7705  ;;  %7725 = vtanh.f32 %v9906_v24  ;;  %v9916_v36 = vadd.f32 %v2117_v1, %v2105_v59  ;;  %v2118_v53 = vmul.f32 %v7704_v3, %v9861_v19 }
 0x3d3   : > { %v7708_v18 = vpop.eup %7707  ;;  %7727 = vtanh.f32 %v9910_v62 }
 0x3d4   : > { %v7710_v60 = vpop.eup %7709  ;;  %7729 = vtanh.f32 %v9916_v36  ;;  %v9921_v10 = vadd.f32 %v2118_v53, %v2106_v26  ;;  %v6007_v53 = vld [vmem:[%s9016_s6 + $0x4c0] sm:$0xff] }
 0x3d5   : > { %v7712_v58 = vpop.eup %7711  ;;  %7731 = vrcp.f32 %v2010_v44  ;;  %v2144_v17 = vmul.f32 %v7710_v60, %v7702_v48  ;;  %v6001_v48 = vld [vmem:[%s9016_s6 + $0x490] sm:$0xff] }
 0x3d6   : > { %v7714_v14 = vpop.eup %7713  ;;  %7733 = vtanh.f32 %v9921_v10  ;;  %v2145_v9 = vmul.f32 %v7712_v58, %v7706_v30  ;;  %v6010_v30 = vld [vmem:[%s9016_s6 + $0x4d8] sm:$0xff] }
 0x3d7   : > { %v7716_v5 = vpop.eup %7715  ;;  %v2147_v56 = vmul.f32 %v7714_v14, %v7708_v18 }
 0x3d8   : > { %v7718_v16 = vpop.eup %7717 }
 0x3d9   : > { %v7720_v51 = vpop.eup %7719  ;;  %v2148_v19 = vmul.f32 %v7718_v16, %v7716_v5  ;;  %v7025_v20 = vpack.c.bf16 %v2147_v56, %v2144_v17  ;;  %v6016_v17 = vld [vmem:[%s9016_s6 + $0x508] sm:$0xff]  ;;  %v6013_v16 = vld [vmem:[%s9016_s6 + $0x4f0] sm:$0xff] }
 0x3da   : > { %v7722_v29 = vpop.eup %7721 }
 0x3db   : > { %v7724_v33 = vpop.eup %7723  ;;  %v7023_v32 = vpack.c.bf16 %v2148_v19, %v2145_v9 }
 0x3dc   : > { %v7726_v39 = vpop.eup %7725 }
 0x3dd   : > { %v7728_v7 = vpop.eup %7727  ;;  %7024 = vmatprep.subr.bf16.mxu1 %v7023_v32  ;;  %v2150_v57 = vmul.f32 %v7726_v39, %v7720_v51  ;;  %v6019_v39 = vld [vmem:[%s9016_s6 + $0x520] sm:$0xff] }
 0x3de   : > { %v7730_v2 = vpop.eup %7729  ;;  %7026 = vmatpush1.bf16.msra.mxu1 %v7025_v20  ;;  %v2151_v4 = vmul.f32 %v7728_v7, %v7722_v29 }
 0x3df   : > { %v7732_v35 = vpop.eup %7731  ;;  %v2153_v23 = vmul.f32 %v7730_v2, %v7724_v33  ;;  %v6022_v33 = vld [vmem:[%s9016_s6 + $0x538] sm:$0xff] }
 0x3e0   : > { %v7734_v21 = vpop.eup %7733 }
 0x3e1   : > { %v2154_v25 = vmul.f32 %v7734_v21, %v7732_v35  ;;  %v7029_v42 = vpack.c.bf16 %v2153_v23, %v2150_v57  ;;  %v6028_v21 = vld [vmem:[%s9016_s6 + $0x568] sm:$0xff] }
 0x3e3   : > { %v7027_v31 = vpack.c.bf16 %v2154_v25, %v2151_v4 }
 0x3e5   : > { %7028 = vmatprep.subr.bf16.mxu1 %v7027_v31 }
 0x3e6   : > { %7030 = vmatpush1.bf16.msra.mxu1 %v7029_v42  ;;  %v6025_v42 = vld [vmem:[%s9016_s6 + $0x550] sm:$0xff] }
 0x3e9   : > { %6047 = vmatmul.mubr.msk.f32.vlgmr.msra.gmra.mrb[48].mxu1 %vm228_vm0, %v8711_v49 }
 0x3ea   : > { %2275 = vmatprep.mubr.f32.mxu1 %v8893_v0 }
 0x3ed   : > { %6048 = vmatmul.mubr.msk.f32.gmra.mrb[50].mxu1 %vm228_vm0, %v9932_v43 }
 0x3ee   : > { %2281 = vmatprep.mubr.f32.mxu1 %v8893_v0 }
 0x3f1   : > { %6049 = vmatmul.mubr.msk.f32.gmra.mrb[52].mxu1 %vm228_vm0, %v9940_v63 }
 0x3f2   : > { %2287 = vmatprep.mubr.f32.mxu1 %v8893_v0 }
 0x3f5   : > { %6050 = vmatmul.mubr.msk.f32.gmra.mrb[54].mxu1 %vm228_vm0, %v9948_v40 }
 0x3f6   : > { %2293 = vmatprep.mubr.f32.mxu1 %v8893_v0 }
 0x3f9   : > { %6051 = vmatmul.mubr.msk.f32.gmra.mrb[56].mxu1 %vm228_vm0, %v9956_v52 }
 0x3fa   : > { %2299 = vmatprep.mubr.f32.mxu1 %v8893_v0 }
 0x3fd   : > { %6052 = vmatmul.mubr.msk.f32.gmra.mrb[58].mxu1 %vm228_vm0, %v9964_v6 }
 0x3fe   : > { %2305 = vmatprep.mubr.f32.mxu1 %v8893_v0 }
 0x401   : > { %6053 = vmatmul.mubr.msk.f32.gmra.mrb[60].mxu1 %vm228_vm0, %v9972_v54 }
 0x402   : > { %2311 = vmatprep.mubr.f32.mxu1 %v8893_v0 }
 0x405   : > { %6054 = vmatmul.mubr.msk.f32.gmra.mrb[62].mxu1 %vm228_vm0, %v9980_v37 }
 0x406   : > { %2317 = vmatprep.mubr.f32.mxu1 %v8893_v0 }
 0x409   : > { %6055 = vmatmul.mubr.msk.f32.gmra.mrb[64].mxu1 %vm228_vm0, %v9988_v22 }
 0x40a   : > { %2323 = vmatprep.mubr.f32.mxu1 %v8893_v0 }
 0x40d   : > { %6056 = vmatmul.mubr.msk.f32.gmra.mrb[66].mxu1 %vm228_vm0, %v9996_v45 }
 0x40e   : > { %2329 = vmatprep.mubr.f32.mxu1 %v8893_v0 }
 0x411   : > { %6057 = vmatmul.mubr.msk.f32.gmra.mrb[68].mxu1 %vm228_vm0, %v10004_v41 }
 0x412   : > { %2335 = vmatprep.mubr.f32.mxu1 %v8893_v0 }
 0x415   : > { %6058 = vmatmul.mubr.msk.f32.gmra.mrb[70].mxu1 %vm228_vm0, %v10012_v47 }
 0x416   : > { %2341 = vmatprep.mubr.f32.mxu1 %v8893_v0 }
 0x419   : > { %6059 = vmatmul.mubr.msk.f32.gmra.mrb[72].mxu1 %vm228_vm0, %v10020_v38 }
 0x41a   : > { %2347 = vmatprep.mubr.f32.mxu1 %v8893_v0 }
 0x41d   : > { %6060 = vmatmul.mubr.msk.f32.gmra.mrb[74].mxu1 %vm228_vm0, %v10028_v12 }
 0x41e   : > { %2353 = vmatprep.mubr.f32.mxu1 %v8893_v0 }
 0x421   : > { %6061 = vmatmul.mubr.msk.f32.gmra.mrb[76].mxu1 %vm228_vm0, %v10036_v11 }
 0x422   : > { %2359 = vmatprep.mubr.f32.mxu1 %v8893_v0 }
 0x425   : > { %6062 = vmatmul.mubr.msk.f32.gmra.mrb[78].mxu1 %vm228_vm0, %v10044_v8 }
 0x426   : > { %6871 = vmatprep.mubr.msk.f32.mxu1 %vm228_vm0, %v8711_v49 }
 0x47e   : > { %v6841_v59 = vpop.f32.mrb[64].mxu0 }
 0x47f   : > { %v2516_v1 = vadd.f32 %v6841_v59, %v6004_v13  ;;  %v2432_v3 = vpop.f32.mrb[65].mxu0 }
 0x480   : > { %v2513_v44 = vadd.f32 %v6001_v48, %v2432_v3 }
 0x481   : > { %v6084_v26 = vmul.f32 -1.442695, %v2516_v1 }
 0x482   : > { %v6081_v18 = vmul.f32 -1.442695, %v2513_v44  ;;  %v6844_v60 = vpop.f32.mrb[66].mxu0 }
 0x483   : > { %7735 = vpow2.f32 %v6084_v26  ;;  %v2522_v58 = vadd.f32 %v6844_v60, %v6010_v30  ;;  %v2442_v14 = vpop.f32.mrb[67].mxu0  ;;  %v6034_v30 = vld [vmem:[%s9016_s6 + $0x598] sm:$0xff] }
 0x484   : > { %7737 = vpow2.f32 %v6081_v18  ;;  %v2519_v5 = vadd.f32 %v6007_v53, %v2442_v14  ;;  %v6031_v18 = vld [vmem:[%s9016_s6 + $0x580] sm:$0xff] }
 0x485   : > { %v6090_v56 = vmul.f32 -1.442695, %v2522_v58 }
 0x486   : > { %v6087_v51 = vmul.f32 -1.442695, %v2519_v5  ;;  %v6847_v9 = vpop.f32.mrb[68].mxu0 }
 0x487   : > { %7739 = vpow2.f32 %v6090_v56  ;;  %v2528_v19 = vadd.f32 %v6847_v9, %v6016_v17  ;;  %v2452_v20 = vpop.f32.mrb[69].mxu0  ;;  %v6040_v9 = vld [vmem:[%s9016_s6 + $0x5c8] sm:$0xff] }
 0x488   : > { %7741 = vpow2.f32 %v6087_v51  ;;  %v2525_v29 = vadd.f32 %v6013_v16, %v2452_v20 }
 0x489   : > { %v6096_v32 = vmul.f32 -1.442695, %v2528_v19 }
 0x48a   : > { %v6093_v7 = vmul.f32 -1.442695, %v2525_v29  ;;  %v6850_v2 = vpop.f32.mrb[70].mxu0 }
 0x48b   : > { %7743 = vpow2.f32 %v6096_v32  ;;  %v2534_v35 = vadd.f32 %v6850_v2, %v6022_v33  ;;  %v2462_v57 = vpop.f32.mrb[71].mxu0 }
 0x48c   : > { %7745 = vpow2.f32 %v6093_v7  ;;  %v2531_v23 = vadd.f32 %v6019_v39, %v2462_v57  ;;  %v6037_v7 = vld [vmem:[%s9016_s6 + $0x5b0] sm:$0xff] }
 0x48d   : > { %v7736_v4 = vpop.eup %7735  ;;  %v6102_v25 = vmul.f32 -1.442695, %v2534_v35 }
 0x48e   : > { %v7738_v31 = vpop.eup %7737  ;;  %v2672_v49 = vadd.f32 1.0, %v7736_v4  ;;  %v6099_v13 = vmul.f32 -1.442695, %v2531_v23  ;;  %v6853_v48 = vpop.f32.mrb[72].mxu0  ;;  %v6046_v23 = vld [vmem:[%s9016_s6 + $0x5f8] sm:$0xff] }
 0x48f   : > { %v2669_v59 = vadd.f32 1.0, %v7738_v31  ;;  %7747 = vpow2.f32 %v6102_v25  ;;  %v2540_v1 = vadd.f32 %v6853_v48, %v6028_v21  ;;  %v2472_v3 = vpop.f32.mrb[73].mxu0 }
 0x490   : > { %7749 = vrcp.f32 %v2672_v49  ;;  %v2537_v44 = vadd.f32 %v6025_v42, %v2472_v3  ;;  %v6043_v49 = vld [vmem:[%s9016_s6 + $0x5e0] sm:$0xff] }
 0x491   : > { %v7740_v26 = vpop.eup %7739  ;;  %7751 = vrcp.f32 %v2669_v59  ;;  %v6108_v53 = vmul.f32 -1.442695, %v2540_v1 }
 0x492   : > { %v7742_v60 = vpop.eup %7741  ;;  %v2678_v58 = vadd.f32 1.0, %v7740_v26  ;;  %7753 = vpow2.f32 %v6099_v13  ;;  %v6105_v14 = vmul.f32 -1.442695, %v2537_v44  ;;  %v6856_v5 = vpop.f32.mrb[74].mxu0 }
 0x493   : > { %v2675_v17 = vadd.f32 1.0, %v7742_v60  ;;  %7755 = vpow2.f32 %v6108_v53  ;;  %v2546_v56 = vadd.f32 %v6856_v5, %v6034_v30  ;;  %v2482_v16 = vpop.f32.mrb[75].mxu0 }
 0x494   : > { %7757 = vrcp.f32 %v2678_v58  ;;  %v2543_v51 = vadd.f32 %v6031_v18, %v2482_v16 }
 0x495   : > { %v7744_v19 = vpop.eup %7743  ;;  %7759 = vrcp.f32 %v2675_v17  ;;  %v6114_v20 = vmul.f32 -1.442695, %v2546_v56 }
 0x496   : > { %v7746_v29 = vpop.eup %7745  ;;  %v2684_v33 = vadd.f32 1.0, %v7744_v19  ;;  %7761 = vpow2.f32 %v6105_v14  ;;  %v6111_v32 = vmul.f32 -1.442695, %v2543_v51  ;;  %v6859_v39 = vpop.f32.mrb[76].mxu0 }
 0x497   : > { %v2681_v2 = vadd.f32 1.0, %v7746_v29  ;;  %7763 = vpow2.f32 %v6114_v20  ;;  %v2552_v35 = vadd.f32 %v6859_v39, %v6040_v9  ;;  %v2492_v57 = vpop.f32.mrb[77].mxu0 }
 0x498   : > { %7765 = vrcp.f32 %v2684_v33  ;;  %v2549_v4 = vadd.f32 %v6037_v7, %v2492_v57 }
 0x499   : > { %v7748_v21 = vpop.eup %7747  ;;  %7767 = vrcp.f32 %v2681_v2 }
 0x49a   : > { %v7750_v25 = vpop.eup %7749  ;;  %v2690_v42 = vadd.f32 1.0, %v7748_v21  ;;  %7769 = vpow2.f32 %v6111_v32  ;;  %v6862_v31 = vpop.f32.mrb[78].mxu0 }
 0x49b   : > { %v7752_v13 = vpop.eup %7751  ;;  %7771 = vtanh.f32 %v2552_v35  ;;  %v2558_v48 = vadd.f32 %v6862_v31, %v6046_v23  ;;  %v2502_v59 = vpop.f32.mrb[79].mxu0 }
 0x49c   : > { %v7754_v1 = vpop.eup %7753  ;;  %7773 = vrcp.f32 %v2690_v42  ;;  %v2555_v30 = vadd.f32 %v6043_v49, %v2502_v59 }
 0x49d   : > { %v7756_v3 = vpop.eup %7755  ;;  %v2687_v44 = vadd.f32 1.0, %v7754_v1  ;;  %7775 = vtanh.f32 %v2549_v4 }
 0x49e   : > { %v7758_v26 = vpop.eup %7757  ;;  %7777 = vtanh.f32 %v2558_v48  ;;  %v2696_v56 = vadd.f32 1.0, %v7756_v3 }
 0x49f   : > { %v7760_v53 = vpop.eup %7759  ;;  %7779 = vrcp.f32 %v2687_v44 }
 0x4a0   : > { %v7762_v18 = vpop.eup %7761  ;;  %7781 = vtanh.f32 %v2555_v30 }
 0x4a1   : > { %v7764_v60 = vpop.eup %7763  ;;  %v2693_v51 = vadd.f32 1.0, %v7762_v18  ;;  %7783 = vrcp.f32 %v2696_v56  ;;  %v6000_v56 = vld [vmem:[%s9016_s6 + $0x488] sm:$0xff] }
 0x4a2   : > { %v7766_v58 = vpop.eup %7765  ;;  %v2702_v32 = vadd.f32 1.0, %v7764_v60 }
 0x4a3   : > { %v7768_v14 = vpop.eup %7767  ;;  %v2792_v17 = vmul.f32 %v7766_v58, %v9797_v15  ;;  %7785 = vrcp.f32 %v2693_v51  ;;  %v6002_v51 = vld [vmem:[%s9016_s6 + $0x498] sm:$0xff] }
 0x4a4   : > { %v7770_v5 = vpop.eup %7769  ;;  %v2789_v19 = vmul.f32 %v7768_v14, %v9803_v28  ;;  %v5999_v14 = vld [vmem:[%s9016_s6 + $0x480] sm:$0xff] }
 0x4a5   : > { %v7772_v16 = vpop.eup %7771  ;;  %v2699_v23 = vadd.f32 1.0, %v7770_v5 }
 0x4a6   : > { %v7774_v9 = vpop.eup %7773  ;;  %v2804_v20 = vmul.f32 %v7772_v16, %v7750_v25 }
 0x4a7   : > { %v7776_v29 = vpop.eup %7775  ;;  %v2798_v33 = vmul.f32 %v7774_v9, %v9805_v61 }
 0x4a8   : > { %v7778_v39 = vpop.eup %7777  ;;  %v10068_v7 = vadd.f32 %v2804_v20, %v2792_v17  ;;  %v2801_v2 = vmul.f32 %v7776_v29, %v7752_v13 }
 0x4a9   : > { %v7780_v35 = vpop.eup %7779  ;;  %v2810_v57 = vmul.f32 %v7778_v39, %v7758_v26 }
 0x4aa   : > { %v2795_v15 = vmul.f32 %v7780_v35, %v9810_v27  ;;  %7787 = vtanh.f32 %v10068_v7  ;;  %v10072_v21 = vadd.f32 %v2801_v2, %v2789_v19  ;;  %v7782_v28 = vpop.eup %7781  ;;  %v6003_v19 = vld [vmem:[%s9016_s6 + $0x4a0] sm:$0xff]  ;;  %v6006_v2 = vld [vmem:[%s9016_s6 + $0x4b8] sm:$0xff]  ;;  %v6008_v35 = vld [vmem:[%s9016_s6 + $0x4c8] sm:$0xff] }
 0x4ab   : > { %7789 = vrcp.f32 %v2702_v32  ;;  %v10074_v4 = vadd.f32 %v2810_v57, %v2798_v33  ;;  %v2807_v61 = vmul.f32 %v7782_v28, %v7760_v53  ;;  %v7784_v27 = vpop.eup %7783  ;;  %v6005_v33 = vld [vmem:[%s9016_s6 + $0x4b0] sm:$0xff] }
 0x4ac   : > { %7791 = vtanh.f32 %v10072_v21 }
 0x4ad   : > { %7793 = vtanh.f32 %v10074_v4  ;;  %v10078_v25 = vadd.f32 %v2807_v61, %v2795_v15  ;;  %v7786_v42 = vpop.eup %7785 }
 0x4ae   : > { %7795 = vrcp.f32 %v2699_v23  ;;  %v6009_v23 = vld [vmem:[%s9016_s6 + $0x4d0] sm:$0xff] }
 0x4af   : > { %7797 = vtanh.f32 %v10078_v25 }
 0x4b4   : > { %v7788_v31 = vpop.eup %7787 }
 0x4b5   : > { %v7790_v49 = vpop.eup %7789  ;;  %v2840_v13 = vmul.f32 %v7788_v31, %v7784_v27 }
 0x4b6   : > { %v7792_v48 = vpop.eup %7791 }
 0x4b7   : > { %v7794_v59 = vpop.eup %7793  ;;  %v2837_v1 = vmul.f32 %v7792_v48, %v7786_v42  ;;  %v6012_v48 = vld [vmem:[%s9016_s6 + $0x4e8] sm:$0xff] }
 0x4b8   : > { %v7796_v3 = vpop.eup %7795  ;;  %v2846_v30 = vmul.f32 %v7794_v59, %v7790_v49 }
 0x4b9   : > { %v7047_v44 = vpack.c.bf16 %v2840_v13, %v2837_v1  ;;  %v7798_v26 = vpop.eup %7797 }
 0x4ba   : > { %v2843_v53 = vmul.f32 %v7798_v26, %v7796_v3 }
 0x4bb   : > { %7048 = vmatprep.subr.bf16.mxu1 %v7047_v44 }
 0x4bc   : > { %7050 = vmatpush3.bf16.msra.mxu1 %v7047_v44  ;;  %v7051_v18 = vpack.c.bf16 %v2846_v30, %v2843_v53  ;;  %v2271_v60 = vpop.f32.mrb[48].mxu1  ;;  %v6015_v53 = vld [vmem:[%s9016_s6 + $0x500] sm:$0xff] }
 0x4bd   : > { %v2273_v58 = vpop.f32.mrb[49].mxu1  ;;  %v2511_v17 = vadd.f32 %v5999_v14, %v2271_v60 }
 0x4be   : > { %7052 = vmatprep.subr.bf16.mxu1 %v7051_v18  ;;  %v2512_v9 = vadd.f32 %v6000_v56, %v2273_v58 }
 0x4bf   : > { %v6079_v29 = vmul.f32 -1.442695, %v2511_v17  ;;  %v6018_v17 = vld [vmem:[%s9016_s6 + $0x518] sm:$0xff] }
 0x4c0   : > { %7054 = vmatpush3.bf16.msra.mxu1 %v7051_v18  ;;  %v2277_v5 = vpop.f32.mrb[50].mxu1 }
 0x4c1   : > { %v2279_v16 = vpop.f32.mrb[51].mxu1  ;;  %v2514_v39 = vadd.f32 %v6002_v51, %v2277_v5  ;;  %7799 = vpow2.f32 %v6079_v29 }
 0x4c3   : > { %6872 = vmatmul.mubr.msk.f32.vlgmr.msra.gmra.mrb[80].mxu1 %vm228_vm0, %v9932_v43  ;;  %v2515_v43 = vadd.f32 %v6003_v19, %v2279_v16  ;;  %v6082_v61 = vmul.f32 -1.442695, %v2514_v39 }
 0x4c4   : > { %6874 = vmatprep.mubr.msk.f32.mxu1 %vm228_vm0, %v9940_v63  ;;  %v2283_v20 = vpop.f32.mrb[52].mxu1  ;;  %v6080_v63 = vmul.f32 -1.442695, %v2512_v9 }
 0x4c5   : > { %v2285_v32 = vpop.f32.mrb[53].mxu1  ;;  %v2517_v57 = vadd.f32 %v6005_v33, %v2283_v20  ;;  %v6083_v42 = vmul.f32 -1.442695, %v2515_v43 }
 0x4c6   : > { %v2518_v28 = vadd.f32 %v6006_v2, %v2285_v32  ;;  %7801 = vpow2.f32 %v6080_v63  ;;  %v6020_v63 = vld [vmem:[%s9016_s6 + $0x528] sm:$0xff] }
 0x4c7   : > { %6875 = vmatmul.mubr.msk.f32.gmra.mrb[82].mxu1 %vm228_vm0, %v9948_v40  ;;  %v6085_v49 = vmul.f32 -1.442695, %v2517_v57  ;;  %7803 = vpow2.f32 %v6082_v61 }
 0x4c8   : > { %6877 = vmatprep.mubr.msk.f32.mxu1 %vm228_vm0, %v9956_v52  ;;  %v2289_v15 = vpop.f32.mrb[54].mxu1  ;;  %v6011_v52 = vld [vmem:[%s9016_s6 + $0x4e0] sm:$0xff]  ;;  %v6086_v59 = vmul.f32 -1.442695, %v2518_v28  ;;  %7805 = vpow2.f32 %v6083_v42  ;;  %v6021_v28 = vld [vmem:[%s9016_s6 + $0x530] sm:$0xff] }
 0x4c9   : > { %v2291_v40 = vpop.f32.mrb[55].mxu1  ;;  %v2520_v27 = vadd.f32 %v6008_v35, %v2289_v15  ;;  %7807 = vpow2.f32 %v6085_v49 }
 0x4ca   : > { %v2521_v31 = vadd.f32 %v6009_v23, %v2291_v40  ;;  %7809 = vpow2.f32 %v6086_v59  ;;  %v6024_v59 = vld [vmem:[%s9016_s6 + $0x548] sm:$0xff] }
 0x4cb   : > { %6878 = vmatmul.mubr.msk.f32.gmra.mrb[84].mxu1 %vm228_vm0, %v9964_v6  ;;  %v6088_v3 = vmul.f32 -1.442695, %v2520_v27  ;;  %v7800_v58 = vpop.eup %7799 }
 0x4cc   : > { %6880 = vmatprep.mubr.msk.f32.mxu1 %vm228_vm0, %v9972_v54  ;;  %v2295_v13 = vpop.f32.mrb[56].mxu1  ;;  %v6014_v54 = vld [vmem:[%s9016_s6 + $0x4f8] sm:$0xff]  ;;  %v6089_v44 = vmul.f32 -1.442695, %v2521_v31  ;;  %v2667_v19 = vadd.f32 1.0, %v7800_v58 }
 0x4cd   : > { %v2523_v6 = vadd.f32 %v6011_v52, %v2295_v13  ;;  %v2297_v1 = vpop.f32.mrb[57].mxu1  ;;  %7811 = vpow2.f32 %v6088_v3  ;;  %v6023_v13 = vld [vmem:[%s9016_s6 + $0x540] sm:$0xff] }
 0x4ce   : > { %v2524_v30 = vadd.f32 %v6012_v48, %v2297_v1  ;;  %7813 = vpow2.f32 %v6089_v44 }
 0x4cf   : > { %6881 = vmatmul.mubr.msk.f32.gmra.mrb[86].mxu1 %vm228_vm0, %v9980_v37  ;;  %v6091_v18 = vmul.f32 -1.442695, %v2523_v6 }
 0x4d0   : > { %6883 = vmatprep.mubr.msk.f32.mxu1 %vm228_vm0, %v9988_v22  ;;  %v2301_v26 = vpop.f32.mrb[58].mxu1  ;;  %v6017_v22 = vld [vmem:[%s9016_s6 + $0x510] sm:$0xff]  ;;  %v6092_v14 = vmul.f32 -1.442695, %v2524_v30  ;;  %v7802_v9 = vpop.eup %7801 }
 0x4d1   : > { %v2526_v37 = vadd.f32 %v6014_v54, %v2301_v26  ;;  %v2303_v60 = vpop.f32.mrb[59].mxu1  ;;  %7815 = vpow2.f32 %v6091_v18  ;;  %v7804_v29 = vpop.eup %7803  ;;  %v2668_v2 = vadd.f32 1.0, %v7802_v9  ;;  %v6026_v18 = vld [vmem:[%s9016_s6 + $0x558] sm:$0xff] }
 0x4d2   : > { %v2527_v5 = vadd.f32 %v6015_v53, %v2303_v60  ;;  %7817 = vpow2.f32 %v6092_v14  ;;  %v7806_v39 = vpop.eup %7805  ;;  %v2670_v57 = vadd.f32 1.0, %v7804_v29 }
 0x4d3   : > { %6884 = vmatmul.mubr.msk.f32.gmra.mrb[88].mxu1 %vm228_vm0, %v9996_v45  ;;  %v6094_v56 = vmul.f32 -1.442695, %v2526_v37  ;;  %v7808_v43 = vpop.eup %7807  ;;  %v2671_v23 = vadd.f32 1.0, %v7806_v39 }
 0x4d4   : > { %6886 = vmatprep.mubr.msk.f32.mxu1 %vm228_vm0, %v10004_v41  ;;  %v2307_v16 = vpop.f32.mrb[60].mxu1  ;;  %v6095_v41 = vmul.f32 -1.442695, %v2527_v5  ;;  %v6027_v5 = vld [vmem:[%s9016_s6 + $0x560] sm:$0xff] }
 0x4d5   : > { %v2529_v51 = vadd.f32 %v6017_v22, %v2307_v16  ;;  %v2309_v45 = vpop.f32.mrb[61].mxu1  ;;  %7819 = vpow2.f32 %v6094_v56 }
 0x4d6   : > { %v2530_v20 = vadd.f32 %v6018_v17, %v2309_v45  ;;  %7821 = vrcp.f32 %v2667_v19  ;;  %v6029_v45 = vld [vmem:[%s9016_s6 + $0x570] sm:$0xff] }
 0x4d7   : > { %6887 = vmatmul.mubr.msk.f32.gmra.mrb[90].mxu1 %vm228_vm0, %v10012_v47  ;;  %v6097_v33 = vmul.f32 -1.442695, %v2529_v51  ;;  %7823 = vpow2.f32 %v6095_v41 }
 0x4d8   : > { %6889 = vmatprep.mubr.msk.f32.mxu1 %vm228_vm0, %v10020_v38  ;;  %v2313_v32 = vpop.f32.mrb[62].mxu1  ;;  %v6098_v35 = vmul.f32 -1.442695, %v2530_v20  ;;  %v7810_v38 = vpop.eup %7809 }
 0x4d9   : > { %v2315_v47 = vpop.f32.mrb[63].mxu1  ;;  %v7812_v15 = vpop.eup %7811  ;;  %7825 = vpow2.f32 %v6097_v33  ;;  %v2532_v27 = vadd.f32 %v6020_v63, %v2313_v32  ;;  %v2674_v42 = vadd.f32 1.0, %v7810_v38 }
 0x4da   : > { %v7814_v61 = vpop.eup %7813  ;;  %7827 = vrcp.f32 %v2668_v2  ;;  %v2676_v31 = vadd.f32 1.0, %v7812_v15  ;;  %v2533_v49 = vadd.f32 %v6021_v28, %v2315_v47  ;;  %v6030_v47 = vld [vmem:[%s9016_s6 + $0x578] sm:$0xff]  ;;  %v6035_v15 = vld [vmem:[%s9016_s6 + $0x5a0] sm:$0xff] }
 0x4db   : > { %6890 = vmatmul.mubr.msk.f32.gmra.mrb[92].mxu1 %vm228_vm0, %v10028_v12  ;;  %v2673_v12 = vadd.f32 1.0, %v7808_v43  ;;  %7829 = vpow2.f32 %v6098_v35  ;;  %v2677_v48 = vadd.f32 1.0, %v7814_v61  ;;  %v6100_v3 = vmul.f32 -1.442695, %v2532_v27  ;;  %v6032_v61 = vld [vmem:[%s9016_s6 + $0x588] sm:$0xff] }
 0x4dc   : > { %6892 = vmatprep.mubr.msk.f32.mxu1 %vm228_vm0, %v10036_v11  ;;  %v2319_v40 = vpop.f32.mrb[64].mxu1  ;;  %v7816_v11 = vpop.eup %7815  ;;  %7831 = vrcp.f32 %v2670_v57  ;;  %v6101_v26 = vmul.f32 -1.442695, %v2533_v49  ;;  %v6036_v27 = vld [vmem:[%s9016_s6 + $0x5a8] sm:$0xff] }
 0x4dd   : > { %v2321_v52 = vpop.f32.mrb[65].mxu1  ;;  %7833 = vrcp.f32 %v2671_v23  ;;  %v7818_v1 = vpop.eup %7817  ;;  %v2679_v44 = vadd.f32 1.0, %v7816_v11  ;;  %v2535_v30 = vadd.f32 %v6023_v13, %v2319_v40  ;;  %v6033_v11 = vld [vmem:[%s9016_s6 + $0x590] sm:$0xff] }
 0x4de   : > { %7835 = vrcp.f32 %v2673_v12  ;;  %v2536_v53 = vadd.f32 %v6024_v59, %v2321_v52  ;;  %v2680_v60 = vadd.f32 1.0, %v7818_v1 }
 0x4df   : > { %6893 = vmatmul.mubr.msk.f32.gmra.mrb[94].mxu1 %vm228_vm0, %v10044_v8  ;;  %v7820_v8 = vpop.eup %7819  ;;  %7837 = vrcp.f32 %v2674_v42  ;;  %v6103_v16 = vmul.f32 -1.442695, %v2535_v30 }
 0x4e0   : > { %3651 = vmatprep.mubr.f32.mxu1 %v8893_v0  ;;  %v2325_v6 = vpop.f32.mrb[66].mxu1  ;;  %7839 = vrcp.f32 %v2676_v31  ;;  %v10131_v37 = vpop.eup %7821  ;;  %v2682_v14 = vadd.f32 1.0, %v7820_v8  ;;  %v6104_v19 = vmul.f32 -1.442695, %v2536_v53 }
 0x4e1   : > { %v2327_v54 = vpop.f32.mrb[67].mxu1  ;;  %7841 = vrcp.f32 %v2677_v48  ;;  %v7824_v58 = vpop.eup %7823  ;;  %v2538_v51 = vadd.f32 %v6026_v18, %v2325_v6  ;;  %v6038_v48 = vld [vmem:[%s9016_s6 + $0x5b8] sm:$0xff] }
 0x4e2   : > { %7843 = vpow2.f32 %v6100_v3  ;;  %v2683_v41 = vadd.f32 1.0, %v7824_v58  ;;  %v2539_v29 = vadd.f32 %v6027_v5, %v2327_v54  ;;  %v6041_v5 = vld [vmem:[%s9016_s6 + $0x5d0] sm:$0xff] }
 0x4e3   : > { %v7826_v56 = vpop.eup %7825  ;;  %7845 = vrcp.f32 %v2679_v44  ;;  %v6106_v63 = vmul.f32 -1.442695, %v2538_v51 }
 0x4e4   : > { %v2331_v22 = vpop.f32.mrb[68].mxu1  ;;  %v10135_v9 = vpop.eup %7827  ;;  %7847 = vpow2.f32 %v6101_v26  ;;  %v2685_v39 = vadd.f32 1.0, %v7826_v56  ;;  %v6107_v28 = vmul.f32 -1.442695, %v2539_v29  ;;  %v6042_v29 = vld [vmem:[%s9016_s6 + $0x5d8] sm:$0xff] }
 0x4e5   : > { %v2333_v17 = vpop.f32.mrb[69].mxu1  ;;  %v7830_v20 = vpop.eup %7829  ;;  %7849 = vrcp.f32 %v2680_v60  ;;  %v2541_v2 = vadd.f32 %v6029_v45, %v2331_v22  ;;  %v6039_v22 = vld [vmem:[%s9016_s6 + $0x5c0] sm:$0xff] }
 0x4e6   : > { %v10137_v32 = vpop.eup %7831  ;;  %7851 = vrcp.f32 %v2682_v14  ;;  %v2686_v57 = vadd.f32 1.0, %v7830_v20  ;;  %v2542_v40 = vadd.f32 %v6030_v47, %v2333_v17 }
 0x4e7   : > { %v10140_v35 = vpop.eup %7833  ;;  %7853 = vpow2.f32 %v6103_v16  ;;  %v6109_v42 = vmul.f32 -1.442695, %v2541_v2  ;;  %v6044_v2 = vld [vmem:[%s9016_s6 + $0x5e8] sm:$0xff] }
 0x4e8   : > { %v2337_v33 = vpop.f32.mrb[70].mxu1  ;;  %v10142_v38 = vpop.eup %7835  ;;  %7855 = vpow2.f32 %v6104_v19  ;;  %v6110_v54 = vmul.f32 -1.442695, %v2542_v40 }
 0x4e9   : > { %v2339_v43 = vpop.f32.mrb[71].mxu1  ;;  %v10145_v23 = vpop.eup %7837  ;;  %7857 = vrcp.f32 %v2683_v41  ;;  %v2544_v6 = vadd.f32 %v6032_v61, %v2337_v33 }
 0x4ea   : > { %v10149_v52 = vpop.eup %7839  ;;  %7859 = vrcp.f32 %v2685_v39  ;;  %v2545_v8 = vadd.f32 %v6033_v11, %v2339_v43 }
 0x4eb   : > { %v10152_v49 = vpop.eup %7841  ;;  %7861 = vpow2.f32 %v6106_v63  ;;  %v6112_v14 = vmul.f32 -1.442695, %v2544_v6 }
 0x4ec   : > { %v2343_v12 = vpop.f32.mrb[72].mxu1  ;;  %v7844_v59 = vpop.eup %7843  ;;  %7863 = vrcp.f32 %v2686_v57  ;;  %v6113_v56 = vmul.f32 -1.442695, %v2545_v8  ;;  %v6045_v57 = vld [vmem:[%s9016_s6 + $0x5f0] sm:$0xff] }
 0x4ed   : > { %v2345_v31 = vpop.f32.mrb[73].mxu1  ;;  %v2547_v13 = vadd.f32 %v6035_v15, %v2343_v12  ;;  %v7846_v3 = vpop.eup %7845  ;;  %7865 = vpow2.f32 %v6107_v28  ;;  %v2688_v60 = vadd.f32 1.0, %v7844_v59 }
 0x4ee   : > { %v2548_v1 = vadd.f32 %v6036_v27, %v2345_v31  ;;  %v7848_v30 = vpop.eup %7847  ;;  %7867 = vpow2.f32 %v6109_v42 }
 0x4ef   : > { %v7850_v18 = vpop.eup %7849  ;;  %7869 = vtanh.f32 %v2547_v13  ;;  %v2689_v39 = vadd.f32 1.0, %v7848_v30 }
 0x4f0   : > { %v2349_v44 = vpop.f32.mrb[74].mxu1  ;;  %v7852_v58 = vpop.eup %7851  ;;  %7871 = vtanh.f32 %v2548_v1 }
 0x4f1   : > { %v2550_v26 = vadd.f32 %v6038_v48, %v2349_v44  ;;  %v2351_v53 = vpop.f32.mrb[75].mxu1  ;;  %v7854_v17 = vpop.eup %7853  ;;  %7873 = vpow2.f32 %v6110_v54  ;;  %v2787_v48 = vmul.f32 %v7846_v3, %v9887_v55  ;;  %v2788_v54 = vmul.f32 %v7850_v18, %v9892_v46 }
 0x4f2   : > { %v7856_v51 = vpop.eup %7855  ;;  %v2551_v45 = vadd.f32 %v6039_v22, %v2351_v53  ;;  %v2691_v43 = vadd.f32 1.0, %v7854_v17 }
 0x4f3   : > { %7875 = vtanh.f32 %v2550_v26  ;;  %v7858_v20 = vpop.eup %7857  ;;  %v2692_v31 = vadd.f32 1.0, %v7856_v51 }
 0x4f4   : > { %v2355_v16 = vpop.f32.mrb[76].mxu1  ;;  %7877 = vrcp.f32 %v2688_v60  ;;  %v7860_v33 = vpop.eup %7859  ;;  %v2790_v60 = vmul.f32 %v7852_v58, %v9896_v50  ;;  %v2791_v17 = vmul.f32 %v7858_v20, %v9904_v34 }
 0x4f5   : > { %v2357_v19 = vpop.f32.mrb[77].mxu1  ;;  %v2553_v41 = vadd.f32 %v6041_v5, %v2355_v16  ;;  %7879 = vpow2.f32 %v6112_v14  ;;  %v7862_v47 = vpop.eup %7861 }
 0x4f6   : > { %7881 = vpow2.f32 %v6113_v56  ;;  %v7864_v15 = vpop.eup %7863  ;;  %v2554_v28 = vadd.f32 %v6042_v29, %v2357_v19  ;;  %v2694_v59 = vadd.f32 1.0, %v7862_v47 }
 0x4f7   : > { %7883 = vtanh.f32 %v2551_v45  ;;  %v7866_v61 = vpop.eup %7865 }
 0x4f8   : > { %v2361_v63 = vpop.f32.mrb[78].mxu1  ;;  %7885 = vtanh.f32 %v2553_v41  ;;  %v7868_v27 = vpop.eup %7867  ;;  %v2695_v30 = vadd.f32 1.0, %v7866_v61 }
 0x4f9   : > { %v2363_v40 = vpop.f32.mrb[79].mxu1  ;;  %v2556_v12 = vadd.f32 %v6044_v2, %v2361_v63  ;;  %7887 = vrcp.f32 %v2689_v39  ;;  %v7870_v11 = vpop.eup %7869  ;;  %v2697_v22 = vadd.f32 1.0, %v7868_v27 }
 0x4fa   : > { %v2557_v42 = vadd.f32 %v6045_v57, %v2363_v40  ;;  %7889 = vrcp.f32 %v2691_v43  ;;  %v7872_v13 = vpop.eup %7871  ;;  %v2799_v6 = vmul.f32 %v7870_v11, %v10131_v37 }
 0x4fb   : > { %7891 = vtanh.f32 %v2554_v28  ;;  %v7874_v1 = vpop.eup %7873  ;;  %v2800_v8 = vmul.f32 %v7872_v13, %v10135_v9 }
 0x4fc   : > { %7893 = vtanh.f32 %v2556_v12  ;;  %v10164_v26 = vadd.f32 %v2799_v6, %v2787_v48  ;;  %v2698_v14 = vadd.f32 1.0, %v7874_v1 }
 0x4fd   : > { %v7876_v44 = vpop.eup %7875  ;;  %7895 = vtanh.f32 %v2557_v42  ;;  %v10167_v55 = vadd.f32 %v2800_v8, %v2788_v54 }
 0x4fe   : > { %v7878_v53 = vpop.eup %7877  ;;  %7897 = vrcp.f32 %v2692_v31  ;;  %v2802_v37 = vmul.f32 %v7876_v44, %v10137_v32  ;;  %v2793_v32 = vmul.f32 %v7860_v33, %v9906_v24 }
 0x4ff   : > { %v7880_v3 = vpop.eup %7879  ;;  %7899 = vrcp.f32 %v2694_v59 }
 0x500   : > { %v7882_v46 = vpop.eup %7881  ;;  %7901 = vtanh.f32 %v10164_v26  ;;  %v10171_v9 = vadd.f32 %v2802_v37, %v2790_v60  ;;  %v2700_v56 = vadd.f32 1.0, %v7880_v3  ;;  %v8727_v37 = vld [vmem:[%s11260_s1] sm:$0xff]  ;;  %v10208_v3 = vld [vmem:[%s11260_s1 + $0x8] sm:$0xff] }
 0x501   : > { %v7884_v18 = vpop.eup %7883  ;;  %7903 = vrcp.f32 %v2695_v30  ;;  %v2701_v45 = vadd.f32 1.0, %v7882_v46  ;;  %v10224_v46 = vld [vmem:[%s11260_s1 + $0x18] sm:$0xff] }
 0x502   : > { %v7886_v5 = vpop.eup %7885  ;;  %7905 = vtanh.f32 %v10171_v9  ;;  %v2803_v50 = vmul.f32 %v7884_v18, %v10140_v35  ;;  %v2794_v35 = vmul.f32 %v7864_v15, %v9910_v62  ;;  %v10232_v18 = vld [vmem:[%s11260_s1 + $0x20] sm:$0xff] }
 0x503   : > { %v7888_v58 = vpop.eup %7887  ;;  %7907 = vrcp.f32 %v2697_v22  ;;  %v2805_v16 = vmul.f32 %v7886_v5, %v10142_v38  ;;  %v2796_v38 = vmul.f32 %v7878_v53, %v9916_v36  ;;  %v10216_v22 = vld [vmem:[%s11260_s1 + $0x10] sm:$0xff] }
 0x504   : > { %v7890_v51 = vpop.eup %7889  ;;  %7909 = vtanh.f32 %v10167_v55  ;;  %v10179_v19 = vadd.f32 %v2803_v50, %v2791_v17  ;;  %v2797_v2 = vmul.f32 %v7888_v58, %v9921_v10  ;;  %v10248_v5 = vld [vmem:[%s11260_s1 + $0x30] sm:$0xff]  ;;  %v10256_v17 = vld [vmem:[%s11260_s1 + $0x38] sm:$0xff]  ;;  %v10264_v50 = vld [vmem:[%s11260_s1 + $0x40] sm:$0xff] }
 0x505   : > { %v7892_v41 = vpop.eup %7891  ;;  %7911 = vrcp.f32 %v2698_v14  ;;  %v10181_v34 = vadd.f32 %v2805_v16, %v2793_v32  ;;  %v10240_v14 = vld [vmem:[%s11260_s1 + $0x28] sm:$0xff]  ;;  %v10280_v32 = vld [vmem:[%s11260_s1 + $0x50] sm:$0xff]  ;;  %v10296_v16 = vld [vmem:[%s11260_s1 + $0x60] sm:$0xff] }
 0x506   : > { %v7894_v20 = vpop.eup %7893  ;;  %7913 = vtanh.f32 %v10179_v19  ;;  %v2806_v24 = vmul.f32 %v7892_v41, %v10145_v23  ;;  %v10272_v58 = vld [vmem:[%s11260_s1 + $0x48] sm:$0xff]  ;;  %v10320_v41 = vld [vmem:[%s11260_s1 + $0x78] sm:$0xff] }
 0x507   : > { %v7896_v29 = vpop.eup %7895  ;;  %7915 = vrcp.f32 %v2700_v56  ;;  %v2808_v33 = vmul.f32 %v7894_v20, %v10149_v52  ;;  %v10288_v56 = vld [vmem:[%s11260_s1 + $0x58] sm:$0xff]  ;;  %v6120_v20 = vld [vmem:[%s9016_s6 + $0x628] sm:$0xff] }
 0x508   : > { %v7898_v39 = vpop.eup %7897  ;;  %7917 = vrcp.f32 %v2701_v45  ;;  %v10189_v47 = vadd.f32 %v2806_v24, %v2794_v35  ;;  %v2809_v43 = vmul.f32 %v7896_v29, %v10152_v49  ;;  %v10312_v45 = vld [vmem:[%s11260_s1 + $0x70] sm:$0xff] }
 0x509   : > { %v7900_v63 = vpop.eup %7899  ;;  %7919 = vtanh.f32 %v10181_v34  ;;  %v10193_v62 = vadd.f32 %v2808_v33, %v2796_v38  ;;  %v6117_v35 = vld [vmem:[%s9016_s6 + $0x610] sm:$0xff] }
 0x50a   : > { %v7902_v23 = vpop.eup %7901  ;;  %7921 = vtanh.f32 %v10189_v47  ;;  %v10196_v36 = vadd.f32 %v2809_v43, %v2797_v2  ;;  %v6123_v43 = vld [vmem:[%s9016_s6 + $0x640] sm:$0xff] }
 0x50b   : > { %v7904_v57 = vpop.eup %7903  ;;  %7923 = vtanh.f32 %v10193_v62  ;;  %v2835_v15 = vmul.f32 %v7902_v23, %v7890_v51  ;;  %v10304_v51 = vld [vmem:[%s11260_s1 + $0x68] sm:$0xff] }
 0x50c   : > { %v7906_v52 = vpop.eup %7905  ;;  %7925 = vtanh.f32 %v10196_v36 }
 0x50d   : > { %v7908_v10 = vpop.eup %7907  ;;  %v2838_v28 = vmul.f32 %v7906_v52, %v7900_v63 }
 0x50e   : > { %v7910_v49 = vpop.eup %7909 }
 0x50f   : > { %v7912_v40 = vpop.eup %7911  ;;  %v7041_v61 = vpack.c.bf16 %v2838_v28, %v2835_v15  ;;  %v2836_v42 = vmul.f32 %v7910_v49, %v7898_v39  ;;  %v6126_v39 = vld [vmem:[%s9016_s6 + $0x658] sm:$0xff]  ;;  %v6132_v15 = vld [vmem:[%s9016_s6 + $0x688] sm:$0xff]  ;;  %v6129_v49 = vld [vmem:[%s9016_s6 + $0x670] sm:$0xff] }
 0x510   : > { %v7914_v12 = vpop.eup %7913 }
 0x511   : > { %v7916_v27 = vpop.eup %7915  ;;  %v2839_v11 = vmul.f32 %v7914_v12, %v7904_v57 }
 0x512   : > { %v7918_v31 = vpop.eup %7917 }
 0x513   : > { %v7920_v13 = vpop.eup %7919  ;;  %v7039_v48 = vpack.c.bf16 %v2839_v11, %v2836_v42  ;;  %v6138_v11 = vld [vmem:[%s9016_s6 + $0x6b8] sm:$0xff] }
 0x514   : > { %v7922_v59 = vpop.eup %7921  ;;  %v2841_v54 = vmul.f32 %v7920_v13, %v7908_v10  ;;  %v6135_v13 = vld [vmem:[%s9016_s6 + $0x6a0] sm:$0xff] }
 0x515   : > { %v7924_v6 = vpop.eup %7923  ;;  %7040 = vmatprep.subr.bf16.mxu0 %v7039_v48  ;;  %v2842_v44 = vmul.f32 %v7922_v59, %v7912_v40 }
 0x516   : > { %v7926_v1 = vpop.eup %7925  ;;  %7042 = vmatpush1.bf16.msra.mxu0 %v7041_v61  ;;  %v2844_v8 = vmul.f32 %v7924_v6, %v7916_v27 }
 0x517   : > { %v2845_v30 = vmul.f32 %v7926_v1, %v7918_v31 }
 0x518   : > { %v7045_v53 = vpack.c.bf16 %v2844_v8, %v2841_v54  ;;  %v6144_v8 = vld [vmem:[%s9016_s6 + $0x6e8] sm:$0xff] }
 0x519   : > { %v7043_v60 = vpack.c.bf16 %v2845_v30, %v2842_v44 }
 0x51b   : > { %7044 = vmatprep.subr.bf16.mxu0 %v7043_v60 }
 0x51c   : > { %7046 = vmatpush1.bf16.msra.mxu0 %v7045_v53  ;;  %v6141_v53 = vld [vmem:[%s9016_s6 + $0x6d0] sm:$0xff] }
 0x51f   : > { %6163 = vmatmul.mubr.msk.f32.vlgmr.msra.gmra.mrb[80].mxu0 %vm228_vm0, %v8727_v37 }
 0x520   : > { %2966 = vmatprep.mubr.f32.mxu0 %v8893_v0 }
 0x523   : > { %6164 = vmatmul.mubr.msk.f32.gmra.mrb[82].mxu0 %vm228_vm0, %v10208_v3 }
 0x524   : > { %2972 = vmatprep.mubr.f32.mxu0 %v8893_v0 }
 0x527   : > { %6165 = vmatmul.mubr.msk.f32.gmra.mrb[84].mxu0 %vm228_vm0, %v10216_v22 }
 0x528   : > { %2978 = vmatprep.mubr.f32.mxu0 %v8893_v0 }
 0x52b   : > { %6166 = vmatmul.mubr.msk.f32.gmra.mrb[86].mxu0 %vm228_vm0, %v10224_v46 }
 0x52c   : > { %2984 = vmatprep.mubr.f32.mxu0 %v8893_v0 }
 0x52f   : > { %6167 = vmatmul.mubr.msk.f32.gmra.mrb[88].mxu0 %vm228_vm0, %v10232_v18 }
 0x530   : > { %2990 = vmatprep.mubr.f32.mxu0 %v8893_v0 }
 0x533   : > { %6168 = vmatmul.mubr.msk.f32.gmra.mrb[90].mxu0 %vm228_vm0, %v10240_v14 }
 0x534   : > { %2996 = vmatprep.mubr.f32.mxu0 %v8893_v0 }
 0x537   : > { %6169 = vmatmul.mubr.msk.f32.gmra.mrb[92].mxu0 %vm228_vm0, %v10248_v5 }
 0x538   : > { %3002 = vmatprep.mubr.f32.mxu0 %v8893_v0 }
 0x53b   : > { %6170 = vmatmul.mubr.msk.f32.gmra.mrb[94].mxu0 %vm228_vm0, %v10256_v17 }
 0x53c   : > { %3008 = vmatprep.mubr.f32.mxu0 %v8893_v0 }
 0x53f   : > { %6171 = vmatmul.mubr.msk.f32.gmra.mrb[96].mxu0 %vm228_vm0, %v10264_v50 }
 0x540   : > { %3014 = vmatprep.mubr.f32.mxu0 %v8893_v0 }
 0x543   : > { %6172 = vmatmul.mubr.msk.f32.gmra.mrb[98].mxu0 %vm228_vm0, %v10272_v58 }
 0x544   : > { %3020 = vmatprep.mubr.f32.mxu0 %v8893_v0 }
 0x547   : > { %6173 = vmatmul.mubr.msk.f32.gmra.mrb[100].mxu0 %vm228_vm0, %v10280_v32 }
 0x548   : > { %3026 = vmatprep.mubr.f32.mxu0 %v8893_v0 }
 0x54b   : > { %6174 = vmatmul.mubr.msk.f32.gmra.mrb[102].mxu0 %vm228_vm0, %v10288_v56 }
 0x54c   : > { %3032 = vmatprep.mubr.f32.mxu0 %v8893_v0 }
 0x54f   : > { %6175 = vmatmul.mubr.msk.f32.gmra.mrb[104].mxu0 %vm228_vm0, %v10296_v16 }
 0x550   : > { %3038 = vmatprep.mubr.f32.mxu0 %v8893_v0 }
 0x553   : > { %6176 = vmatmul.mubr.msk.f32.gmra.mrb[106].mxu0 %vm228_vm0, %v10304_v51 }
 0x554   : > { %3044 = vmatprep.mubr.f32.mxu0 %v8893_v0 }
 0x557   : > { %6177 = vmatmul.mubr.msk.f32.gmra.mrb[108].mxu0 %vm228_vm0, %v10312_v45 }
 0x558   : > { %3050 = vmatprep.mubr.f32.mxu0 %v8893_v0 }
 0x55b   : > { %6178 = vmatmul.mubr.msk.f32.gmra.mrb[110].mxu0 %vm228_vm0, %v10320_v41 }
 0x55c   : > { %6903 = vmatprep.mubr.msk.f32.mxu0 %vm228_vm0, %v8727_v37 }
 0x596   : > { %v6873_v24 = vpop.f32.mrb[80].mxu1 }
 0x597   : > { %v3207_v29 = vadd.f32 %v6873_v24, %v6120_v20  ;;  %v3123_v38 = vpop.f32.mrb[81].mxu1 }
 0x598   : > { %v3204_v33 = vadd.f32 %v6117_v35, %v3123_v38 }
 0x599   : > { %v6200_v2 = vmul.f32 -1.442695, %v3207_v29 }
 0x59a   : > { %v6197_v63 = vmul.f32 -1.442695, %v3204_v33  ;;  %v6876_v23 = vpop.f32.mrb[82].mxu1 }
 0x59b   : > { %7927 = vpow2.f32 %v6200_v2  ;;  %v3213_v57 = vadd.f32 %v6876_v23, %v6126_v39  ;;  %v3133_v52 = vpop.f32.mrb[83].mxu1  ;;  %v6150_v39 = vld [vmem:[%s9016_s6 + $0x718] sm:$0xff] }
 0x59c   : > { %7929 = vpow2.f32 %v6197_v63  ;;  %v3210_v10 = vadd.f32 %v6123_v43, %v3133_v52  ;;  %v6147_v63 = vld [vmem:[%s9016_s6 + $0x700] sm:$0xff] }
 0x59d   : > { %v6206_v28 = vmul.f32 -1.442695, %v3213_v57 }
 0x59e   : > { %v6203_v40 = vmul.f32 -1.442695, %v3210_v10  ;;  %v6879_v61 = vpop.f32.mrb[84].mxu1 }
 0x59f   : > { %7931 = vpow2.f32 %v6206_v28  ;;  %v3219_v12 = vadd.f32 %v6879_v61, %v6132_v15  ;;  %v3143_v27 = vpop.f32.mrb[85].mxu1  ;;  %v6156_v61 = vld [vmem:[%s9016_s6 + $0x748] sm:$0xff] }
 0x5a0   : > { %7933 = vpow2.f32 %v6203_v40  ;;  %v3216_v42 = vadd.f32 %v6129_v49, %v3143_v27 }
 0x5a1   : > { %v6212_v31 = vmul.f32 -1.442695, %v3219_v12 }
 0x5a2   : > { %v6209_v48 = vmul.f32 -1.442695, %v3216_v42  ;;  %v6882_v59 = vpop.f32.mrb[86].mxu1 }
 0x5a3   : > { %7935 = vpow2.f32 %v6212_v31  ;;  %v3225_v6 = vadd.f32 %v6882_v59, %v6138_v11  ;;  %v3153_v1 = vpop.f32.mrb[87].mxu1 }
 0x5a4   : > { %7937 = vpow2.f32 %v6209_v48  ;;  %v3222_v54 = vadd.f32 %v6135_v13, %v3153_v1  ;;  %v6153_v48 = vld [vmem:[%s9016_s6 + $0x730] sm:$0xff] }
 0x5a5   : > { %v7928_v44 = vpop.eup %7927  ;;  %v6218_v30 = vmul.f32 -1.442695, %v3225_v6 }
 0x5a6   : > { %v7930_v60 = vpop.eup %7929  ;;  %v3363_v37 = vadd.f32 1.0, %v7928_v44  ;;  %v6215_v20 = vmul.f32 -1.442695, %v3222_v54  ;;  %v6885_v35 = vpop.f32.mrb[88].mxu1  ;;  %v6162_v54 = vld [vmem:[%s9016_s6 + $0x778] sm:$0xff] }
 0x5a7   : > { %v3360_v24 = vadd.f32 1.0, %v7930_v60  ;;  %7939 = vpow2.f32 %v6218_v30  ;;  %v3231_v29 = vadd.f32 %v6885_v35, %v6144_v8  ;;  %v3163_v38 = vpop.f32.mrb[89].mxu1 }
 0x5a8   : > { %7941 = vrcp.f32 %v3363_v37  ;;  %v3228_v33 = vadd.f32 %v6141_v53, %v3163_v38  ;;  %v6159_v37 = vld [vmem:[%s9016_s6 + $0x760] sm:$0xff] }
 0x5a9   : > { %v7932_v2 = vpop.eup %7931  ;;  %7943 = vrcp.f32 %v3360_v24  ;;  %v6224_v43 = vmul.f32 -1.442695, %v3231_v29 }
 0x5aa   : > { %v7934_v23 = vpop.eup %7933  ;;  %v3369_v57 = vadd.f32 1.0, %v7932_v2  ;;  %7945 = vpow2.f32 %v6215_v20  ;;  %v6221_v52 = vmul.f32 -1.442695, %v3228_v33  ;;  %v6888_v10 = vpop.f32.mrb[90].mxu1 }
 0x5ab   : > { %v3366_v15 = vadd.f32 1.0, %v7934_v23  ;;  %7947 = vpow2.f32 %v6224_v43  ;;  %v3237_v28 = vadd.f32 %v6888_v10, %v6150_v39  ;;  %v3173_v49 = vpop.f32.mrb[91].mxu1 }
 0x5ac   : > { %7949 = vrcp.f32 %v3369_v57  ;;  %v3234_v40 = vadd.f32 %v6147_v63, %v3173_v49 }
 0x5ad   : > { %v7936_v12 = vpop.eup %7935  ;;  %7951 = vrcp.f32 %v3366_v15  ;;  %v6230_v27 = vmul.f32 -1.442695, %v3237_v28 }
 0x5ae   : > { %v7938_v42 = vpop.eup %7937  ;;  %v3375_v11 = vadd.f32 1.0, %v7936_v12  ;;  %7953 = vpow2.f32 %v6221_v52  ;;  %v6227_v31 = vmul.f32 -1.442695, %v3234_v40  ;;  %v6891_v13 = vpop.f32.mrb[92].mxu1 }
 0x5af   : > { %v3372_v59 = vadd.f32 1.0, %v7938_v42  ;;  %7955 = vpow2.f32 %v6230_v27  ;;  %v3243_v6 = vadd.f32 %v6891_v13, %v6156_v61  ;;  %v3183_v1 = vpop.f32.mrb[93].mxu1 }
 0x5b0   : > { %7957 = vrcp.f32 %v3375_v11  ;;  %v3240_v44 = vadd.f32 %v6153_v48, %v3183_v1 }
 0x5b1   : > { %v7940_v8 = vpop.eup %7939  ;;  %7959 = vrcp.f32 %v3372_v59 }
 0x5b2   : > { %v7942_v30 = vpop.eup %7941  ;;  %v3381_v53 = vadd.f32 1.0, %v7940_v8  ;;  %7961 = vpow2.f32 %v6227_v31  ;;  %v6894_v60 = vpop.f32.mrb[94].mxu1 }
 0x5b3   : > { %v7944_v20 = vpop.eup %7943  ;;  %7963 = vtanh.f32 %v3243_v6  ;;  %v3249_v35 = vadd.f32 %v6894_v60, %v6162_v54  ;;  %v3193_v24 = vpop.f32.mrb[95].mxu1 }
 0x5b4   : > { %v7946_v29 = vpop.eup %7945  ;;  %7965 = vrcp.f32 %v3381_v53  ;;  %v3246_v39 = vadd.f32 %v6159_v37, %v3193_v24 }
 0x5b5   : > { %v7948_v38 = vpop.eup %7947  ;;  %v3378_v33 = vadd.f32 1.0, %v7946_v29  ;;  %7967 = vtanh.f32 %v3240_v44 }
 0x5b6   : > { %v7950_v2 = vpop.eup %7949  ;;  %7969 = vtanh.f32 %v3249_v35  ;;  %v3387_v28 = vadd.f32 1.0, %v7948_v38 }
 0x5b7   : > { %v7952_v43 = vpop.eup %7951  ;;  %7971 = vrcp.f32 %v3378_v33 }
 0x5b8   : > { %v7954_v63 = vpop.eup %7953  ;;  %7973 = vtanh.f32 %v3246_v39 }
 0x5b9   : > { %v7956_v23 = vpop.eup %7955  ;;  %v3384_v40 = vadd.f32 1.0, %v7954_v63  ;;  %7975 = vrcp.f32 %v3387_v28 }
 0x5ba   : > { %v7958_v57 = vpop.eup %7957  ;;  %v3393_v31 = vadd.f32 1.0, %v7956_v23  ;;  %v6122_v23 = vld [vmem:[%s9016_s6 + $0x638] sm:$0xff] }
 0x5bb   : > { %v7960_v52 = vpop.eup %7959  ;;  %v3483_v15 = vmul.f32 %v7958_v57, %v10068_v7  ;;  %7977 = vrcp.f32 %v3384_v40 }
 0x5bc   : > { %v7962_v10 = vpop.eup %7961  ;;  %v3480_v12 = vmul.f32 %v7960_v52, %v10072_v21  ;;  %v6124_v52 = vld [vmem:[%s9016_s6 + $0x648] sm:$0xff] }
 0x5bd   : > { %v7964_v49 = vpop.eup %7963  ;;  %v3390_v54 = vadd.f32 1.0, %v7962_v10 }
 0x5be   : > { %v7966_v61 = vpop.eup %7965  ;;  %v3495_v27 = vmul.f32 %v7964_v49, %v7942_v30  ;;  %v6125_v49 = vld [vmem:[%s9016_s6 + $0x650] sm:$0xff] }
 0x5bf   : > { %v7968_v42 = vpop.eup %7967  ;;  %v3489_v11 = vmul.f32 %v7966_v61, %v10074_v4 }
 0x5c0   : > { %v7970_v13 = vpop.eup %7969  ;;  %v10344_v48 = vadd.f32 %v3495_v27, %v3483_v15  ;;  %v3492_v59 = vmul.f32 %v7968_v42, %v7944_v20  ;;  %v6127_v42 = vld [vmem:[%s9016_s6 + $0x660] sm:$0xff] }
 0x5c1   : > { %v7972_v6 = vpop.eup %7971  ;;  %v3501_v1 = vmul.f32 %v7970_v13, %v7950_v2 }
 0x5c2   : > { %v3486_v7 = vmul.f32 %v7972_v6, %v10078_v25  ;;  %7979 = vtanh.f32 %v10344_v48  ;;  %v10348_v8 = vadd.f32 %v3492_v59, %v3480_v12  ;;  %v7974_v21 = vpop.eup %7973  ;;  %v6128_v6 = vld [vmem:[%s9016_s6 + $0x668] sm:$0xff] }
 0x5c3   : > { %7981 = vrcp.f32 %v3393_v31  ;;  %v10350_v44 = vadd.f32 %v3501_v1, %v3489_v11  ;;  %v3498_v4 = vmul.f32 %v7974_v21, %v7952_v43  ;;  %v7976_v25 = vpop.eup %7975 }
 0x5c4   : > { %7983 = vtanh.f32 %v10348_v8 }
 0x5c5   : > { %7985 = vtanh.f32 %v10350_v44  ;;  %v10354_v30 = vadd.f32 %v3498_v4, %v3486_v7  ;;  %v7978_v53 = vpop.eup %7977  ;;  %v6130_v4 = vld [vmem:[%s9016_s6 + $0x678] sm:$0xff] }
 0x5c6   : > { %7987 = vrcp.f32 %v3390_v54 }
 0x5c7   : > { %7989 = vtanh.f32 %v10354_v30 }
 0x5cc   : > { %v7980_v60 = vpop.eup %7979 }
 0x5cd   : > { %v7982_v37 = vpop.eup %7981  ;;  %v3531_v20 = vmul.f32 %v7980_v60, %v7976_v25 }
 0x5ce   : > { %v7984_v35 = vpop.eup %7983 }
 0x5cf   : > { %v7986_v24 = vpop.eup %7985  ;;  %v3528_v29 = vmul.f32 %v7984_v35, %v7978_v53 }
 0x5d0   : > { %v7988_v38 = vpop.eup %7987  ;;  %v3537_v39 = vmul.f32 %v7986_v24, %v7982_v37  ;;  %v6131_v37 = vld [vmem:[%s9016_s6 + $0x680] sm:$0xff] }
 0x5d1   : > { %v7063_v33 = vpack.c.bf16 %v3531_v20, %v3528_v29  ;;  %v7990_v2 = vpop.eup %7989  ;;  %v6133_v29 = vld [vmem:[%s9016_s6 + $0x690] sm:$0xff] }
 0x5d2   : > { %v3534_v43 = vmul.f32 %v7990_v2, %v7988_v38  ;;  %v6134_v2 = vld [vmem:[%s9016_s6 + $0x698] sm:$0xff] }
 0x5d3   : > { %7064 = vmatprep.subr.bf16.mxu0 %v7063_v33 }
 0x5d4   : > { %7066 = vmatpush3.bf16.msra.mxu0 %v7063_v33  ;;  %v7067_v63 = vpack.c.bf16 %v3537_v39, %v3534_v43 }
 0x5d6   : > { %7068 = vmatprep.subr.bf16.mxu0 %v7067_v63 }
 0x5d8   : > { %7070 = vmatpush3.bf16.msra.mxu0 %v7067_v63 }
 0x5db   : > { %6904 = vmatmul.mubr.msk.f32.vlgmr.msra.gmra.mrb[112].mxu0 %vm228_vm0, %v10208_v3 }
 0x5dc   : > { %6906 = vmatprep.mubr.msk.f32.mxu0 %vm228_vm0, %v10216_v22 }
 0x5df   : > { %6907 = vmatmul.mubr.msk.f32.gmra.mrb[114].mxu0 %vm228_vm0, %v10224_v46  ;;  %v6115_v46 = vld [vmem:[%s9016_s6 + $0x600] sm:$0xff] }
 0x5e0   : > { %6909 = vmatprep.mubr.msk.f32.mxu0 %vm228_vm0, %v10232_v18 }
 0x5e3   : > { %6910 = vmatmul.mubr.msk.f32.gmra.mrb[116].mxu0 %vm228_vm0, %v10240_v14 }
 0x5e4   : > { %6912 = vmatprep.mubr.msk.f32.mxu0 %vm228_vm0, %v10248_v5  ;;  %v6116_v5 = vld [vmem:[%s9016_s6 + $0x608] sm:$0xff] }
 0x5e7   : > { %6913 = vmatmul.mubr.msk.f32.gmra.mrb[118].mxu0 %vm228_vm0, %v10256_v17 }
 0x5e8   : > { %6915 = vmatprep.mubr.msk.f32.mxu0 %vm228_vm0, %v10264_v50  ;;  %v6118_v50 = vld [vmem:[%s9016_s6 + $0x618] sm:$0xff] }
 0x5eb   : > { %6916 = vmatmul.mubr.msk.f32.gmra.mrb[120].mxu0 %vm228_vm0, %v10272_v58 }
 0x5ec   : > { %6918 = vmatprep.mubr.msk.f32.mxu0 %vm228_vm0, %v10280_v32  ;;  %v6119_v32 = vld [vmem:[%s9016_s6 + $0x620] sm:$0xff] }
 0x5ef   : > { %6919 = vmatmul.mubr.msk.f32.gmra.mrb[122].mxu0 %vm228_vm0, %v10288_v56 }
 0x5f0   : > { %6921 = vmatprep.mubr.msk.f32.mxu0 %vm228_vm0, %v10296_v16 }
 0x5f2   : > { %v2962_v3 = vpop.f32.mrb[80].mxu0 }
 0x5f3   : > { %6922 = vmatmul.mubr.msk.f32.gmra.mrb[124].mxu0 %vm228_vm0, %v10304_v51  ;;  %v2964_v22 = vpop.f32.mrb[81].mxu0  ;;  %v3202_v14 = vadd.f32 %v6115_v46, %v2962_v3  ;;  %v6121_v51 = vld [vmem:[%s9016_s6 + $0x630] sm:$0xff] }
 0x5f4   : > { %6924 = vmatprep.mubr.msk.f32.mxu0 %vm228_vm0, %v10312_v45  ;;  %v3203_v58 = vadd.f32 %v6116_v5, %v2964_v22 }
 0x5f5   : > { %v6195_v16 = vmul.f32 -1.442695, %v3202_v14 }
 0x5f6   : > { %v2968_v18 = vpop.f32.mrb[82].mxu0  ;;  %v6196_v10 = vmul.f32 -1.442695, %v3203_v58 }
 0x5f7   : > { %6925 = vmatmul.mubr.msk.f32.gmra.mrb[126].mxu0 %vm228_vm0, %v10320_v41  ;;  %v2970_v17 = vpop.f32.mrb[83].mxu0  ;;  %v3205_v41 = vadd.f32 %v6118_v50, %v2968_v18  ;;  %7991 = vpow2.f32 %v6195_v16 }
 0x5f8   : > { %4342 = vmatprep.mubr.f32.mxu0 %v8893_v0  ;;  %v3206_v57 = vadd.f32 %v6119_v32, %v2970_v17  ;;  %7993 = vpow2.f32 %v6196_v10 }
 0x5f9   : > { %v6198_v12 = vmul.f32 -1.442695, %v3205_v41  ;;  %v6136_v41 = vld [vmem:[%s9016_s6 + $0x6a8] sm:$0xff] }
 0x5fa   : > { %v2974_v56 = vpop.f32.mrb[84].mxu0  ;;  %v6199_v11 = vmul.f32 -1.442695, %v3206_v57 }
 0x5fb   : > { %v2976_v45 = vpop.f32.mrb[85].mxu0  ;;  %v3208_v15 = vadd.f32 %v6121_v51, %v2974_v56  ;;  %7995 = vpow2.f32 %v6198_v12 }
 0x5fc   : > { %v3209_v40 = vadd.f32 %v6122_v23, %v2976_v45  ;;  %7997 = vpow2.f32 %v6199_v11 }
 0x5fd   : > { %v6201_v13 = vmul.f32 -1.442695, %v3208_v15  ;;  %v6137_v15 = vld [vmem:[%s9016_s6 + $0x6b0] sm:$0xff] }
 0x5fe   : > { %v2980_v28 = vpop.f32.mrb[86].mxu0  ;;  %v6202_v1 = vmul.f32 -1.442695, %v3209_v40 }
 0x5ff   : > { %v2982_v61 = vpop.f32.mrb[87].mxu0  ;;  %v3211_v27 = vadd.f32 %v6124_v52, %v2980_v28  ;;  %7999 = vpow2.f32 %v6201_v13  ;;  %v6139_v13 = vld [vmem:[%s9016_s6 + $0x6c0] sm:$0xff] }
 0x600   : > { %v3212_v31 = vadd.f32 %v6125_v49, %v2982_v61  ;;  %8001 = vpow2.f32 %v6202_v1 }
 0x601   : > { %v6204_v21 = vmul.f32 -1.442695, %v3211_v27  ;;  %v7992_v38 = vpop.eup %7991 }
 0x602   : > { %v2986_v59 = vpop.f32.mrb[88].mxu0  ;;  %v6205_v25 = vmul.f32 -1.442695, %v3212_v31  ;;  %v7994_v46 = vpop.eup %7993  ;;  %v3358_v18 = vadd.f32 1.0, %v7992_v38 }
 0x603   : > { %v3214_v7 = vadd.f32 %v6127_v42, %v2986_v59  ;;  %v2988_v54 = vpop.f32.mrb[89].mxu0  ;;  %8003 = vpow2.f32 %v6204_v21  ;;  %v3359_v56 = vadd.f32 1.0, %v7994_v46 }
 0x604   : > { %v3215_v53 = vadd.f32 %v6128_v6, %v2988_v54  ;;  %8005 = vpow2.f32 %v6205_v25  ;;  %v6140_v6 = vld [vmem:[%s9016_s6 + $0x6c8] sm:$0xff] }
 0x605   : > { %v6207_v20 = vmul.f32 -1.442695, %v3214_v7  ;;  %v7996_v17 = vpop.eup %7995 }
 0x606   : > { %v2992_v60 = vpop.f32.mrb[90].mxu0  ;;  %v6208_v33 = vmul.f32 -1.442695, %v3215_v53  ;;  %v7998_v32 = vpop.eup %7997  ;;  %v3361_v57 = vadd.f32 1.0, %v7996_v17 }
 0x607   : > { %v3217_v35 = vadd.f32 %v6130_v4, %v2992_v60  ;;  %v2994_v24 = vpop.f32.mrb[91].mxu0  ;;  %8007 = vpow2.f32 %v6207_v20  ;;  %v3362_v10 = vadd.f32 1.0, %v7998_v32  ;;  %v6142_v20 = vld [vmem:[%s9016_s6 + $0x6d8] sm:$0xff] }
 0x608   : > { %v3218_v39 = vadd.f32 %v6131_v37, %v2994_v24  ;;  %8009 = vpow2.f32 %v6208_v33 }
 0x609   : > { %v6210_v43 = vmul.f32 -1.442695, %v3217_v35  ;;  %v8000_v51 = vpop.eup %7999 }
 0x60a   : > { %v2998_v63 = vpop.f32.mrb[92].mxu0  ;;  %v6211_v5 = vmul.f32 -1.442695, %v3218_v39  ;;  %v8002_v23 = vpop.eup %8001  ;;  %v3364_v40 = vadd.f32 1.0, %v8000_v51  ;;  %v6143_v39 = vld [vmem:[%s9016_s6 + $0x6e0] sm:$0xff] }
 0x60b   : > { %v3220_v3 = vadd.f32 %v6133_v29, %v2998_v63  ;;  %v3000_v22 = vpop.f32.mrb[93].mxu0  ;;  %8011 = vpow2.f32 %v6210_v43  ;;  %v3365_v27 = vadd.f32 1.0, %v8002_v23 }
 0x60c   : > { %v3221_v14 = vadd.f32 %v6134_v2, %v3000_v22  ;;  %8013 = vrcp.f32 %v3358_v18  ;;  %v6145_v22 = vld [vmem:[%s9016_s6 + $0x6f0] sm:$0xff] }
 0x60d   : > { %v6213_v50 = vmul.f32 -1.442695, %v3220_v3  ;;  %8015 = vpow2.f32 %v6211_v5  ;;  %v8004_v52 = vpop.eup %8003 }
 0x60e   : > { %v3004_v58 = vpop.f32.mrb[94].mxu0  ;;  %v6214_v45 = vmul.f32 -1.442695, %v3221_v14  ;;  %v8006_v49 = vpop.eup %8005  ;;  %v3367_v11 = vadd.f32 1.0, %v8004_v52  ;;  %v6151_v52 = vld [vmem:[%s9016_s6 + $0x720] sm:$0xff] }
 0x60f   : > { %v3006_v16 = vpop.f32.mrb[95].mxu0  ;;  %8017 = vpow2.f32 %v6213_v50  ;;  %v3223_v61 = vadd.f32 %v6136_v41, %v3004_v58  ;;  %v3368_v59 = vadd.f32 1.0, %v8006_v49  ;;  %v6148_v49 = vld [vmem:[%s9016_s6 + $0x708] sm:$0xff] }
 0x610   : > { %8019 = vrcp.f32 %v3359_v56  ;;  %v3224_v31 = vadd.f32 %v6137_v15, %v3006_v16  ;;  %v6146_v16 = vld [vmem:[%s9016_s6 + $0x6f8] sm:$0xff] }
 0x611   : > { %8021 = vpow2.f32 %v6214_v45  ;;  %v8008_v42 = vpop.eup %8007  ;;  %v6216_v54 = vmul.f32 -1.442695, %v3223_v61  ;;  %v6152_v61 = vld [vmem:[%s9016_s6 + $0x728] sm:$0xff] }
 0x612   : > { %v3010_v28 = vpop.f32.mrb[96].mxu0  ;;  %8023 = vrcp.f32 %v3361_v57  ;;  %v8010_v7 = vpop.eup %8009  ;;  %v3370_v25 = vadd.f32 1.0, %v8008_v42  ;;  %v6217_v60 = vmul.f32 -1.442695, %v3224_v31  ;;  %v6149_v42 = vld [vmem:[%s9016_s6 + $0x710] sm:$0xff] }
 0x613   : > { %v3012_v12 = vpop.f32.mrb[97].mxu0  ;;  %8025 = vrcp.f32 %v3362_v10  ;;  %v3226_v53 = vadd.f32 %v6139_v13, %v3010_v28  ;;  %v3371_v24 = vadd.f32 1.0, %v8010_v7 }
 0x614   : > { %8027 = vrcp.f32 %v3364_v40  ;;  %v3227_v37 = vadd.f32 %v6140_v6, %v3012_v12 }
 0x615   : > { %v8012_v4 = vpop.eup %8011  ;;  %8029 = vrcp.f32 %v3365_v27  ;;  %v6219_v63 = vmul.f32 -1.442695, %v3226_v53 }
 0x616   : > { %v3016_v1 = vpop.f32.mrb[98].mxu0  ;;  %8031 = vrcp.f32 %v3367_v11  ;;  %v10407_v35 = vpop.eup %8013  ;;  %v3373_v33 = vadd.f32 1.0, %v8012_v4  ;;  %v6220_v18 = vmul.f32 -1.442695, %v3227_v37 }
 0x617   : > { %v3018_v21 = vpop.f32.mrb[99].mxu0  ;;  %8033 = vrcp.f32 %v3368_v59  ;;  %v8016_v38 = vpop.eup %8015  ;;  %v3229_v3 = vadd.f32 %v6142_v20, %v3016_v1  ;;  %v6154_v59 = vld [vmem:[%s9016_s6 + $0x738] sm:$0xff] }
 0x618   : > { %8035 = vpow2.f32 %v6216_v54  ;;  %v3374_v5 = vadd.f32 1.0, %v8016_v38  ;;  %v3230_v17 = vadd.f32 %v6143_v39, %v3018_v21  ;;  %v6157_v39 = vld [vmem:[%s9016_s6 + $0x750] sm:$0xff] }
 0x619   : > { %v8018_v43 = vpop.eup %8017  ;;  %8037 = vrcp.f32 %v3370_v25  ;;  %v6222_v41 = vmul.f32 -1.442695, %v3229_v3 }
 0x61a   : > { %v3022_v29 = vpop.f32.mrb[100].mxu0  ;;  %v10411_v46 = vpop.eup %8019  ;;  %8039 = vpow2.f32 %v6217_v60  ;;  %v3376_v32 = vadd.f32 1.0, %v8018_v43  ;;  %v6223_v15 = vmul.f32 -1.442695, %v3230_v17  ;;  %v6158_v17 = vld [vmem:[%s9016_s6 + $0x758] sm:$0xff] }
 0x61b   : > { %v3024_v2 = vpop.f32.mrb[101].mxu0  ;;  %v8022_v14 = vpop.eup %8021  ;;  %8041 = vrcp.f32 %v3371_v24  ;;  %v3232_v56 = vadd.f32 %v6145_v22, %v3022_v29  ;;  %v6155_v29 = vld [vmem:[%s9016_s6 + $0x740] sm:$0xff] }
 0x61c   : > { %v10413_v58 = vpop.eup %8023  ;;  %8043 = vrcp.f32 %v3373_v33  ;;  %v3377_v57 = vadd.f32 1.0, %v8022_v14  ;;  %v3233_v28 = vadd.f32 %v6146_v16, %v3024_v2 }
 0x61d   : > { %v10416_v45 = vpop.eup %8025  ;;  %8045 = vpow2.f32 %v6219_v63  ;;  %v6225_v27 = vmul.f32 -1.442695, %v3232_v56  ;;  %v6160_v56 = vld [vmem:[%s9016_s6 + $0x768] sm:$0xff] }
 0x61e   : > { %v3028_v50 = vpop.f32.mrb[102].mxu0  ;;  %v10418_v23 = vpop.eup %8027  ;;  %8047 = vpow2.f32 %v6220_v18  ;;  %v6226_v21 = vmul.f32 -1.442695, %v3233_v28 }
 0x61f   : > { %v3030_v51 = vpop.f32.mrb[103].mxu0  ;;  %v10421_v10 = vpop.eup %8029  ;;  %8049 = vrcp.f32 %v3374_v5  ;;  %v3235_v1 = vadd.f32 %v6148_v49, %v3028_v50 }
 0x620   : > { %v10425_v12 = vpop.eup %8031  ;;  %8051 = vrcp.f32 %v3376_v32  ;;  %v3236_v4 = vadd.f32 %v6149_v42, %v3030_v51 }
 0x621   : > { %v10428_v31 = vpop.eup %8033  ;;  %8053 = vpow2.f32 %v6222_v41  ;;  %v6228_v33 = vmul.f32 -1.442695, %v3235_v1 }
 0x622   : > { %v3034_v40 = vpop.f32.mrb[104].mxu0  ;;  %v8036_v6 = vpop.eup %8035  ;;  %8055 = vrcp.f32 %v3377_v57  ;;  %v6229_v43 = vmul.f32 -1.442695, %v3236_v4  ;;  %v6161_v57 = vld [vmem:[%s9016_s6 + $0x770] sm:$0xff] }
 0x623   : > { %v3036_v11 = vpop.f32.mrb[105].mxu0  ;;  %v3238_v13 = vadd.f32 %v6151_v52, %v3034_v40  ;;  %v8038_v54 = vpop.eup %8037  ;;  %8057 = vpow2.f32 %v6223_v15  ;;  %v3379_v24 = vadd.f32 1.0, %v8036_v6 }
 0x624   : > { %v3239_v7 = vadd.f32 %v6152_v61, %v3036_v11  ;;  %v8040_v53 = vpop.eup %8039  ;;  %8059 = vpow2.f32 %v6225_v27 }
 0x625   : > { %v8042_v20 = vpop.eup %8041  ;;  %8061 = vtanh.f32 %v3238_v13  ;;  %v3380_v32 = vadd.f32 1.0, %v8040_v53 }
 0x626   : > { %v3040_v25 = vpop.f32.mrb[106].mxu0  ;;  %v8044_v38 = vpop.eup %8043  ;;  %8063 = vtanh.f32 %v3239_v7 }
 0x627   : > { %v3241_v60 = vadd.f32 %v6154_v59, %v3040_v25  ;;  %v3042_v37 = vpop.f32.mrb[107].mxu0  ;;  %v8046_v2 = vpop.eup %8045  ;;  %8065 = vpow2.f32 %v6226_v21  ;;  %v3478_v59 = vmul.f32 %v8038_v54, %v10164_v26  ;;  %v3479_v21 = vmul.f32 %v8042_v20, %v10167_v55 }
 0x628   : > { %v8048_v3 = vpop.eup %8047  ;;  %v3242_v22 = vadd.f32 %v6155_v29, %v3042_v37  ;;  %v3382_v51 = vadd.f32 1.0, %v8046_v2 }
 0x629   : > { %8067 = vtanh.f32 %v3241_v60  ;;  %v8050_v14 = vpop.eup %8049  ;;  %v3383_v11 = vadd.f32 1.0, %v8048_v3 }
 0x62a   : > { %v3046_v63 = vpop.f32.mrb[108].mxu0  ;;  %8069 = vrcp.f32 %v3379_v24  ;;  %v8052_v50 = vpop.eup %8051  ;;  %v3481_v24 = vmul.f32 %v8044_v38, %v10171_v9  ;;  %v3482_v2 = vmul.f32 %v8050_v14, %v10179_v19 }
 0x62b   : > { %v3048_v18 = vpop.f32.mrb[109].mxu0  ;;  %v3244_v5 = vadd.f32 %v6157_v39, %v3046_v63  ;;  %8071 = vpow2.f32 %v6228_v33  ;;  %v8054_v16 = vpop.eup %8053 }
 0x62c   : > { %8073 = vpow2.f32 %v6229_v43  ;;  %v8056_v52 = vpop.eup %8055  ;;  %v3245_v15 = vadd.f32 %v6158_v17, %v3048_v18  ;;  %v3385_v6 = vadd.f32 1.0, %v8054_v16 }
 0x62d   : > { %8075 = vtanh.f32 %v3242_v22  ;;  %v8058_v49 = vpop.eup %8057 }
 0x62e   : > { %v3052_v41 = vpop.f32.mrb[110].mxu0  ;;  %8077 = vtanh.f32 %v3244_v5  ;;  %v8060_v61 = vpop.eup %8059  ;;  %v3386_v53 = vadd.f32 1.0, %v8058_v49 }
 0x62f   : > { %v3054_v28 = vpop.f32.mrb[111].mxu0  ;;  %v3247_v40 = vadd.f32 %v6160_v56, %v3052_v41  ;;  %8079 = vrcp.f32 %v3380_v32  ;;  %v8062_v42 = vpop.eup %8061  ;;  %v3388_v29 = vadd.f32 1.0, %v8060_v61 }
 0x630   : > { %v3248_v27 = vadd.f32 %v6161_v57, %v3054_v28  ;;  %8081 = vrcp.f32 %v3382_v51  ;;  %v8064_v13 = vpop.eup %8063  ;;  %v3490_v1 = vmul.f32 %v8062_v42, %v10407_v35 }
 0x631   : > { %8083 = vtanh.f32 %v3245_v15  ;;  %v8066_v7 = vpop.eup %8065  ;;  %v3491_v4 = vmul.f32 %v8064_v13, %v10411_v46 }
 0x632   : > { %8085 = vtanh.f32 %v3247_v40  ;;  %v10440_v60 = vadd.f32 %v3490_v1, %v3478_v59  ;;  %v3389_v33 = vadd.f32 1.0, %v8066_v7 }
 0x633   : > { %v8068_v25 = vpop.eup %8067  ;;  %8087 = vtanh.f32 %v3248_v27  ;;  %v10443_v26 = vadd.f32 %v3491_v4, %v3479_v21 }
 0x634   : > { %v8070_v37 = vpop.eup %8069  ;;  %8089 = vrcp.f32 %v3383_v11  ;;  %v3493_v35 = vmul.f32 %v8068_v25, %v10413_v58  ;;  %v3484_v58 = vmul.f32 %v8052_v50, %v10181_v34 }
 0x635   : > { %v8072_v54 = vpop.eup %8071  ;;  %8091 = vrcp.f32 %v3385_v6 }
 0x636   : > { %v8074_v55 = vpop.eup %8073  ;;  %8093 = vtanh.f32 %v10440_v60  ;;  %v10447_v46 = vadd.f32 %v3493_v35, %v3481_v24  ;;  %v3391_v43 = vadd.f32 1.0, %v8072_v54  ;;  %v8743_v35 = vld [vmem:[%s11260_s1] sm:$0xff]  ;;  %v10484_v54 = vld [vmem:[%s11260_s1 + $0x8] sm:$0xff] }
 0x637   : > { %v8076_v20 = vpop.eup %8075  ;;  %8095 = vrcp.f32 %v3386_v53  ;;  %v3392_v22 = vadd.f32 1.0, %v8074_v55  ;;  %v10500_v55 = vld [vmem:[%s11260_s1 + $0x18] sm:$0xff] }
 0x638   : > { %v8078_v39 = vpop.eup %8077  ;;  %8097 = vtanh.f32 %v10447_v46  ;;  %v3494_v9 = vmul.f32 %v8076_v20, %v10416_v45  ;;  %v3485_v45 = vmul.f32 %v8056_v52, %v10189_v47  ;;  %v10508_v20 = vld [vmem:[%s11260_s1 + $0x20] sm:$0xff] }
 0x639   : > { %v8080_v38 = vpop.eup %8079  ;;  %8099 = vrcp.f32 %v3388_v29  ;;  %v3496_v63 = vmul.f32 %v8078_v39, %v10418_v23  ;;  %v3487_v23 = vmul.f32 %v8070_v37, %v10193_v62  ;;  %v10492_v29 = vld [vmem:[%s11260_s1 + $0x10] sm:$0xff] }
 0x63a   : > { %v8082_v3 = vpop.eup %8081  ;;  %8101 = vtanh.f32 %v10443_v26  ;;  %v10455_v18 = vadd.f32 %v3494_v9, %v3482_v2  ;;  %v3488_v56 = vmul.f32 %v8080_v38, %v10196_v36  ;;  %v10524_v39 = vld [vmem:[%s11260_s1 + $0x30] sm:$0xff]  ;;  %v10532_v2 = vld [vmem:[%s11260_s1 + $0x38] sm:$0xff]  ;;  %v10540_v9 = vld [vmem:[%s11260_s1 + $0x40] sm:$0xff] }
 0x63b   : > { %v8084_v5 = vpop.eup %8083  ;;  %8103 = vrcp.f32 %v3389_v33  ;;  %v10457_v19 = vadd.f32 %v3496_v63, %v3484_v58  ;;  %v10516_v33 = vld [vmem:[%s11260_s1 + $0x28] sm:$0xff]  ;;  %v10556_v58 = vld [vmem:[%s11260_s1 + $0x50] sm:$0xff]  ;;  %v10572_v63 = vld [vmem:[%s11260_s1 + $0x60] sm:$0xff] }
 0x63c   : > { %v8086_v14 = vpop.eup %8085  ;;  %8105 = vtanh.f32 %v10455_v18  ;;  %v3497_v34 = vmul.f32 %v8084_v5, %v10421_v10  ;;  %v10548_v38 = vld [vmem:[%s11260_s1 + $0x48] sm:$0xff]  ;;  %v10596_v5 = vld [vmem:[%s11260_s1 + $0x78] sm:$0xff] }
 0x63d   : > { %v8088_v17 = vpop.eup %8087  ;;  %8107 = vrcp.f32 %v3391_v43  ;;  %v3499_v50 = vmul.f32 %v8086_v14, %v10425_v12  ;;  %v10564_v43 = vld [vmem:[%s11260_s1 + $0x58] sm:$0xff]  ;;  %v6236_v14 = vld [vmem:[%s9016_s6 + $0x7a8] sm:$0xff] }
 0x63e   : > { %v8090_v32 = vpop.eup %8089  ;;  %8109 = vrcp.f32 %v3392_v22  ;;  %v10465_v16 = vadd.f32 %v3497_v34, %v3485_v45  ;;  %v3500_v51 = vmul.f32 %v8088_v17, %v10428_v31  ;;  %v10588_v22 = vld [vmem:[%s11260_s1 + $0x70] sm:$0xff] }
 0x63f   : > { %v8092_v41 = vpop.eup %8091  ;;  %8111 = vtanh.f32 %v10457_v19  ;;  %v10469_v47 = vadd.f32 %v3499_v50, %v3487_v23  ;;  %v6233_v45 = vld [vmem:[%s9016_s6 + $0x790] sm:$0xff] }
 0x640   : > { %v8094_v10 = vpop.eup %8093  ;;  %8113 = vtanh.f32 %v10465_v16  ;;  %v10472_v62 = vadd.f32 %v3500_v51, %v3488_v56  ;;  %v6239_v51 = vld [vmem:[%s9016_s6 + $0x7c0] sm:$0xff] }
 0x641   : > { %v8096_v57 = vpop.eup %8095  ;;  %8115 = vtanh.f32 %v10469_v47  ;;  %v3526_v52 = vmul.f32 %v8094_v10, %v8082_v3  ;;  %v10580_v3 = vld [vmem:[%s11260_s1 + $0x68] sm:$0xff] }
 0x642   : > { %v8098_v12 = vpop.eup %8097  ;;  %8117 = vtanh.f32 %v10472_v62 }
 0x643   : > { %v8100_v36 = vpop.eup %8099  ;;  %v3529_v15 = vmul.f32 %v8098_v12, %v8092_v41 }
 0x644   : > { %v8102_v31 = vpop.eup %8101 }
 0x645   : > { %v8104_v28 = vpop.eup %8103  ;;  %v7057_v49 = vpack.c.bf16 %v3529_v15, %v3526_v52  ;;  %v3527_v27 = vmul.f32 %v8102_v31, %v8090_v32  ;;  %v6242_v32 = vld [vmem:[%s9016_s6 + $0x7d8] sm:$0xff]  ;;  %v6248_v52 = vld [vmem:[%s9016_s6 + $0x808] sm:$0xff]  ;;  %v6245_v31 = vld [vmem:[%s9016_s6 + $0x7f0] sm:$0xff] }
 0x646   : > { %v8106_v40 = vpop.eup %8105 }
 0x647   : > { %v8108_v61 = vpop.eup %8107  ;;  %v3530_v42 = vmul.f32 %v8106_v40, %v8096_v57 }
 0x648   : > { %v8110_v11 = vpop.eup %8109 }
 0x649   : > { %v8112_v13 = vpop.eup %8111  ;;  %v7055_v59 = vpack.c.bf16 %v3530_v42, %v3527_v27  ;;  %v6254_v42 = vld [vmem:[%s9016_s6 + $0x838] sm:$0xff] }
 0x64a   : > { %v8114_v6 = vpop.eup %8113  ;;  %v3532_v21 = vmul.f32 %v8112_v13, %v8100_v36  ;;  %v6251_v13 = vld [vmem:[%s9016_s6 + $0x820] sm:$0xff] }
 0x64b   : > { %v8116_v1 = vpop.eup %8115  ;;  %7056 = vmatprep.subr.bf16.mxu1 %v7055_v59  ;;  %v3533_v25 = vmul.f32 %v8114_v6, %v8104_v28 }
 0x64c   : > { %v8118_v7 = vpop.eup %8117  ;;  %7058 = vmatpush1.bf16.msra.mxu1 %v7057_v49  ;;  %v3535_v4 = vmul.f32 %v8116_v1, %v8108_v61 }
 0x64d   : > { %v3536_v53 = vmul.f32 %v8118_v7, %v8110_v11 }
 0x64e   : > { %v7061_v37 = vpack.c.bf16 %v3535_v4, %v3532_v21  ;;  %v6260_v4 = vld [vmem:[%s9016_s6 + $0x868] sm:$0xff] }
 0x64f   : > { %v7059_v24 = vpack.c.bf16 %v3536_v53, %v3533_v25 }
 0x651   : > { %7060 = vmatprep.subr.bf16.mxu1 %v7059_v24 }
 0x652   : > { %7062 = vmatpush1.bf16.msra.mxu1 %v7061_v37  ;;  %v6257_v37 = vld [vmem:[%s9016_s6 + $0x850] sm:$0xff] }
 0x655   : > { %6279 = vmatmul.mubr.msk.f32.vlgmr.msra.gmra.mrb[96].mxu1 %vm228_vm0, %v8743_v35 }
 0x656   : > { %3657 = vmatprep.mubr.f32.mxu1 %v8893_v0 }
 0x659   : > { %6280 = vmatmul.mubr.msk.f32.gmra.mrb[98].mxu1 %vm228_vm0, %v10484_v54 }
 0x65a   : > { %3663 = vmatprep.mubr.f32.mxu1 %v8893_v0 }
 0x65d   : > { %6281 = vmatmul.mubr.msk.f32.gmra.mrb[100].mxu1 %vm228_vm0, %v10492_v29 }
 0x65e   : > { %3669 = vmatprep.mubr.f32.mxu1 %v8893_v0 }
 0x661   : > { %6282 = vmatmul.mubr.msk.f32.gmra.mrb[102].mxu1 %vm228_vm0, %v10500_v55 }
 0x662   : > { %3675 = vmatprep.mubr.f32.mxu1 %v8893_v0 }
 0x665   : > { %6283 = vmatmul.mubr.msk.f32.gmra.mrb[104].mxu1 %vm228_vm0, %v10508_v20 }
 0x666   : > { %3681 = vmatprep.mubr.f32.mxu1 %v8893_v0 }
 0x669   : > { %6284 = vmatmul.mubr.msk.f32.gmra.mrb[106].mxu1 %vm228_vm0, %v10516_v33 }
 0x66a   : > { %3687 = vmatprep.mubr.f32.mxu1 %v8893_v0 }
 0x66d   : > { %6285 = vmatmul.mubr.msk.f32.gmra.mrb[108].mxu1 %vm228_vm0, %v10524_v39 }
 0x66e   : > { %3693 = vmatprep.mubr.f32.mxu1 %v8893_v0 }
 0x671   : > { %6286 = vmatmul.mubr.msk.f32.gmra.mrb[110].mxu1 %vm228_vm0, %v10532_v2 }
 0x672   : > { %3699 = vmatprep.mubr.f32.mxu1 %v8893_v0 }
 0x675   : > { %6287 = vmatmul.mubr.msk.f32.gmra.mrb[112].mxu1 %vm228_vm0, %v10540_v9 }
 0x676   : > { %3705 = vmatprep.mubr.f32.mxu1 %v8893_v0 }
 0x679   : > { %6288 = vmatmul.mubr.msk.f32.gmra.mrb[114].mxu1 %vm228_vm0, %v10548_v38 }
 0x67a   : > { %3711 = vmatprep.mubr.f32.mxu1 %v8893_v0 }
 0x67d   : > { %6289 = vmatmul.mubr.msk.f32.gmra.mrb[116].mxu1 %vm228_vm0, %v10556_v58 }
 0x67e   : > { %3717 = vmatprep.mubr.f32.mxu1 %v8893_v0 }
 0x681   : > { %6290 = vmatmul.mubr.msk.f32.gmra.mrb[118].mxu1 %vm228_vm0, %v10564_v43 }
 0x682   : > { %3723 = vmatprep.mubr.f32.mxu1 %v8893_v0 }
 0x685   : > { %6291 = vmatmul.mubr.msk.f32.gmra.mrb[120].mxu1 %vm228_vm0, %v10572_v63 }
 0x686   : > { %3729 = vmatprep.mubr.f32.mxu1 %v8893_v0 }
 0x689   : > { %6292 = vmatmul.mubr.msk.f32.gmra.mrb[122].mxu1 %vm228_vm0, %v10580_v3 }
 0x68a   : > { %3735 = vmatprep.mubr.f32.mxu1 %v8893_v0 }
 0x68d   : > { %6293 = vmatmul.mubr.msk.f32.gmra.mrb[124].mxu1 %vm228_vm0, %v10588_v22 }
 0x68e   : > { %3741 = vmatprep.mubr.f32.mxu1 %v8893_v0 }
 0x691   : > { %6294 = vmatmul.mubr.msk.f32.gmra.mrb[126].mxu1 %vm228_vm0, %v10596_v5 }
 0x692   : > { %6935 = vmatprep.mubr.msk.f32.mxu1 %vm228_vm0, %v8743_v35 }
 0x6ae   : > { %v6905_v34 = vpop.f32.mrb[112].mxu0 }
 0x6af   : > { %v3898_v17 = vadd.f32 %v6905_v34, %v6236_v14  ;;  %v3814_v23 = vpop.f32.mrb[113].mxu0 }
 0x6b0   : > { %v3895_v50 = vadd.f32 %v6233_v45, %v3814_v23 }
 0x6b1   : > { %v6316_v56 = vmul.f32 -1.442695, %v3898_v17 }
 0x6b2   : > { %v6313_v41 = vmul.f32 -1.442695, %v3895_v50  ;;  %v6908_v10 = vpop.f32.mrb[114].mxu0 }
 0x6b3   : > { %8119 = vpow2.f32 %v6316_v56  ;;  %v3904_v57 = vadd.f32 %v6908_v10, %v6242_v32  ;;  %v3824_v12 = vpop.f32.mrb[115].mxu0  ;;  %v6266_v32 = vld [vmem:[%s9016_s6 + $0x898] sm:$0xff] }
 0x6b4   : > { %8121 = vpow2.f32 %v6313_v41  ;;  %v3901_v36 = vadd.f32 %v6239_v51, %v3824_v12  ;;  %v6263_v41 = vld [vmem:[%s9016_s6 + $0x880] sm:$0xff] }
 0x6b5   : > { %v6322_v15 = vmul.f32 -1.442695, %v3904_v57 }
 0x6b6   : > { %v6319_v28 = vmul.f32 -1.442695, %v3901_v36  ;;  %v6911_v49 = vpop.f32.mrb[116].mxu0 }
 0x6b7   : > { %8123 = vpow2.f32 %v6322_v15  ;;  %v3910_v40 = vadd.f32 %v6911_v49, %v6248_v52  ;;  %v3834_v61 = vpop.f32.mrb[117].mxu0  ;;  %v6272_v49 = vld [vmem:[%s9016_s6 + $0x8c8] sm:$0xff] }
 0x6b8   : > { %8125 = vpow2.f32 %v6319_v28  ;;  %v3907_v27 = vadd.f32 %v6245_v31, %v3834_v61 }
 0x6b9   : > { %v6328_v11 = vmul.f32 -1.442695, %v3910_v40 }
 0x6ba   : > { %v6325_v59 = vmul.f32 -1.442695, %v3907_v27  ;;  %v6914_v6 = vpop.f32.mrb[118].mxu0 }
 0x6bb   : > { %8127 = vpow2.f32 %v6328_v11  ;;  %v3916_v1 = vadd.f32 %v6914_v6, %v6254_v42  ;;  %v3844_v7 = vpop.f32.mrb[119].mxu0 }
 0x6bc   : > { %8129 = vpow2.f32 %v6325_v59  ;;  %v3913_v21 = vadd.f32 %v6251_v13, %v3844_v7  ;;  %v6269_v59 = vld [vmem:[%s9016_s6 + $0x8b0] sm:$0xff] }
 0x6bd   : > { %v8120_v25 = vpop.eup %8119  ;;  %v6334_v53 = vmul.f32 -1.442695, %v3916_v1 }
 0x6be   : > { %v8122_v24 = vpop.eup %8121  ;;  %v4054_v35 = vadd.f32 1.0, %v8120_v25  ;;  %v6331_v14 = vmul.f32 -1.442695, %v3913_v21  ;;  %v6917_v45 = vpop.f32.mrb[120].mxu0  ;;  %v6278_v21 = vld [vmem:[%s9016_s6 + $0x8f8] sm:$0xff] }
 0x6bf   : > { %v4051_v34 = vadd.f32 1.0, %v8122_v24  ;;  %8131 = vpow2.f32 %v6334_v53  ;;  %v3922_v17 = vadd.f32 %v6917_v45, %v6260_v4  ;;  %v3854_v23 = vpop.f32.mrb[121].mxu0 }
 0x6c0   : > { %8133 = vrcp.f32 %v4054_v35  ;;  %v3919_v50 = vadd.f32 %v6257_v37, %v3854_v23  ;;  %v6275_v35 = vld [vmem:[%s9016_s6 + $0x8e0] sm:$0xff] }
 0x6c1   : > { %v8124_v56 = vpop.eup %8123  ;;  %8135 = vrcp.f32 %v4051_v34  ;;  %v6340_v51 = vmul.f32 -1.442695, %v3922_v17 }
 0x6c2   : > { %v8126_v10 = vpop.eup %8125  ;;  %v4060_v57 = vadd.f32 1.0, %v8124_v56  ;;  %8137 = vpow2.f32 %v6331_v14  ;;  %v6337_v12 = vmul.f32 -1.442695, %v3919_v50  ;;  %v6920_v36 = vpop.f32.mrb[122].mxu0 }
 0x6c3   : > { %v4057_v52 = vadd.f32 1.0, %v8126_v10  ;;  %8139 = vpow2.f32 %v6340_v51  ;;  %v3928_v15 = vadd.f32 %v6920_v36, %v6266_v32  ;;  %v3864_v31 = vpop.f32.mrb[123].mxu0 }
 0x6c4   : > { %8141 = vrcp.f32 %v4060_v57  ;;  %v3925_v28 = vadd.f32 %v6263_v41, %v3864_v31 }
 0x6c5   : > { %v8128_v40 = vpop.eup %8127  ;;  %8143 = vrcp.f32 %v4057_v52  ;;  %v6346_v61 = vmul.f32 -1.442695, %v3928_v15 }
 0x6c6   : > { %v8130_v27 = vpop.eup %8129  ;;  %v4066_v42 = vadd.f32 1.0, %v8128_v40  ;;  %8145 = vpow2.f32 %v6337_v12  ;;  %v6343_v11 = vmul.f32 -1.442695, %v3925_v28  ;;  %v6923_v13 = vpop.f32.mrb[124].mxu0 }
 0x6c7   : > { %v4063_v6 = vadd.f32 1.0, %v8130_v27  ;;  %8147 = vpow2.f32 %v6346_v61  ;;  %v3934_v1 = vadd.f32 %v6923_v13, %v6272_v49  ;;  %v3874_v7 = vpop.f32.mrb[125].mxu0 }
 0x6c8   : > { %8149 = vrcp.f32 %v4066_v42  ;;  %v3931_v25 = vadd.f32 %v6269_v59, %v3874_v7 }
 0x6c9   : > { %v8132_v4 = vpop.eup %8131  ;;  %8151 = vrcp.f32 %v4063_v6 }
 0x6ca   : > { %v8134_v53 = vpop.eup %8133  ;;  %v4072_v37 = vadd.f32 1.0, %v8132_v4  ;;  %8153 = vpow2.f32 %v6343_v11  ;;  %v6926_v24 = vpop.f32.mrb[126].mxu0 }
 0x6cb   : > { %v8136_v14 = vpop.eup %8135  ;;  %8155 = vtanh.f32 %v3934_v1  ;;  %v3940_v45 = vadd.f32 %v6926_v24, %v6278_v21  ;;  %v3884_v34 = vpop.f32.mrb[127].mxu0 }
 0x6cc   : > { %v8138_v17 = vpop.eup %8137  ;;  %8157 = vrcp.f32 %v4072_v37  ;;  %v3937_v32 = vadd.f32 %v6275_v35, %v3884_v34 }
 0x6cd   : > { %v8140_v23 = vpop.eup %8139  ;;  %v4069_v50 = vadd.f32 1.0, %v8138_v17  ;;  %8159 = vtanh.f32 %v3931_v25 }
 0x6ce   : > { %v8142_v56 = vpop.eup %8141  ;;  %8161 = vtanh.f32 %v3940_v45  ;;  %v4078_v15 = vadd.f32 1.0, %v8140_v23 }
 0x6cf   : > { %v8144_v51 = vpop.eup %8143  ;;  %8163 = vrcp.f32 %v4069_v50 }
 0x6d0   : > { %v8146_v41 = vpop.eup %8145  ;;  %8165 = vtanh.f32 %v3937_v32 }
 0x6d1   : > { %v8148_v10 = vpop.eup %8147  ;;  %v4075_v28 = vadd.f32 1.0, %v8146_v41  ;;  %8167 = vrcp.f32 %v4078_v15 }
 0x6d2   : > { %v8150_v57 = vpop.eup %8149  ;;  %v4084_v11 = vadd.f32 1.0, %v8148_v10  ;;  %v6238_v10 = vld [vmem:[%s9016_s6 + $0x7b8] sm:$0xff] }
 0x6d3   : > { %v8152_v12 = vpop.eup %8151  ;;  %v4174_v52 = vmul.f32 %v8150_v57, %v10344_v48  ;;  %8169 = vrcp.f32 %v4075_v28 }
 0x6d4   : > { %v8154_v36 = vpop.eup %8153  ;;  %v4171_v40 = vmul.f32 %v8152_v12, %v10348_v8  ;;  %v6240_v12 = vld [vmem:[%s9016_s6 + $0x7c8] sm:$0xff] }
 0x6d5   : > { %v8156_v31 = vpop.eup %8155  ;;  %v4081_v21 = vadd.f32 1.0, %v8154_v36 }
 0x6d6   : > { %v8158_v49 = vpop.eup %8157  ;;  %v4186_v61 = vmul.f32 %v8156_v31, %v8134_v53  ;;  %v6241_v31 = vld [vmem:[%s9016_s6 + $0x7d0] sm:$0xff] }
 0x6d7   : > { %v8160_v27 = vpop.eup %8159  ;;  %v4180_v42 = vmul.f32 %v8158_v49, %v10350_v44 }
 0x6d8   : > { %v8162_v13 = vpop.eup %8161  ;;  %v10620_v59 = vadd.f32 %v4186_v61, %v4174_v52  ;;  %v4183_v6 = vmul.f32 %v8160_v27, %v8136_v14  ;;  %v6243_v27 = vld [vmem:[%s9016_s6 + $0x7e0] sm:$0xff] }
 0x6d9   : > { %v8164_v1 = vpop.eup %8163  ;;  %v4192_v7 = vmul.f32 %v8162_v13, %v8142_v56 }
 0x6da   : > { %v4177_v48 = vmul.f32 %v8164_v1, %v10354_v30  ;;  %8171 = vtanh.f32 %v10620_v59  ;;  %v10624_v4 = vadd.f32 %v4183_v6, %v4171_v40  ;;  %v8166_v8 = vpop.eup %8165  ;;  %v6244_v1 = vld [vmem:[%s9016_s6 + $0x7e8] sm:$0xff] }
 0x6db   : > { %8173 = vrcp.f32 %v4084_v11  ;;  %v10626_v25 = vadd.f32 %v4192_v7, %v4180_v42  ;;  %v4189_v44 = vmul.f32 %v8166_v8, %v8144_v51  ;;  %v8168_v30 = vpop.eup %8167 }
 0x6dc   : > { %8175 = vtanh.f32 %v10624_v4 }
 0x6dd   : > { %8177 = vtanh.f32 %v10626_v25  ;;  %v10630_v53 = vadd.f32 %v4189_v44, %v4177_v48  ;;  %v8170_v37 = vpop.eup %8169  ;;  %v6246_v44 = vld [vmem:[%s9016_s6 + $0x7f8] sm:$0xff] }
 0x6de   : > { %8179 = vrcp.f32 %v4081_v21 }
 0x6df   : > { %8181 = vtanh.f32 %v10630_v53 }
 0x6e4   : > { %v8172_v24 = vpop.eup %8171 }
 0x6e5   : > { %v8174_v35 = vpop.eup %8173  ;;  %v4222_v14 = vmul.f32 %v8172_v24, %v8168_v30 }
 0x6e6   : > { %v8176_v45 = vpop.eup %8175 }
 0x6e7   : > { %v8178_v34 = vpop.eup %8177  ;;  %v4219_v17 = vmul.f32 %v8176_v45, %v8170_v37 }
 0x6e8   : > { %v8180_v23 = vpop.eup %8179  ;;  %v4228_v32 = vmul.f32 %v8178_v34, %v8174_v35  ;;  %v6247_v35 = vld [vmem:[%s9016_s6 + $0x800] sm:$0xff] }
 0x6e9   : > { %v7079_v50 = vpack.c.bf16 %v4222_v14, %v4219_v17  ;;  %v8182_v56 = vpop.eup %8181  ;;  %v6249_v17 = vld [vmem:[%s9016_s6 + $0x810] sm:$0xff] }
 0x6ea   : > { %v4225_v51 = vmul.f32 %v8182_v56, %v8180_v23  ;;  %v6250_v56 = vld [vmem:[%s9016_s6 + $0x818] sm:$0xff] }
 0x6eb   : > { %7080 = vmatprep.subr.bf16.mxu1 %v7079_v50 }
 0x6ec   : > { %7082 = vmatpush3.bf16.msra.mxu1 %v7079_v50  ;;  %v7083_v41 = vpack.c.bf16 %v4228_v32, %v4225_v51 }
 0x6ee   : > { %7084 = vmatprep.subr.bf16.mxu1 %v7083_v41 }
 0x6f0   : > { %7086 = vmatpush3.bf16.msra.mxu1 %v7083_v41 }
 0x6f3   : > { %6936 = vmatmul.mubr.msk.f32.vlgmr.msra.gmra.mrb[128].mxu1 %vm228_vm0, %v10484_v54 }
 0x6f4   : > { %6938 = vmatprep.mubr.msk.f32.mxu1 %vm228_vm0, %v10492_v29 }
 0x6f7   : > { %6939 = vmatmul.mubr.msk.f32.gmra.mrb[130].mxu1 %vm228_vm0, %v10500_v55  ;;  %v6231_v55 = vld [vmem:[%s9016_s6 + $0x780] sm:$0xff] }
 0x6f8   : > { %6941 = vmatprep.mubr.msk.f32.mxu1 %vm228_vm0, %v10508_v20 }
 0x6fb   : > { %6942 = vmatmul.mubr.msk.f32.gmra.mrb[132].mxu1 %vm228_vm0, %v10516_v33 }
 0x6fc   : > { %6944 = vmatprep.mubr.msk.f32.mxu1 %vm228_vm0, %v10524_v39  ;;  %v6232_v39 = vld [vmem:[%s9016_s6 + $0x788] sm:$0xff] }
 0x6ff   : > { %6945 = vmatmul.mubr.msk.f32.gmra.mrb[134].mxu1 %vm228_vm0, %v10532_v2 }
 0x700   : > { %6947 = vmatprep.mubr.msk.f32.mxu1 %vm228_vm0, %v10540_v9  ;;  %v6234_v9 = vld [vmem:[%s9016_s6 + $0x798] sm:$0xff] }
 0x703   : > { %6948 = vmatmul.mubr.msk.f32.gmra.mrb[136].mxu1 %vm228_vm0, %v10548_v38 }
 0x704   : > { %6950 = vmatprep.mubr.msk.f32.mxu1 %vm228_vm0, %v10556_v58  ;;  %v6235_v58 = vld [vmem:[%s9016_s6 + $0x7a0] sm:$0xff] }
 0x707   : > { %6951 = vmatmul.mubr.msk.f32.gmra.mrb[138].mxu1 %vm228_vm0, %v10564_v43 }
 0x708   : > { %6953 = vmatprep.mubr.msk.f32.mxu1 %vm228_vm0, %v10572_v63 }
 0x70b   : > { %6954 = vmatmul.mubr.msk.f32.gmra.mrb[140].mxu1 %vm228_vm0, %v10580_v3  ;;  %v6237_v3 = vld [vmem:[%s9016_s6 + $0x7b0] sm:$0xff] }
 0x70c   : > { %6956 = vmatprep.mubr.msk.f32.mxu1 %vm228_vm0, %v10588_v22 }
 0x70f   : > { %6957 = vmatmul.mubr.msk.f32.gmra.mrb[142].mxu1 %vm228_vm0, %v10596_v5 }
 0x710   : > { %5033 = vmatprep.mubr.f32.mxu1 %v8893_v0 }
 0x728   : > { %v3653_v54 = vpop.f32.mrb[96].mxu1 }
 0x729   : > { %v3655_v29 = vpop.f32.mrb[97].mxu1  ;;  %v3893_v33 = vadd.f32 %v6231_v55, %v3653_v54 }
 0x72a   : > { %v3894_v38 = vadd.f32 %v6232_v39, %v3655_v29 }
 0x72b   : > { %v6311_v63 = vmul.f32 -1.442695, %v3893_v33 }
 0x72c   : > { %v3659_v20 = vpop.f32.mrb[98].mxu1  ;;  %v6312_v36 = vmul.f32 -1.442695, %v3894_v38 }
 0x72d   : > { %v3661_v2 = vpop.f32.mrb[99].mxu1  ;;  %v3896_v5 = vadd.f32 %v6234_v9, %v3659_v20  ;;  %8183 = vpow2.f32 %v6311_v63 }
 0x72e   : > { %v3897_v57 = vadd.f32 %v6235_v58, %v3661_v2  ;;  %8185 = vpow2.f32 %v6312_v36 }
 0x72f   : > { %v6314_v40 = vmul.f32 -1.442695, %v3896_v5  ;;  %v6252_v5 = vld [vmem:[%s9016_s6 + $0x828] sm:$0xff] }
 0x730   : > { %v3665_v43 = vpop.f32.mrb[100].mxu1  ;;  %v6315_v42 = vmul.f32 -1.442695, %v3897_v57 }
 0x731   : > { %v3667_v22 = vpop.f32.mrb[101].mxu1  ;;  %v3899_v52 = vadd.f32 %v6237_v3, %v3665_v43  ;;  %8187 = vpow2.f32 %v6314_v40 }
 0x732   : > { %v3900_v28 = vadd.f32 %v6238_v10, %v3667_v22  ;;  %8189 = vpow2.f32 %v6315_v42 }
 0x733   : > { %v6317_v13 = vmul.f32 -1.442695, %v3899_v52  ;;  %v6253_v52 = vld [vmem:[%s9016_s6 + $0x830] sm:$0xff] }
 0x734   : > { %v3671_v15 = vpop.f32.mrb[102].mxu1  ;;  %v6318_v7 = vmul.f32 -1.442695, %v3900_v28 }
 0x735   : > { %v3673_v49 = vpop.f32.mrb[103].mxu1  ;;  %v3902_v61 = vadd.f32 %v6240_v12, %v3671_v15  ;;  %8191 = vpow2.f32 %v6317_v13  ;;  %v6255_v13 = vld [vmem:[%s9016_s6 + $0x840] sm:$0xff] }
 0x736   : > { %v3903_v11 = vadd.f32 %v6241_v31, %v3673_v49  ;;  %8193 = vpow2.f32 %v6318_v7 }
 0x737   : > { %v6320_v8 = vmul.f32 -1.442695, %v3902_v61  ;;  %v8184_v23 = vpop.eup %8183 }
 0x738   : > { %v3677_v6 = vpop.f32.mrb[104].mxu1  ;;  %v6321_v30 = vmul.f32 -1.442695, %v3903_v11  ;;  %v8186_v55 = vpop.eup %8185  ;;  %v4049_v20 = vadd.f32 1.0, %v8184_v23 }
 0x739   : > { %v3905_v48 = vadd.f32 %v6243_v27, %v3677_v6  ;;  %v3679_v21 = vpop.f32.mrb[105].mxu1  ;;  %8195 = vpow2.f32 %v6320_v8  ;;  %v4050_v43 = vadd.f32 1.0, %v8186_v55 }
 0x73a   : > { %v3906_v37 = vadd.f32 %v6244_v1, %v3679_v21  ;;  %8197 = vpow2.f32 %v6321_v30  ;;  %v6256_v1 = vld [vmem:[%s9016_s6 + $0x848] sm:$0xff] }
 0x73b   : > { %v6323_v14 = vmul.f32 -1.442695, %v3905_v48  ;;  %v8188_v2 = vpop.eup %8187 }
 0x73c   : > { %v3683_v24 = vpop.f32.mrb[106].mxu1  ;;  %v6324_v50 = vmul.f32 -1.442695, %v3906_v37  ;;  %v8190_v58 = vpop.eup %8189  ;;  %v4052_v57 = vadd.f32 1.0, %v8188_v2 }
 0x73d   : > { %v3908_v45 = vadd.f32 %v6246_v44, %v3683_v24  ;;  %v3685_v34 = vpop.f32.mrb[107].mxu1  ;;  %8199 = vpow2.f32 %v6323_v14  ;;  %v4053_v36 = vadd.f32 1.0, %v8190_v58  ;;  %v6258_v14 = vld [vmem:[%s9016_s6 + $0x858] sm:$0xff] }
 0x73e   : > { %v3909_v32 = vadd.f32 %v6247_v35, %v3685_v34  ;;  %8201 = vpow2.f32 %v6324_v50 }
 0x73f   : > { %v6326_v51 = vmul.f32 -1.442695, %v3908_v45  ;;  %v8192_v3 = vpop.eup %8191 }
 0x740   : > { %v3689_v41 = vpop.f32.mrb[108].mxu1  ;;  %v6327_v39 = vmul.f32 -1.442695, %v3909_v32  ;;  %v8194_v10 = vpop.eup %8193  ;;  %v4055_v28 = vadd.f32 1.0, %v8192_v3  ;;  %v6259_v32 = vld [vmem:[%s9016_s6 + $0x860] sm:$0xff] }
 0x741   : > { %v3911_v54 = vadd.f32 %v6249_v17, %v3689_v41  ;;  %v3691_v29 = vpop.f32.mrb[109].mxu1  ;;  %8203 = vpow2.f32 %v6326_v51  ;;  %v4056_v61 = vadd.f32 1.0, %v8194_v10 }
 0x742   : > { %v3912_v33 = vadd.f32 %v6250_v56, %v3691_v29  ;;  %8205 = vrcp.f32 %v4049_v20  ;;  %v6261_v29 = vld [vmem:[%s9016_s6 + $0x870] sm:$0xff] }
 0x743   : > { %v6329_v9 = vmul.f32 -1.442695, %v3911_v54  ;;  %8207 = vpow2.f32 %v6327_v39  ;;  %v8196_v12 = vpop.eup %8195 }
 0x744   : > { %v3695_v38 = vpop.f32.mrb[110].mxu1  ;;  %v6330_v22 = vmul.f32 -1.442695, %v3912_v33  ;;  %v8198_v31 = vpop.eup %8197  ;;  %v4058_v42 = vadd.f32 1.0, %v8196_v12  ;;  %v6267_v12 = vld [vmem:[%s9016_s6 + $0x8a0] sm:$0xff] }
 0x745   : > { %v3697_v63 = vpop.f32.mrb[111].mxu1  ;;  %8209 = vpow2.f32 %v6329_v9  ;;  %v3914_v49 = vadd.f32 %v6252_v5, %v3695_v38  ;;  %v4059_v6 = vadd.f32 1.0, %v8198_v31  ;;  %v6264_v31 = vld [vmem:[%s9016_s6 + $0x888] sm:$0xff] }
 0x746   : > { %8211 = vrcp.f32 %v4050_v43  ;;  %v3915_v11 = vadd.f32 %v6253_v52, %v3697_v63  ;;  %v6262_v63 = vld [vmem:[%s9016_s6 + $0x878] sm:$0xff] }
 0x747   : > { %8213 = vpow2.f32 %v6330_v22  ;;  %v8200_v27 = vpop.eup %8199  ;;  %v6332_v21 = vmul.f32 -1.442695, %v3914_v49  ;;  %v6268_v49 = vld [vmem:[%s9016_s6 + $0x8a8] sm:$0xff] }
 0x748   : > { %v3701_v15 = vpop.f32.mrb[112].mxu1  ;;  %8215 = vrcp.f32 %v4052_v57  ;;  %v8202_v48 = vpop.eup %8201  ;;  %v4061_v30 = vadd.f32 1.0, %v8200_v27  ;;  %v6333_v24 = vmul.f32 -1.442695, %v3915_v11  ;;  %v6265_v27 = vld [vmem:[%s9016_s6 + $0x890] sm:$0xff] }
 0x749   : > { %v3703_v40 = vpop.f32.mrb[113].mxu1  ;;  %8217 = vrcp.f32 %v4053_v36  ;;  %v3917_v37 = vadd.f32 %v6255_v13, %v3701_v15  ;;  %v4062_v34 = vadd.f32 1.0, %v8202_v48 }
 0x74a   : > { %8219 = vrcp.f32 %v4055_v28  ;;  %v3918_v35 = vadd.f32 %v6256_v1, %v3703_v40 }
 0x74b   : > { %v8204_v44 = vpop.eup %8203  ;;  %8221 = vrcp.f32 %v4056_v61  ;;  %v6335_v41 = vmul.f32 -1.442695, %v3917_v37 }
 0x74c   : > { %v3707_v7 = vpop.f32.mrb[114].mxu1  ;;  %8223 = vrcp.f32 %v4058_v42  ;;  %v10683_v45 = vpop.eup %8205  ;;  %v4064_v50 = vadd.f32 1.0, %v8204_v44  ;;  %v6336_v20 = vmul.f32 -1.442695, %v3918_v35 }
 0x74d   : > { %v3709_v8 = vpop.f32.mrb[115].mxu1  ;;  %8225 = vrcp.f32 %v4059_v6  ;;  %v8208_v23 = vpop.eup %8207  ;;  %v3920_v54 = vadd.f32 %v6258_v14, %v3707_v7  ;;  %v6270_v6 = vld [vmem:[%s9016_s6 + $0x8b8] sm:$0xff] }
 0x74e   : > { %8227 = vpow2.f32 %v6332_v21  ;;  %v4065_v39 = vadd.f32 1.0, %v8208_v23  ;;  %v3921_v2 = vadd.f32 %v6259_v32, %v3709_v8  ;;  %v6273_v32 = vld [vmem:[%s9016_s6 + $0x8d0] sm:$0xff] }
 0x74f   : > { %v8210_v51 = vpop.eup %8209  ;;  %8229 = vrcp.f32 %v4061_v30  ;;  %v6338_v5 = vmul.f32 -1.442695, %v3920_v54 }
 0x750   : > { %v3713_v17 = vpop.f32.mrb[116].mxu1  ;;  %v10687_v55 = vpop.eup %8211  ;;  %8231 = vpow2.f32 %v6333_v24  ;;  %v4067_v58 = vadd.f32 1.0, %v8210_v51  ;;  %v6339_v52 = vmul.f32 -1.442695, %v3921_v2  ;;  %v6274_v2 = vld [vmem:[%s9016_s6 + $0x8d8] sm:$0xff] }
 0x751   : > { %v3715_v56 = vpop.f32.mrb[117].mxu1  ;;  %v8214_v33 = vpop.eup %8213  ;;  %8233 = vrcp.f32 %v4062_v34  ;;  %v3923_v43 = vadd.f32 %v6261_v29, %v3713_v17  ;;  %v6271_v17 = vld [vmem:[%s9016_s6 + $0x8c0] sm:$0xff] }
 0x752   : > { %v10689_v38 = vpop.eup %8215  ;;  %8235 = vrcp.f32 %v4064_v50  ;;  %v4068_v57 = vadd.f32 1.0, %v8214_v33  ;;  %v3924_v15 = vadd.f32 %v6262_v63, %v3715_v56 }
 0x753   : > { %v10692_v22 = vpop.eup %8217  ;;  %8237 = vpow2.f32 %v6335_v41  ;;  %v6341_v61 = vmul.f32 -1.442695, %v3923_v43  ;;  %v6276_v43 = vld [vmem:[%s9016_s6 + $0x8e8] sm:$0xff] }
 0x754   : > { %v3719_v9 = vpop.f32.mrb[118].mxu1  ;;  %v10694_v10 = vpop.eup %8219  ;;  %8239 = vpow2.f32 %v6336_v20  ;;  %v6342_v8 = vmul.f32 -1.442695, %v3924_v15 }
 0x755   : > { %v3721_v3 = vpop.f32.mrb[119].mxu1  ;;  %v10697_v36 = vpop.eup %8221  ;;  %8241 = vrcp.f32 %v4065_v39  ;;  %v3926_v7 = vadd.f32 %v6264_v31, %v3719_v9 }
 0x756   : > { %v10701_v40 = vpop.eup %8223  ;;  %8243 = vrcp.f32 %v4067_v58  ;;  %v3927_v44 = vadd.f32 %v6265_v27, %v3721_v3 }
 0x757   : > { %v10704_v11 = vpop.eup %8225  ;;  %8245 = vpow2.f32 %v6338_v5  ;;  %v6344_v50 = vmul.f32 -1.442695, %v3926_v7 }
 0x758   : > { %v3725_v28 = vpop.f32.mrb[120].mxu1  ;;  %v8228_v1 = vpop.eup %8227  ;;  %8247 = vrcp.f32 %v4068_v57  ;;  %v6345_v51 = vmul.f32 -1.442695, %v3927_v44  ;;  %v6277_v57 = vld [vmem:[%s9016_s6 + $0x8f0] sm:$0xff] }
 0x759   : > { %v3727_v42 = vpop.f32.mrb[121].mxu1  ;;  %v3929_v13 = vadd.f32 %v6267_v12, %v3725_v28  ;;  %v8230_v21 = vpop.eup %8229  ;;  %8249 = vpow2.f32 %v6339_v52  ;;  %v4070_v34 = vadd.f32 1.0, %v8228_v1 }
 0x75a   : > { %v3930_v48 = vadd.f32 %v6268_v49, %v3727_v42  ;;  %v8232_v37 = vpop.eup %8231  ;;  %8251 = vpow2.f32 %v6341_v61 }
 0x75b   : > { %v8234_v14 = vpop.eup %8233  ;;  %8253 = vtanh.f32 %v3929_v13  ;;  %v4071_v58 = vadd.f32 1.0, %v8232_v37 }
 0x75c   : > { %v3731_v30 = vpop.f32.mrb[122].mxu1  ;;  %v8236_v23 = vpop.eup %8235  ;;  %8255 = vtanh.f32 %v3930_v48 }
 0x75d   : > { %v3932_v24 = vadd.f32 %v6270_v6, %v3731_v30  ;;  %v3733_v35 = vpop.f32.mrb[123].mxu1  ;;  %v8238_v56 = vpop.eup %8237  ;;  %8257 = vpow2.f32 %v6342_v8  ;;  %v4169_v6 = vmul.f32 %v8230_v21, %v10440_v60  ;;  %v4170_v8 = vmul.f32 %v8234_v14, %v10443_v26 }
 0x75e   : > { %v8240_v54 = vpop.eup %8239  ;;  %v3933_v29 = vadd.f32 %v6271_v17, %v3733_v35  ;;  %v4073_v3 = vadd.f32 1.0, %v8238_v56 }
 0x75f   : > { %8259 = vtanh.f32 %v3932_v24  ;;  %v8242_v33 = vpop.eup %8241  ;;  %v4074_v42 = vadd.f32 1.0, %v8240_v54 }
 0x760   : > { %v3737_v41 = vpop.f32.mrb[124].mxu1  ;;  %8261 = vrcp.f32 %v4070_v34  ;;  %v8244_v9 = vpop.eup %8243  ;;  %v4172_v34 = vmul.f32 %v8236_v23, %v10447_v46  ;;  %v4173_v56 = vmul.f32 %v8242_v33, %v10455_v18 }
 0x761   : > { %v3739_v20 = vpop.f32.mrb[125].mxu1  ;;  %v3935_v39 = vadd.f32 %v6273_v32, %v3737_v41  ;;  %8263 = vpow2.f32 %v6344_v50  ;;  %v8246_v63 = vpop.eup %8245 }
 0x762   : > { %8265 = vpow2.f32 %v6345_v51  ;;  %v8248_v12 = vpop.eup %8247  ;;  %v3936_v52 = vadd.f32 %v6274_v2, %v3739_v20  ;;  %v4076_v1 = vadd.f32 1.0, %v8246_v63 }
 0x763   : > { %8267 = vtanh.f32 %v3933_v29  ;;  %v8250_v31 = vpop.eup %8249 }
 0x764   : > { %v3743_v5 = vpop.f32.mrb[126].mxu1  ;;  %8269 = vtanh.f32 %v3935_v39  ;;  %v8252_v49 = vpop.eup %8251  ;;  %v4077_v37 = vadd.f32 1.0, %v8250_v31 }
 0x765   : > { %v3745_v15 = vpop.f32.mrb[127].mxu1  ;;  %v3938_v28 = vadd.f32 %v6276_v43, %v3743_v5  ;;  %8271 = vrcp.f32 %v4071_v58  ;;  %v8254_v27 = vpop.eup %8253  ;;  %v4079_v17 = vadd.f32 1.0, %v8252_v49 }
 0x766   : > { %v3939_v61 = vadd.f32 %v6277_v57, %v3745_v15  ;;  %8273 = vrcp.f32 %v4073_v3  ;;  %v8256_v13 = vpop.eup %8255  ;;  %v4181_v7 = vmul.f32 %v8254_v27, %v10683_v45 }
 0x767   : > { %8275 = vtanh.f32 %v3936_v52  ;;  %v8258_v48 = vpop.eup %8257  ;;  %v4182_v44 = vmul.f32 %v8256_v13, %v10687_v55 }
 0x768   : > { %8277 = vtanh.f32 %v3938_v28  ;;  %v10716_v24 = vadd.f32 %v4181_v7, %v4169_v6  ;;  %v4080_v50 = vadd.f32 1.0, %v8258_v48 }
 0x769   : > { %v8260_v30 = vpop.eup %8259  ;;  %8279 = vtanh.f32 %v3939_v61  ;;  %v10719_v60 = vadd.f32 %v4182_v44, %v4170_v8 }
 0x76a   : > { %v8262_v35 = vpop.eup %8261  ;;  %8281 = vrcp.f32 %v4074_v42  ;;  %v4184_v45 = vmul.f32 %v8260_v30, %v10689_v38  ;;  %v4175_v38 = vmul.f32 %v8244_v9, %v10457_v19 }
 0x76b   : > { %v8264_v21 = vpop.eup %8263  ;;  %8283 = vrcp.f32 %v4076_v1 }
 0x76c   : > { %v8266_v26 = vpop.eup %8265  ;;  %8285 = vtanh.f32 %v10716_v24  ;;  %v10723_v55 = vadd.f32 %v4184_v45, %v4172_v34  ;;  %v4082_v51 = vadd.f32 1.0, %v8264_v21  ;;  %v10755_v45 = vld [vmem:[%s11260_s1] sm:$0xff]  ;;  %v10763_v21 = vld [vmem:[%s11260_s1 + $0x8] sm:$0xff] }
 0x76d   : > { %v8268_v14 = vpop.eup %8267  ;;  %8287 = vrcp.f32 %v4077_v37  ;;  %v4083_v29 = vadd.f32 1.0, %v8266_v26  ;;  %v10779_v26 = vld [vmem:[%s11260_s1 + $0x18] sm:$0xff] }
 0x76e   : > { %v8270_v32 = vpop.eup %8269  ;;  %8289 = vtanh.f32 %v10723_v55  ;;  %v4185_v46 = vmul.f32 %v8268_v14, %v10692_v22  ;;  %v4176_v22 = vmul.f32 %v8248_v12, %v10465_v16  ;;  %v10787_v14 = vld [vmem:[%s11260_s1 + $0x20] sm:$0xff] }
 0x76f   : > { %v8272_v23 = vpop.eup %8271  ;;  %8291 = vrcp.f32 %v4079_v17  ;;  %v4187_v41 = vmul.f32 %v8270_v32, %v10694_v10  ;;  %v4178_v10 = vmul.f32 %v8262_v35, %v10469_v47  ;;  %v10771_v17 = vld [vmem:[%s11260_s1 + $0x10] sm:$0xff] }
 0x770   : > { %v8274_v54 = vpop.eup %8273  ;;  %8293 = vtanh.f32 %v10719_v60  ;;  %v10731_v20 = vadd.f32 %v4185_v46, %v4173_v56  ;;  %v4179_v43 = vmul.f32 %v8272_v23, %v10472_v62  ;;  %v10803_v32 = vld [vmem:[%s11260_s1 + $0x30] sm:$0xff]  ;;  %v10811_v56 = vld [vmem:[%s11260_s1 + $0x38] sm:$0xff]  ;;  %v10819_v46 = vld [vmem:[%s11260_s1 + $0x40] sm:$0xff] }
 0x771   : > { %v8276_v39 = vpop.eup %8275  ;;  %8295 = vrcp.f32 %v4080_v50  ;;  %v10733_v18 = vadd.f32 %v4187_v41, %v4175_v38  ;;  %v10795_v50 = vld [vmem:[%s11260_s1 + $0x28] sm:$0xff]  ;;  %v10835_v38 = vld [vmem:[%s11260_s1 + $0x50] sm:$0xff]  ;;  %v10851_v41 = vld [vmem:[%s11260_s1 + $0x60] sm:$0xff] }
 0x772   : > { %v8278_v33 = vpop.eup %8277  ;;  %8297 = vtanh.f32 %v10731_v20  ;;  %v4188_v19 = vmul.f32 %v8276_v39, %v10697_v36  ;;  %v10827_v23 = vld [vmem:[%s11260_s1 + $0x48] sm:$0xff] }
 0x773   : > { %v8280_v2 = vpop.eup %8279  ;;  %8299 = vrcp.f32 %v4082_v51  ;;  %v4190_v9 = vmul.f32 %v8278_v33, %v10701_v40  ;;  %v10843_v51 = vld [vmem:[%s11260_s1 + $0x58] sm:$0xff]  ;;  %v10861_v33 = vld [vmem:[%s11260_s1 + $0x68] sm:$0xff] }
 0x774   : > { %v8282_v58 = vpop.eup %8281  ;;  %8301 = vrcp.f32 %v4083_v29  ;;  %v10741_v63 = vadd.f32 %v4188_v19, %v4176_v22  ;;  %v4191_v3 = vmul.f32 %v8280_v2, %v10704_v11  ;;  %v6349_v29 = vld [vmem:[%s9016_s6 + $0x910] sm:$0xff] }
 0x775   : > { %v8284_v5 = vpop.eup %8283  ;;  %8303 = vtanh.f32 %v10733_v18  ;;  %v10745_v16 = vadd.f32 %v4190_v9, %v4178_v10  ;;  %v6358_v10 = vld [vmem:[%s9016_s6 + $0x958] sm:$0xff] }
 0x776   : > { %v8286_v36 = vpop.eup %8285  ;;  %8305 = vtanh.f32 %v10741_v63  ;;  %v10748_v47 = vadd.f32 %v4191_v3, %v4179_v43 }
 0x777   : > { %v8288_v57 = vpop.eup %8287  ;;  %8307 = vtanh.f32 %v10745_v16  ;;  %v4217_v12 = vmul.f32 %v8286_v36, %v8274_v54  ;;  %v6352_v54 = vld [vmem:[%s9016_s6 + $0x928] sm:$0xff] }
 0x778   : > { %v8290_v40 = vpop.eup %8289  ;;  %8309 = vtanh.f32 %v10748_v47 }
 0x779   : > { %v8292_v62 = vpop.eup %8291  ;;  %v4220_v52 = vmul.f32 %v8290_v40, %v8284_v5  ;;  %v10871_v5 = vld [vmem:[%s11260_s1 + $0x70] sm:$0xff] }
 0x77a   : > { %v8294_v11 = vpop.eup %8293 }
 0x77b   : > { %v8296_v15 = vpop.eup %8295  ;;  %v7073_v31 = vpack.c.bf16 %v4220_v52, %v4217_v12  ;;  %v4218_v61 = vmul.f32 %v8294_v11, %v8282_v58  ;;  %v6355_v58 = vld [vmem:[%s9016_s6 + $0x940] sm:$0xff]  ;;  %v6361_v52 = vld [vmem:[%s9016_s6 + $0x970] sm:$0xff] }
 0x77c   : > { %v8298_v28 = vpop.eup %8297 }
 0x77d   : > { %v8300_v49 = vpop.eup %8299  ;;  %v4221_v27 = vmul.f32 %v8298_v28, %v8288_v57 }
 0x77e   : > { %v8302_v42 = vpop.eup %8301 }
 0x77f   : > { %v8304_v13 = vpop.eup %8303  ;;  %v7071_v6 = vpack.c.bf16 %v4221_v27, %v4218_v61  ;;  %v6370_v27 = vld [vmem:[%s9016_s6 + $0x9b8] sm:$0xff] }
 0x780   : > { %v8306_v1 = vpop.eup %8305  ;;  %v4223_v8 = vmul.f32 %v8304_v13, %v8292_v62  ;;  %v6364_v62 = vld [vmem:[%s9016_s6 + $0x988] sm:$0xff]  ;;  %v6367_v13 = vld [vmem:[%s9016_s6 + $0x9a0] sm:$0xff] }
 0x781   : > { %v8308_v7 = vpop.eup %8307  ;;  %7072 = vmatprep.subr.bf16.mxu0 %v7071_v6  ;;  %v4224_v30 = vmul.f32 %v8306_v1, %v8296_v15 }
 0x782   : > { %v8310_v48 = vpop.eup %8309  ;;  %7074 = vmatpush1.bf16.msra.mxu0 %v7073_v31  ;;  %v4226_v44 = vmul.f32 %v8308_v7, %v8300_v49  ;;  %v10881_v31 = vld [vmem:[%s11260_s1 + $0x78] sm:$0xff] }
 0x783   : > { %v4227_v37 = vmul.f32 %v8310_v48, %v8302_v42 }
 0x784   : > { %v7077_v35 = vpack.c.bf16 %v4226_v44, %v4223_v8  ;;  %v6376_v44 = vld [vmem:[%s9016_s6 + $0x9e8] sm:$0xff] }
 0x785   : > { %v7075_v34 = vpack.c.bf16 %v4227_v37, %v4224_v30 }
 0x787   : > { %7076 = vmatprep.subr.bf16.mxu0 %v7075_v34 }
 0x788   : > { %7078 = vmatpush1.bf16.msra.mxu0 %v7077_v35  ;;  %v6373_v35 = vld [vmem:[%s9016_s6 + $0x9d0] sm:$0xff] }
 0x78b   : > { %6395 = vmatmul.mubr.msk.f32.vlgmr.msra.gmra.mrb[128].mxu0 %vm228_vm0, %v10755_v45 }
 0x78c   : > { %4348 = vmatprep.mubr.f32.mxu0 %v8893_v0 }
 0x78f   : > { %6396 = vmatmul.mubr.msk.f32.gmra.mrb[130].mxu0 %vm228_vm0, %v10763_v21 }
 0x790   : > { %4354 = vmatprep.mubr.f32.mxu0 %v8893_v0 }
 0x793   : > { %6397 = vmatmul.mubr.msk.f32.gmra.mrb[132].mxu0 %vm228_vm0, %v10771_v17 }
 0x794   : > { %4360 = vmatprep.mubr.f32.mxu0 %v8893_v0 }
 0x797   : > { %6398 = vmatmul.mubr.msk.f32.gmra.mrb[134].mxu0 %vm228_vm0, %v10779_v26 }
 0x798   : > { %4366 = vmatprep.mubr.f32.mxu0 %v8893_v0 }
 0x79b   : > { %6399 = vmatmul.mubr.msk.f32.gmra.mrb[136].mxu0 %vm228_vm0, %v10787_v14 }
 0x79c   : > { %4372 = vmatprep.mubr.f32.mxu0 %v8893_v0 }
 0x79f   : > { %6400 = vmatmul.mubr.msk.f32.gmra.mrb[138].mxu0 %vm228_vm0, %v10795_v50 }
 0x7a0   : > { %4378 = vmatprep.mubr.f32.mxu0 %v8893_v0 }
 0x7a3   : > { %6401 = vmatmul.mubr.msk.f32.gmra.mrb[140].mxu0 %vm228_vm0, %v10803_v32 }
 0x7a4   : > { %4384 = vmatprep.mubr.f32.mxu0 %v8893_v0 }
 0x7a7   : > { %6402 = vmatmul.mubr.msk.f32.gmra.mrb[142].mxu0 %vm228_vm0, %v10811_v56 }
 0x7a8   : > { %4390 = vmatprep.mubr.f32.mxu0 %v8893_v0 }
 0x7ab   : > { %6403 = vmatmul.mubr.msk.f32.gmra.mrb[144].mxu0 %vm228_vm0, %v10819_v46 }
 0x7ac   : > { %4396 = vmatprep.mubr.f32.mxu0 %v8893_v0 }
 0x7af   : > { %6404 = vmatmul.mubr.msk.f32.gmra.mrb[146].mxu0 %vm228_vm0, %v10827_v23 }
 0x7b0   : > { %4402 = vmatprep.mubr.f32.mxu0 %v8893_v0 }
 0x7b3   : > { %6405 = vmatmul.mubr.msk.f32.gmra.mrb[148].mxu0 %vm228_vm0, %v10835_v38 }
 0x7b4   : > { %4408 = vmatprep.mubr.f32.mxu0 %v8893_v0 }
 0x7b7   : > { %6406 = vmatmul.mubr.msk.f32.gmra.mrb[150].mxu0 %vm228_vm0, %v10843_v51 }
 0x7b8   : > { %4414 = vmatprep.mubr.f32.mxu0 %v8893_v0 }
 0x7bb   : > { %6407 = vmatmul.mubr.msk.f32.gmra.mrb[152].mxu0 %vm228_vm0, %v10851_v41 }
 0x7bc   : > { %4420 = vmatprep.mubr.f32.mxu0 %v8893_v0 }
 0x7bf   : > { %6408 = vmatmul.mubr.msk.f32.gmra.mrb[154].mxu0 %vm228_vm0, %v10861_v33 }
 0x7c0   : > { %4426 = vmatprep.mubr.f32.mxu0 %v8893_v0 }
 0x7c3   : > { %6409 = vmatmul.mubr.msk.f32.gmra.mrb[156].mxu0 %vm228_vm0, %v10871_v5 }
 0x7c4   : > { %4432 = vmatprep.mubr.f32.mxu0 %v8893_v0 }
 0x7c6   : > { %v6937_v39 = vpop.f32.mrb[128].mxu1 }
 0x7c7   : > { %v4589_v22 = vadd.f32 %v6937_v39, %v6352_v54  ;;  %v4505_v19 = vpop.f32.mrb[129].mxu1  ;;  %6410 = vmatmul.mubr.msk.f32.gmra.mrb[158].mxu0 %vm228_vm0, %v10881_v31 }
 0x7c8   : > { %v4586_v2 = vadd.f32 %v6349_v29, %v4505_v19  ;;  %6967 = vmatprep.mubr.msk.f32.mxu0 %vm228_vm0, %v10755_v45 }
 0x7c9   : > { %v6432_v9 = vmul.f32 -1.442695, %v4589_v22 }
 0x7ca   : > { %v6429_v43 = vmul.f32 -1.442695, %v4586_v2  ;;  %v6940_v3 = vpop.f32.mrb[130].mxu1 }
 0x7cb   : > { %8311 = vpow2.f32 %v6432_v9  ;;  %v4595_v36 = vadd.f32 %v6940_v3, %v6358_v10  ;;  %v4515_v57 = vpop.f32.mrb[131].mxu1  ;;  %v6382_v10 = vld [vmem:[%s9016_s6 + $0xa18] sm:$0xff] }
 0x7cc   : > { %8313 = vpow2.f32 %v6429_v43  ;;  %v4592_v40 = vadd.f32 %v6355_v58, %v4515_v57  ;;  %v6379_v43 = vld [vmem:[%s9016_s6 + $0xa00] sm:$0xff] }
 0x7cd   : > { %v6438_v12 = vmul.f32 -1.442695, %v4595_v36 }
 0x7ce   : > { %v6435_v11 = vmul.f32 -1.442695, %v4592_v40  ;;  %v6943_v15 = vpop.f32.mrb[132].mxu1 }
 0x7cf   : > { %8315 = vpow2.f32 %v6438_v12  ;;  %v4601_v28 = vadd.f32 %v6943_v15, %v6364_v62  ;;  %v4525_v49 = vpop.f32.mrb[133].mxu1  ;;  %v6388_v15 = vld [vmem:[%s9016_s6 + $0xa48] sm:$0xff] }
 0x7d0   : > { %8317 = vpow2.f32 %v6435_v11  ;;  %v4598_v61 = vadd.f32 %v6361_v52, %v4525_v49 }
 0x7d1   : > { %v6444_v42 = vmul.f32 -1.442695, %v4601_v28 }
 0x7d2   : > { %v6441_v6 = vmul.f32 -1.442695, %v4598_v61  ;;  %v6946_v1 = vpop.f32.mrb[134].mxu1 }
 0x7d3   : > { %8319 = vpow2.f32 %v6444_v42  ;;  %v4607_v7 = vadd.f32 %v6946_v1, %v6370_v27  ;;  %v4535_v48 = vpop.f32.mrb[135].mxu1 }
 0x7d4   : > { %8321 = vpow2.f32 %v6441_v6  ;;  %v4604_v8 = vadd.f32 %v6367_v13, %v4535_v48  ;;  %v6385_v6 = vld [vmem:[%s9016_s6 + $0xa30] sm:$0xff] }
 0x7d5   : > { %v8312_v30 = vpop.eup %8311  ;;  %v6450_v37 = vmul.f32 -1.442695, %v4607_v7 }
 0x7d6   : > { %v8314_v34 = vpop.eup %8313  ;;  %v4745_v54 = vadd.f32 1.0, %v8312_v30  ;;  %v6447_v29 = vmul.f32 -1.442695, %v4604_v8  ;;  %v6949_v39 = vpop.f32.mrb[136].mxu1  ;;  %v6394_v8 = vld [vmem:[%s9016_s6 + $0xa78] sm:$0xff] }
 0x7d7   : > { %v4742_v45 = vadd.f32 1.0, %v8314_v34  ;;  %8323 = vpow2.f32 %v6450_v37  ;;  %v4613_v22 = vadd.f32 %v6949_v39, %v6376_v44  ;;  %v4545_v19 = vpop.f32.mrb[137].mxu1 }
 0x7d8   : > { %8325 = vrcp.f32 %v4745_v54  ;;  %v4610_v2 = vadd.f32 %v6373_v35, %v4545_v19  ;;  %v6391_v54 = vld [vmem:[%s9016_s6 + $0xa60] sm:$0xff] }
 0x7d9   : > { %v8316_v9 = vpop.eup %8315  ;;  %8327 = vrcp.f32 %v4742_v45  ;;  %v6456_v58 = vmul.f32 -1.442695, %v4613_v22 }
 0x7da   : > { %v8318_v3 = vpop.eup %8317  ;;  %v4751_v36 = vadd.f32 1.0, %v8316_v9  ;;  %8329 = vpow2.f32 %v6447_v29  ;;  %v6453_v57 = vmul.f32 -1.442695, %v4610_v2  ;;  %v6952_v40 = vpop.f32.mrb[138].mxu1 }
 0x7db   : > { %v4748_v62 = vadd.f32 1.0, %v8318_v3  ;;  %8331 = vpow2.f32 %v6456_v58  ;;  %v4619_v12 = vadd.f32 %v6952_v40, %v6382_v10  ;;  %v4555_v52 = vpop.f32.mrb[139].mxu1 }
 0x7dc   : > { %8333 = vrcp.f32 %v4751_v36  ;;  %v4616_v11 = vadd.f32 %v6379_v43, %v4555_v52 }
 0x7dd   : > { %v8320_v28 = vpop.eup %8319  ;;  %8335 = vrcp.f32 %v4748_v62  ;;  %v6462_v49 = vmul.f32 -1.442695, %v4619_v12 }
 0x7de   : > { %v8322_v61 = vpop.eup %8321  ;;  %v4757_v27 = vadd.f32 1.0, %v8320_v28  ;;  %8337 = vpow2.f32 %v6453_v57  ;;  %v6459_v42 = vmul.f32 -1.442695, %v4616_v11  ;;  %v6955_v13 = vpop.f32.mrb[140].mxu1 }
 0x7df   : > { %v4754_v1 = vadd.f32 1.0, %v8322_v61  ;;  %8339 = vpow2.f32 %v6462_v49  ;;  %v4625_v7 = vadd.f32 %v6955_v13, %v6388_v15  ;;  %v4565_v48 = vpop.f32.mrb[141].mxu1 }
 0x7e0   : > { %8341 = vrcp.f32 %v4757_v27  ;;  %v4622_v30 = vadd.f32 %v6385_v6, %v4565_v48 }
 0x7e1   : > { %v8324_v44 = vpop.eup %8323  ;;  %8343 = vrcp.f32 %v4754_v1 }
 0x7e2   : > { %v8326_v37 = vpop.eup %8325  ;;  %v4763_v35 = vadd.f32 1.0, %v8324_v44  ;;  %8345 = vpow2.f32 %v6459_v42  ;;  %v6958_v34 = vpop.f32.mrb[142].mxu1 }
 0x7e3   : > { %v8328_v29 = vpop.eup %8327  ;;  %8347 = vtanh.f32 %v4625_v7  ;;  %v4631_v39 = vadd.f32 %v6958_v34, %v6394_v8  ;;  %v4575_v45 = vpop.f32.mrb[143].mxu1 }
 0x7e4   : > { %v8330_v22 = vpop.eup %8329  ;;  %8349 = vrcp.f32 %v4763_v35  ;;  %v4628_v10 = vadd.f32 %v6391_v54, %v4575_v45 }
 0x7e5   : > { %v8332_v19 = vpop.eup %8331  ;;  %v4760_v2 = vadd.f32 1.0, %v8330_v22  ;;  %8351 = vtanh.f32 %v4622_v30 }
 0x7e6   : > { %v8334_v9 = vpop.eup %8333  ;;  %8353 = vtanh.f32 %v4631_v39  ;;  %v4769_v12 = vadd.f32 1.0, %v8332_v19 }
 0x7e7   : > { %v8336_v58 = vpop.eup %8335  ;;  %8355 = vrcp.f32 %v4760_v2 }
 0x7e8   : > { %v8338_v43 = vpop.eup %8337  ;;  %8357 = vtanh.f32 %v4628_v10 }
 0x7e9   : > { %v8340_v3 = vpop.eup %8339  ;;  %v4766_v11 = vadd.f32 1.0, %v8338_v43  ;;  %8359 = vrcp.f32 %v4769_v12 }
 0x7ea   : > { %v8342_v36 = vpop.eup %8341  ;;  %v4775_v42 = vadd.f32 1.0, %v8340_v3 }
 0x7eb   : > { %v8344_v57 = vpop.eup %8343  ;;  %v4865_v62 = vmul.f32 %v8342_v36, %v10620_v59  ;;  %8361 = vrcp.f32 %v4766_v11 }
 0x7ec   : > { %v8346_v40 = vpop.eup %8345  ;;  %v4862_v28 = vmul.f32 %v8344_v57, %v10624_v4  ;;  %v6356_v57 = vld [vmem:[%s9016_s6 + $0x948] sm:$0xff] }
 0x7ed   : > { %v8348_v52 = vpop.eup %8347  ;;  %v4772_v8 = vadd.f32 1.0, %v8346_v40 }
 0x7ee   : > { %v8350_v15 = vpop.eup %8349  ;;  %v4877_v49 = vmul.f32 %v8348_v52, %v8326_v37  ;;  %v6357_v52 = vld [vmem:[%s9016_s6 + $0x950] sm:$0xff] }
 0x7ef   : > { %v8352_v61 = vpop.eup %8351  ;;  %v4871_v27 = vmul.f32 %v8350_v15, %v10626_v25 }
 0x7f0   : > { %v8354_v13 = vpop.eup %8353  ;;  %v10900_v6 = vadd.f32 %v4877_v49, %v4865_v62  ;;  %v4874_v1 = vmul.f32 %v8352_v61, %v8328_v29  ;;  %v6359_v61 = vld [vmem:[%s9016_s6 + $0x960] sm:$0xff] }
 0x7f1   : > { %v8356_v7 = vpop.eup %8355  ;;  %v4883_v48 = vmul.f32 %v8354_v13, %v8334_v9 }
 0x7f2   : > { %v4868_v59 = vmul.f32 %v8356_v7, %v10630_v53  ;;  %8363 = vtanh.f32 %v10900_v6  ;;  %v10904_v44 = vadd.f32 %v4874_v1, %v4862_v28  ;;  %v8358_v4 = vpop.eup %8357  ;;  %v6360_v7 = vld [vmem:[%s9016_s6 + $0x968] sm:$0xff] }
 0x7f3   : > { %8365 = vrcp.f32 %v4775_v42  ;;  %v10906_v30 = vadd.f32 %v4883_v48, %v4871_v27  ;;  %v4880_v25 = vmul.f32 %v8358_v4, %v8336_v58  ;;  %v8360_v53 = vpop.eup %8359 }
 0x7f4   : > { %8367 = vtanh.f32 %v10904_v44 }
 0x7f5   : > { %8369 = vtanh.f32 %v10906_v30  ;;  %v10910_v37 = vadd.f32 %v4880_v25, %v4868_v59  ;;  %v8362_v35 = vpop.eup %8361  ;;  %v6362_v25 = vld [vmem:[%s9016_s6 + $0x978] sm:$0xff] }
 0x7f6   : > { %8371 = vrcp.f32 %v4772_v8 }
 0x7f7   : > { %8373 = vtanh.f32 %v10910_v37 }
 0x7fc   : > { %v8364_v34 = vpop.eup %8363 }
 0x7fd   : > { %v8366_v54 = vpop.eup %8365  ;;  %v4913_v29 = vmul.f32 %v8364_v34, %v8360_v53 }
 0x7fe   : > { %v8368_v39 = vpop.eup %8367 }
 0x7ff   : > { %v8370_v45 = vpop.eup %8369  ;;  %v4910_v22 = vmul.f32 %v8368_v39, %v8362_v35 }
 0x800   : > { %v8372_v19 = vpop.eup %8371  ;;  %v4919_v10 = vmul.f32 %v8370_v45, %v8366_v54  ;;  %v6363_v54 = vld [vmem:[%s9016_s6 + $0x980] sm:$0xff] }
 0x801   : > { %v7095_v2 = vpack.c.bf16 %v4913_v29, %v4910_v22  ;;  %v8374_v9 = vpop.eup %8373  ;;  %v6365_v22 = vld [vmem:[%s9016_s6 + $0x990] sm:$0xff] }
 0x802   : > { %v4916_v58 = vmul.f32 %v8374_v9, %v8372_v19  ;;  %v6366_v9 = vld [vmem:[%s9016_s6 + $0x998] sm:$0xff] }
 0x803   : > { %7096 = vmatprep.subr.bf16.mxu0 %v7095_v2 }
 0x804   : > { %7098 = vmatpush3.bf16.msra.mxu0 %v7095_v2  ;;  %v7099_v43 = vpack.c.bf16 %v4919_v10, %v4916_v58 }
 0x806   : > { %7100 = vmatprep.subr.bf16.mxu0 %v7099_v43 }
 0x808   : > { %7102 = vmatpush3.bf16.msra.mxu0 %v7099_v43 }
 0x80b   : > { %6968 = vmatmul.mubr.msk.f32.vlgmr.msra.gmra.mrb[160].mxu0 %vm228_vm0, %v10763_v21 }
 0x80c   : > { %6970 = vmatprep.mubr.msk.f32.mxu0 %vm228_vm0, %v10771_v17 }
 0x80f   : > { %6971 = vmatmul.mubr.msk.f32.gmra.mrb[162].mxu0 %vm228_vm0, %v10779_v26  ;;  %v6347_v26 = vld [vmem:[%s9016_s6 + $0x900] sm:$0xff] }
 0x810   : > { %6973 = vmatprep.mubr.msk.f32.mxu0 %vm228_vm0, %v10787_v14 }
 0x813   : > { %6974 = vmatmul.mubr.msk.f32.gmra.mrb[164].mxu0 %vm228_vm0, %v10795_v50 }
 0x814   : > { %6976 = vmatprep.mubr.msk.f32.mxu0 %vm228_vm0, %v10803_v32  ;;  %v6348_v32 = vld [vmem:[%s9016_s6 + $0x908] sm:$0xff] }
 0x817   : > { %6977 = vmatmul.mubr.msk.f32.gmra.mrb[166].mxu0 %vm228_vm0, %v10811_v56 }
 0x818   : > { %6979 = vmatprep.mubr.msk.f32.mxu0 %vm228_vm0, %v10819_v46  ;;  %v6350_v46 = vld [vmem:[%s9016_s6 + $0x918] sm:$0xff] }
 0x81b   : > { %6980 = vmatmul.mubr.msk.f32.gmra.mrb[168].mxu0 %vm228_vm0, %v10827_v23 }
 0x81c   : > { %6982 = vmatprep.mubr.msk.f32.mxu0 %vm228_vm0, %v10835_v38  ;;  %v6351_v38 = vld [vmem:[%s9016_s6 + $0x920] sm:$0xff] }
 0x81f   : > { %6983 = vmatmul.mubr.msk.f32.gmra.mrb[170].mxu0 %vm228_vm0, %v10843_v51 }
 0x820   : > { %6985 = vmatprep.mubr.msk.f32.mxu0 %vm228_vm0, %v10851_v41 }
 0x823   : > { %6986 = vmatmul.mubr.msk.f32.gmra.mrb[172].mxu0 %vm228_vm0, %v10861_v33  ;;  %v6353_v33 = vld [vmem:[%s9016_s6 + $0x930] sm:$0xff] }
 0x824   : > { %6988 = vmatprep.mubr.msk.f32.mxu0 %vm228_vm0, %v10871_v5 }
 0x827   : > { %6989 = vmatmul.mubr.msk.f32.gmra.mrb[174].mxu0 %vm228_vm0, %v10881_v31  ;;  %v6354_v31 = vld [vmem:[%s9016_s6 + $0x938] sm:$0xff] }
 0x85e   : > { %v4344_v21 = vpop.f32.mrb[128].mxu0 }
 0x85f   : > { %v4346_v17 = vpop.f32.mrb[129].mxu0  ;;  %v4584_v50 = vadd.f32 %v6347_v26, %v4344_v21 }
 0x860   : > { %v4585_v23 = vadd.f32 %v6348_v32, %v4346_v17 }
 0x861   : > { %v6427_v41 = vmul.f32 -1.442695, %v4584_v50 }
 0x862   : > { %v4350_v14 = vpop.f32.mrb[130].mxu0  ;;  %v6428_v40 = vmul.f32 -1.442695, %v4585_v23 }
 0x863   : > { %v4352_v56 = vpop.f32.mrb[131].mxu0  ;;  %v4587_v3 = vadd.f32 %v6350_v46, %v4350_v14  ;;  %8375 = vpow2.f32 %v6427_v41 }
 0x864   : > { %v4588_v36 = vadd.f32 %v6351_v38, %v4352_v56  ;;  %8377 = vpow2.f32 %v6428_v40 }
 0x865   : > { %v6430_v28 = vmul.f32 -1.442695, %v4587_v3  ;;  %v6368_v3 = vld [vmem:[%s9016_s6 + $0x9a8] sm:$0xff] }
 0x866   : > { %v4356_v51 = vpop.f32.mrb[132].mxu0  ;;  %v6431_v27 = vmul.f32 -1.442695, %v4588_v36 }
 0x867   : > { %v4358_v5 = vpop.f32.mrb[133].mxu0  ;;  %v4590_v62 = vadd.f32 %v6353_v33, %v4356_v51  ;;  %8379 = vpow2.f32 %v6430_v28 }
 0x868   : > { %v4591_v11 = vadd.f32 %v6354_v31, %v4358_v5  ;;  %8381 = vpow2.f32 %v6431_v27 }
 0x869   : > { %v6433_v13 = vmul.f32 -1.442695, %v4590_v62  ;;  %v6369_v62 = vld [vmem:[%s9016_s6 + $0x9b0] sm:$0xff] }
 0x86a   : > { %v4362_v12 = vpop.f32.mrb[134].mxu0  ;;  %v6434_v48 = vmul.f32 -1.442695, %v4591_v11 }
 0x86b   : > { %v4364_v15 = vpop.f32.mrb[135].mxu0  ;;  %v4593_v49 = vadd.f32 %v6356_v57, %v4362_v12  ;;  %8383 = vpow2.f32 %v6433_v13  ;;  %v6371_v13 = vld [vmem:[%s9016_s6 + $0x9c0] sm:$0xff] }
 0x86c   : > { %v4594_v42 = vadd.f32 %v6357_v52, %v4364_v15  ;;  %8385 = vpow2.f32 %v6434_v48 }
 0x86d   : > { %v6436_v4 = vmul.f32 -1.442695, %v4593_v49  ;;  %v8376_v19 = vpop.eup %8375 }
 0x86e   : > { %v4368_v1 = vpop.f32.mrb[136].mxu0  ;;  %v6437_v53 = vmul.f32 -1.442695, %v4594_v42  ;;  %v8378_v26 = vpop.eup %8377  ;;  %v4740_v14 = vadd.f32 1.0, %v8376_v19 }
 0x86f   : > { %v4596_v59 = vadd.f32 %v6359_v61, %v4368_v1  ;;  %v4370_v8 = vpop.f32.mrb[137].mxu0  ;;  %8387 = vpow2.f32 %v6436_v4  ;;  %v4741_v51 = vadd.f32 1.0, %v8378_v26 }
 0x870   : > { %v4597_v35 = vadd.f32 %v6360_v7, %v4370_v8  ;;  %8389 = vpow2.f32 %v6437_v53  ;;  %v6372_v7 = vld [vmem:[%s9016_s6 + $0x9c8] sm:$0xff] }
 0x871   : > { %v6439_v29 = vmul.f32 -1.442695, %v4596_v59  ;;  %v8380_v56 = vpop.eup %8379 }
 0x872   : > { %v4374_v34 = vpop.f32.mrb[138].mxu0  ;;  %v6440_v2 = vmul.f32 -1.442695, %v4597_v35  ;;  %v8382_v38 = vpop.eup %8381  ;;  %v4743_v36 = vadd.f32 1.0, %v8380_v56 }
 0x873   : > { %v4599_v39 = vadd.f32 %v6362_v25, %v4374_v34  ;;  %v4376_v45 = vpop.f32.mrb[139].mxu0  ;;  %8391 = vpow2.f32 %v6439_v29  ;;  %v4744_v40 = vadd.f32 1.0, %v8382_v38  ;;  %v6374_v29 = vld [vmem:[%s9016_s6 + $0x9d8] sm:$0xff] }
 0x874   : > { %v4600_v10 = vadd.f32 %v6363_v54, %v4376_v45  ;;  %8393 = vpow2.f32 %v6440_v2 }
 0x875   : > { %v6442_v58 = vmul.f32 -1.442695, %v4599_v39  ;;  %v8384_v33 = vpop.eup %8383 }
 0x876   : > { %v4380_v43 = vpop.f32.mrb[140].mxu0  ;;  %v6443_v32 = vmul.f32 -1.442695, %v4600_v10  ;;  %v8386_v31 = vpop.eup %8385  ;;  %v4746_v11 = vadd.f32 1.0, %v8384_v33  ;;  %v6375_v10 = vld [vmem:[%s9016_s6 + $0x9e0] sm:$0xff] }
 0x877   : > { %v4602_v21 = vadd.f32 %v6365_v22, %v4380_v43  ;;  %v4382_v17 = vpop.f32.mrb[141].mxu0  ;;  %8395 = vpow2.f32 %v6442_v58  ;;  %v4747_v49 = vadd.f32 1.0, %v8386_v31 }
 0x878   : > { %v4603_v50 = vadd.f32 %v6366_v9, %v4382_v17  ;;  %8397 = vrcp.f32 %v4740_v14  ;;  %v6377_v17 = vld [vmem:[%s9016_s6 + $0x9f0] sm:$0xff] }
 0x879   : > { %v6445_v46 = vmul.f32 -1.442695, %v4602_v21  ;;  %8399 = vpow2.f32 %v6443_v32  ;;  %v8388_v57 = vpop.eup %8387 }
 0x87a   : > { %v4386_v23 = vpop.f32.mrb[142].mxu0  ;;  %v6446_v5 = vmul.f32 -1.442695, %v4603_v50  ;;  %v8390_v52 = vpop.eup %8389  ;;  %v4749_v27 = vadd.f32 1.0, %v8388_v57  ;;  %v6383_v57 = vld [vmem:[%s9016_s6 + $0xa20] sm:$0xff] }
 0x87b   : > { %v4388_v41 = vpop.f32.mrb[143].mxu0  ;;  %8401 = vpow2.f32 %v6445_v46  ;;  %v4605_v15 = vadd.f32 %v6368_v3, %v4386_v23  ;;  %v4750_v1 = vadd.f32 1.0, %v8390_v52  ;;  %v6380_v52 = vld [vmem:[%s9016_s6 + $0xa08] sm:$0xff] }
 0x87c   : > { %8403 = vrcp.f32 %v4741_v51  ;;  %v4606_v42 = vadd.f32 %v6369_v62, %v4388_v41  ;;  %v6378_v41 = vld [vmem:[%s9016_s6 + $0x9f8] sm:$0xff] }
 0x87d   : > { %8405 = vpow2.f32 %v6446_v5  ;;  %v8392_v61 = vpop.eup %8391  ;;  %v6448_v8 = vmul.f32 -1.442695, %v4605_v15  ;;  %v6384_v15 = vld [vmem:[%s9016_s6 + $0xa28] sm:$0xff] }
 0x87e   : > { %v4392_v12 = vpop.f32.mrb[144].mxu0  ;;  %8407 = vrcp.f32 %v4743_v36  ;;  %v8394_v59 = vpop.eup %8393  ;;  %v4752_v53 = vadd.f32 1.0, %v8392_v61  ;;  %v6449_v34 = vmul.f32 -1.442695, %v4606_v42  ;;  %v6381_v61 = vld [vmem:[%s9016_s6 + $0xa10] sm:$0xff] }
 0x87f   : > { %v4394_v28 = vpop.f32.mrb[145].mxu0  ;;  %8409 = vrcp.f32 %v4744_v40  ;;  %v4608_v35 = vadd.f32 %v6371_v13, %v4392_v12  ;;  %v4753_v45 = vadd.f32 1.0, %v8394_v59 }
 0x880   : > { %8411 = vrcp.f32 %v4746_v11  ;;  %v4609_v54 = vadd.f32 %v6372_v7, %v4394_v28 }
 0x881   : > { %v8396_v25 = vpop.eup %8395  ;;  %8413 = vrcp.f32 %v4747_v49  ;;  %v6451_v43 = vmul.f32 -1.442695, %v4608_v35 }
 0x882   : > { %v4398_v48 = vpop.f32.mrb[146].mxu0  ;;  %8415 = vrcp.f32 %v4749_v27  ;;  %v10962_v39 = vpop.eup %8397  ;;  %v4755_v2 = vadd.f32 1.0, %v8396_v25  ;;  %v6452_v14 = vmul.f32 -1.442695, %v4609_v54 }
 0x883   : > { %v4400_v4 = vpop.f32.mrb[147].mxu0  ;;  %8417 = vrcp.f32 %v4750_v1  ;;  %v8400_v19 = vpop.eup %8399  ;;  %v4611_v21 = vadd.f32 %v6374_v29, %v4398_v48  ;;  %v6386_v1 = vld [vmem:[%s9016_s6 + $0xa38] sm:$0xff] }
 0x884   : > { %8419 = vpow2.f32 %v6448_v8  ;;  %v4756_v32 = vadd.f32 1.0, %v8400_v19  ;;  %v4612_v56 = vadd.f32 %v6375_v10, %v4400_v4  ;;  %v6389_v10 = vld [vmem:[%s9016_s6 + $0xa50] sm:$0xff] }
 0x885   : > { %v8402_v58 = vpop.eup %8401  ;;  %8421 = vrcp.f32 %v4752_v53  ;;  %v6454_v3 = vmul.f32 -1.442695, %v4611_v21 }
 0x886   : > { %v4404_v22 = vpop.f32.mrb[148].mxu0  ;;  %v10966_v26 = vpop.eup %8403  ;;  %8423 = vpow2.f32 %v6449_v34  ;;  %v4758_v38 = vadd.f32 1.0, %v8402_v58  ;;  %v6455_v62 = vmul.f32 -1.442695, %v4612_v56  ;;  %v6390_v56 = vld [vmem:[%s9016_s6 + $0xa58] sm:$0xff] }
 0x887   : > { %v4406_v9 = vpop.f32.mrb[149].mxu0  ;;  %v8406_v50 = vpop.eup %8405  ;;  %8425 = vrcp.f32 %v4753_v45  ;;  %v4614_v51 = vadd.f32 %v6377_v17, %v4404_v22  ;;  %v6387_v22 = vld [vmem:[%s9016_s6 + $0xa40] sm:$0xff] }
 0x888   : > { %v10968_v23 = vpop.eup %8407  ;;  %8427 = vrcp.f32 %v4755_v2  ;;  %v4759_v36 = vadd.f32 1.0, %v8406_v50  ;;  %v4615_v12 = vadd.f32 %v6378_v41, %v4406_v9 }
 0x889   : > { %v10971_v5 = vpop.eup %8409  ;;  %8429 = vpow2.f32 %v6451_v43  ;;  %v6457_v49 = vmul.f32 -1.442695, %v4614_v51  ;;  %v6392_v51 = vld [vmem:[%s9016_s6 + $0xa68] sm:$0xff] }
 0x88a   : > { %v4410_v46 = vpop.f32.mrb[150].mxu0  ;;  %v10973_v31 = vpop.eup %8411  ;;  %8431 = vpow2.f32 %v6452_v14  ;;  %v6458_v4 = vmul.f32 -1.442695, %v4615_v12 }
 0x88b   : > { %v4412_v33 = vpop.f32.mrb[151].mxu0  ;;  %v10976_v40 = vpop.eup %8413  ;;  %8433 = vrcp.f32 %v4756_v32  ;;  %v4617_v48 = vadd.f32 %v6380_v52, %v4410_v46 }
 0x88c   : > { %v10980_v28 = vpop.eup %8415  ;;  %8435 = vrcp.f32 %v4758_v38  ;;  %v4618_v25 = vadd.f32 %v6381_v61, %v4412_v33 }
 0x88d   : > { %v10983_v42 = vpop.eup %8417  ;;  %8437 = vpow2.f32 %v6454_v3  ;;  %v6460_v2 = vmul.f32 -1.442695, %v4617_v48 }
 0x88e   : > { %v4416_v11 = vpop.f32.mrb[152].mxu0  ;;  %v8420_v7 = vpop.eup %8419  ;;  %8439 = vrcp.f32 %v4759_v36  ;;  %v6461_v58 = vmul.f32 -1.442695, %v4618_v25  ;;  %v6393_v36 = vld [vmem:[%s9016_s6 + $0xa70] sm:$0xff] }
 0x88f   : > { %v4418_v27 = vpop.f32.mrb[153].mxu0  ;;  %v4620_v13 = vadd.f32 %v6383_v57, %v4416_v11  ;;  %v8422_v8 = vpop.eup %8421  ;;  %8441 = vpow2.f32 %v6455_v62  ;;  %v4761_v45 = vadd.f32 1.0, %v8420_v7 }
 0x890   : > { %v4621_v59 = vadd.f32 %v6384_v15, %v4418_v27  ;;  %v8424_v35 = vpop.eup %8423  ;;  %8443 = vpow2.f32 %v6457_v49 }
 0x891   : > { %v8426_v29 = vpop.eup %8425  ;;  %8445 = vtanh.f32 %v4620_v13  ;;  %v4762_v38 = vadd.f32 1.0, %v8424_v35 }
 0x892   : > { %v4422_v53 = vpop.f32.mrb[154].mxu0  ;;  %v8428_v19 = vpop.eup %8427  ;;  %8447 = vtanh.f32 %v4621_v59 }
 0x893   : > { %v4623_v34 = vadd.f32 %v6386_v1, %v4422_v53  ;;  %v4424_v54 = vpop.f32.mrb[155].mxu0  ;;  %v8430_v9 = vpop.eup %8429  ;;  %8449 = vpow2.f32 %v6458_v4  ;;  %v4860_v1 = vmul.f32 %v8422_v8, %v10716_v24  ;;  %v4861_v4 = vmul.f32 %v8426_v29, %v10719_v60 }
 0x894   : > { %v8432_v21 = vpop.eup %8431  ;;  %v4624_v17 = vadd.f32 %v6387_v22, %v4424_v54  ;;  %v4764_v33 = vadd.f32 1.0, %v8430_v9 }
 0x895   : > { %8451 = vtanh.f32 %v4623_v34  ;;  %v8434_v50 = vpop.eup %8433  ;;  %v4765_v27 = vadd.f32 1.0, %v8432_v21 }
 0x896   : > { %v4428_v43 = vpop.f32.mrb[156].mxu0  ;;  %8453 = vrcp.f32 %v4761_v45  ;;  %v8436_v46 = vpop.eup %8435  ;;  %v4863_v45 = vmul.f32 %v8428_v19, %v10723_v55  ;;  %v4864_v9 = vmul.f32 %v8434_v50, %v10731_v20 }
 0x897   : > { %v4430_v14 = vpop.f32.mrb[157].mxu0  ;;  %v4626_v32 = vadd.f32 %v6389_v10, %v4428_v43  ;;  %8455 = vpow2.f32 %v6460_v2  ;;  %v8438_v41 = vpop.eup %8437 }
 0x898   : > { %8457 = vpow2.f32 %v6461_v58  ;;  %v8440_v57 = vpop.eup %8439  ;;  %v4627_v62 = vadd.f32 %v6390_v56, %v4430_v14  ;;  %v4767_v7 = vadd.f32 1.0, %v8438_v41 }
 0x899   : > { %8459 = vtanh.f32 %v4624_v17  ;;  %v8442_v52 = vpop.eup %8441 }
 0x89a   : > { %v4434_v3 = vpop.f32.mrb[158].mxu0  ;;  %8461 = vtanh.f32 %v4626_v32  ;;  %v8444_v15 = vpop.eup %8443  ;;  %v4768_v35 = vadd.f32 1.0, %v8442_v52 }
 0x89b   : > { %v4436_v12 = vpop.f32.mrb[159].mxu0  ;;  %v4629_v11 = vadd.f32 %v6392_v51, %v4434_v3  ;;  %8463 = vrcp.f32 %v4762_v38  ;;  %v8446_v61 = vpop.eup %8445  ;;  %v4770_v22 = vadd.f32 1.0, %v8444_v15 }
 0x89c   : > { %v4630_v49 = vadd.f32 %v6393_v36, %v4436_v12  ;;  %8465 = vrcp.f32 %v4764_v33  ;;  %v8448_v13 = vpop.eup %8447  ;;  %v4872_v48 = vmul.f32 %v8446_v61, %v10962_v39 }
 0x89d   : > { %8467 = vtanh.f32 %v4627_v62  ;;  %v8450_v59 = vpop.eup %8449  ;;  %v4873_v25 = vmul.f32 %v8448_v13, %v10966_v26 }
 0x89e   : > { %8469 = vtanh.f32 %v4629_v11  ;;  %v10995_v34 = vadd.f32 %v4872_v48, %v4860_v1  ;;  %v4771_v2 = vadd.f32 1.0, %v8450_v59 }
 0x89f   : > { %v8452_v53 = vpop.eup %8451  ;;  %8471 = vtanh.f32 %v4630_v49  ;;  %v10998_v24 = vadd.f32 %v4873_v25, %v4861_v4 }
 0x8a0   : > { %v8454_v54 = vpop.eup %8453  ;;  %8473 = vrcp.f32 %v4765_v27  ;;  %v4875_v39 = vmul.f32 %v8452_v53, %v10968_v23  ;;  %v4866_v23 = vmul.f32 %v8436_v46, %v10733_v18 }
 0x8a1   : > { %v8456_v8 = vpop.eup %8455  ;;  %8475 = vrcp.f32 %v4767_v7 }
 0x8a2   : > { %v8458_v60 = vpop.eup %8457  ;;  %8477 = vtanh.f32 %v10995_v34  ;;  %v11002_v26 = vadd.f32 %v4875_v39, %v4863_v45  ;;  %v4773_v58 = vadd.f32 1.0, %v8456_v8  ;;  %v8775_v39 = vld [vmem:[%s11260_s1] sm:$0xff]  ;;  %v8776_v8 = vld [vmem:[%s11260_s1 + $0x8] sm:$0xff] }
 0x8a3   : > { %v8460_v29 = vpop.eup %8459  ;;  %8479 = vrcp.f32 %v4768_v35  ;;  %v4774_v17 = vadd.f32 1.0, %v8458_v60  ;;  %v8778_v60 = vld [vmem:[%s11260_s1 + $0x18] sm:$0xff] }
 0x8a4   : > { %v8462_v10 = vpop.eup %8461  ;;  %8481 = vtanh.f32 %v11002_v26  ;;  %v4876_v55 = vmul.f32 %v8460_v29, %v10971_v5  ;;  %v4867_v5 = vmul.f32 %v8440_v57, %v10741_v63  ;;  %v8779_v29 = vld [vmem:[%s11260_s1 + $0x20] sm:$0xff] }
 0x8a5   : > { %v8464_v19 = vpop.eup %8463  ;;  %8483 = vrcp.f32 %v4770_v22  ;;  %v4878_v43 = vmul.f32 %v8462_v10, %v10973_v31  ;;  %v4869_v31 = vmul.f32 %v8454_v54, %v10745_v16  ;;  %v8777_v22 = vld [vmem:[%s11260_s1 + $0x10] sm:$0xff] }
 0x8a6   : > { %v8466_v21 = vpop.eup %8465  ;;  %8485 = vtanh.f32 %v10998_v24  ;;  %v11010_v14 = vadd.f32 %v4876_v55, %v4864_v9  ;;  %v4870_v51 = vmul.f32 %v8464_v19, %v10748_v47  ;;  %v6465_v10 = vld [vmem:[%s9016_s6 + $0xa90] sm:$0xff]  ;;  %v8780_v55 = vld [vmem:[%s11260_s1 + $0x28] sm:$0xff] }
 0x8a7   : > { %v8468_v32 = vpop.eup %8467  ;;  %8487 = vrcp.f32 %v4771_v2  ;;  %v11012_v20 = vadd.f32 %v4878_v43, %v4866_v23  ;;  %v6468_v2 = vld [vmem:[%s9016_s6 + $0xaa8] sm:$0xff]  ;;  %v6474_v43 = vld [vmem:[%s9016_s6 + $0xad8] sm:$0xff] }
 0x8a8   : > { %v8470_v50 = vpop.eup %8469  ;;  %8489 = vtanh.f32 %v11010_v14  ;;  %v4879_v18 = vmul.f32 %v8468_v32, %v10976_v40 }
 0x8a9   : > { %v8472_v56 = vpop.eup %8471  ;;  %8491 = vrcp.f32 %v4773_v58  ;;  %v4881_v46 = vmul.f32 %v8470_v50, %v10980_v28 }
 0x8aa   : > { %v8474_v38 = vpop.eup %8473  ;;  %8493 = vrcp.f32 %v4774_v17  ;;  %v11020_v41 = vadd.f32 %v4879_v18, %v4867_v5  ;;  %v4882_v33 = vmul.f32 %v8472_v56, %v10983_v42  ;;  %v6471_v17 = vld [vmem:[%s9016_s6 + $0xac0] sm:$0xff]  ;;  %v8781_v5 = vld [vmem:[%s11260_s1 + $0x30] sm:$0xff] }
 0x8ab   : > { %v8476_v3 = vpop.eup %8475  ;;  %8495 = vtanh.f32 %v11012_v20  ;;  %v11024_v63 = vadd.f32 %v4881_v46, %v4869_v31  ;;  %v6480_v46 = vld [vmem:[%s9016_s6 + $0xb08] sm:$0xff] }
 0x8ac   : > { %v8478_v40 = vpop.eup %8477  ;;  %8497 = vtanh.f32 %v11020_v41  ;;  %v11027_v16 = vadd.f32 %v4882_v33, %v4870_v51  ;;  %v6477_v51 = vld [vmem:[%s9016_s6 + $0xaf0] sm:$0xff] }
 0x8ad   : > { %v8480_v36 = vpop.eup %8479  ;;  %8499 = vtanh.f32 %v11024_v63  ;;  %v4908_v57 = vmul.f32 %v8478_v40, %v8466_v21  ;;  %v8782_v40 = vld [vmem:[%s11260_s1 + $0x38] sm:$0xff] }
 0x8ae   : > { %v8482_v28 = vpop.eup %8481  ;;  %8501 = vtanh.f32 %v11027_v16 }
 0x8af   : > { %v8484_v47 = vpop.eup %8483  ;;  %v4911_v62 = vmul.f32 %v8482_v28, %v8476_v3 }
 0x8b0   : > { %v8486_v42 = vpop.eup %8485 }
 0x8b1   : > { %v8488_v12 = vpop.eup %8487  ;;  %v7089_v52 = vpack.c.bf16 %v4911_v62, %v4908_v57  ;;  %v4909_v49 = vmul.f32 %v8486_v42, %v8474_v38  ;;  %v6486_v57 = vld [vmem:[%s9016_s6 + $0xb38] sm:$0xff]  ;;  %v6483_v42 = vld [vmem:[%s9016_s6 + $0xb20] sm:$0xff] }
 0x8b2   : > { %v8490_v11 = vpop.eup %8489 }
 0x8b3   : > { %v8492_v15 = vpop.eup %8491  ;;  %v4912_v61 = vmul.f32 %v8490_v11, %v8480_v36  ;;  %v8783_v11 = vld [vmem:[%s11260_s1 + $0x40] sm:$0xff] }
 0x8b4   : > { %v8494_v27 = vpop.eup %8493 }
 0x8b5   : > { %v8496_v13 = vpop.eup %8495  ;;  %v7087_v1 = vpack.c.bf16 %v4912_v61, %v4909_v49 }
 0x8b6   : > { %v8498_v7 = vpop.eup %8497  ;;  %v4914_v4 = vmul.f32 %v8496_v13, %v8484_v47 }
 0x8b7   : > { %v8500_v48 = vpop.eup %8499  ;;  %7088 = vmatprep.subr.bf16.mxu1 %v7087_v1  ;;  %v4915_v53 = vmul.f32 %v8498_v7, %v8488_v12  ;;  %v6489_v7 = vld [vmem:[%s9016_s6 + $0xb50] sm:$0xff] }
 0x8b8   : > { %v8502_v59 = vpop.eup %8501  ;;  %7090 = vmatpush1.bf16.msra.mxu1 %v7089_v52  ;;  %v4917_v25 = vmul.f32 %v8500_v48, %v8492_v15 }
 0x8b9   : > { %v4918_v35 = vmul.f32 %v8502_v59, %v8494_v27  ;;  %v6492_v27 = vld [vmem:[%s9016_s6 + $0xb68] sm:$0xff] }
 0x8ba   : > { %v7093_v54 = vpack.c.bf16 %v4917_v25, %v4914_v4 }
 0x8bb   : > { %v7091_v45 = vpack.c.bf16 %v4918_v35, %v4915_v53  ;;  %v8784_v35 = vld [vmem:[%s11260_s1 + $0x48] sm:$0xff] }
 0x8bd   : > { %7092 = vmatprep.subr.bf16.mxu1 %v7091_v45 }
 0x8be   : > { %7094 = vmatpush1.bf16.msra.mxu1 %v7093_v54 }
 0x8c1   : > { %6511 = vmatmul.mubr.msk.f32.vlgmr.msra.gmra.mrb[144].mxu1 %vm228_vm0, %v8775_v39 }
 0x8c2   : > { %5039 = vmatprep.mubr.f32.mxu1 %v8893_v0 }
 0x8c5   : > { %6512 = vmatmul.mubr.msk.f32.gmra.mrb[146].mxu1 %vm228_vm0, %v8776_v8  ;;  %v6498_v8 = vld [vmem:[%s9016_s6 + $0xb98] sm:$0xff] }
 0x8c6   : > { %5045 = vmatprep.mubr.f32.mxu1 %v8893_v0 }
 0x8c9   : > { %6513 = vmatmul.mubr.msk.f32.gmra.mrb[148].mxu1 %vm228_vm0, %v8777_v22 }
 0x8ca   : > { %5051 = vmatprep.mubr.f32.mxu1 %v8893_v0 }
 0x8cd   : > { %6514 = vmatmul.mubr.msk.f32.gmra.mrb[150].mxu1 %vm228_vm0, %v8778_v60 }
 0x8ce   : > { %5057 = vmatprep.mubr.f32.mxu1 %v8893_v0 }
 0x8d1   : > { %6515 = vmatmul.mubr.msk.f32.gmra.mrb[152].mxu1 %vm228_vm0, %v8779_v29  ;;  %v6495_v29 = vld [vmem:[%s9016_s6 + $0xb80] sm:$0xff] }
 0x8d2   : > { %5063 = vmatprep.mubr.f32.mxu1 %v8893_v0 }
 0x8d5   : > { %6516 = vmatmul.mubr.msk.f32.gmra.mrb[154].mxu1 %vm228_vm0, %v8780_v55 }
 0x8d6   : > { %5069 = vmatprep.mubr.f32.mxu1 %v8893_v0 }
 0x8d9   : > { %6517 = vmatmul.mubr.msk.f32.gmra.mrb[156].mxu1 %vm228_vm0, %v8781_v5 }
 0x8da   : > { %5075 = vmatprep.mubr.f32.mxu1 %v8893_v0 }
 0x8dd   : > { %6518 = vmatmul.mubr.msk.f32.gmra.mrb[158].mxu1 %vm228_vm0, %v8782_v40  ;;  %v6510_v40 = vld [vmem:[%s9016_s6 + $0xbf8] sm:$0xff] }
 0x8de   : > { %v6969_v9 = vpop.f32.mrb[160].mxu0  ;;  %5081 = vmatprep.mubr.f32.mxu1 %v8893_v0 }
 0x8df   : > { %v5280_v19 = vadd.f32 %v6969_v9, %v6468_v2  ;;  %v5196_v23 = vpop.f32.mrb[161].mxu0 }
 0x8e0   : > { %v5277_v58 = vadd.f32 %v6465_v10, %v5196_v23  ;;  %v8785_v23 = vld [vmem:[%s11260_s1 + $0x50] sm:$0xff] }
 0x8e1   : > { %v6548_v21 = vmul.f32 -1.442695, %v5280_v19  ;;  %6519 = vmatmul.mubr.msk.f32.gmra.mrb[160].mxu1 %vm228_vm0, %v8783_v11 }
 0x8e2   : > { %v6545_v32 = vmul.f32 -1.442695, %v5277_v58  ;;  %v6972_v50 = vpop.f32.mrb[162].mxu0  ;;  %5087 = vmatprep.mubr.f32.mxu1 %v8893_v0 }
 0x8e3   : > { %8503 = vpow2.f32 %v6548_v21  ;;  %v5286_v18 = vadd.f32 %v6972_v50, %v6474_v43  ;;  %v5206_v56 = vpop.f32.mrb[163].mxu0 }
 0x8e4   : > { %8505 = vpow2.f32 %v6545_v32  ;;  %v5283_v31 = vadd.f32 %v6471_v17, %v5206_v56  ;;  %v6504_v17 = vld [vmem:[%s9016_s6 + $0xbc8] sm:$0xff] }
 0x8e5   : > { %v6554_v38 = vmul.f32 -1.442695, %v5286_v18  ;;  %6520 = vmatmul.mubr.msk.f32.gmra.mrb[162].mxu1 %vm228_vm0, %v8784_v35  ;;  %v8789_v35 = vld [vmem:[%s11260_s1 + $0x70] sm:$0xff] }
 0x8e6   : > { %v6551_v33 = vmul.f32 -1.442695, %v5283_v31  ;;  %v6975_v3 = vpop.f32.mrb[164].mxu0  ;;  %5093 = vmatprep.mubr.f32.mxu1 %v8893_v0 }
 0x8e7   : > { %8507 = vpow2.f32 %v6554_v38  ;;  %v5292_v36 = vadd.f32 %v6975_v3, %v6480_v46  ;;  %v5216_v28 = vpop.f32.mrb[165].mxu0  ;;  %v6501_v46 = vld [vmem:[%s9016_s6 + $0xbb0] sm:$0xff] }
 0x8e8   : > { %8509 = vpow2.f32 %v6551_v33  ;;  %v5289_v47 = vadd.f32 %v6477_v51, %v5216_v28  ;;  %v8786_v51 = vld [vmem:[%s11260_s1 + $0x58] sm:$0xff] }
 0x8e9   : > { %v6560_v62 = vmul.f32 -1.442695, %v5292_v36  ;;  %6521 = vmatmul.mubr.msk.f32.gmra.mrb[164].mxu1 %vm228_vm0, %v8785_v23 }
 0x8ea   : > { %v6557_v12 = vmul.f32 -1.442695, %v5289_v47  ;;  %v6978_v52 = vpop.f32.mrb[166].mxu0  ;;  %5099 = vmatprep.mubr.f32.mxu1 %v8893_v0 }
 0x8eb   : > { %8511 = vpow2.f32 %v6560_v62  ;;  %v5298_v15 = vadd.f32 %v6978_v52, %v6486_v57  ;;  %v5226_v49 = vpop.f32.mrb[167].mxu0  ;;  %v8787_v52 = vld [vmem:[%s11260_s1 + $0x60] sm:$0xff] }
 0x8ec   : > { %8513 = vpow2.f32 %v6557_v12  ;;  %v5295_v61 = vadd.f32 %v6483_v42, %v5226_v49  ;;  %v6507_v42 = vld [vmem:[%s9016_s6 + $0xbe0] sm:$0xff] }
 0x8ed   : > { %v8504_v13 = vpop.eup %8503  ;;  %v6566_v1 = vmul.f32 -1.442695, %v5298_v15  ;;  %6522 = vmatmul.mubr.msk.f32.gmra.mrb[166].mxu1 %vm228_vm0, %v8786_v51 }
 0x8ee   : > { %v8506_v48 = vpop.eup %8505  ;;  %v5436_v59 = vadd.f32 1.0, %v8504_v13  ;;  %v6563_v4 = vmul.f32 -1.442695, %v5295_v61  ;;  %v6981_v25 = vpop.f32.mrb[168].mxu0  ;;  %5105 = vmatprep.mubr.f32.mxu1 %v8893_v0 }
 0x8ef   : > { %v5433_v53 = vadd.f32 1.0, %v8506_v48  ;;  %8515 = vpow2.f32 %v6566_v1  ;;  %v5304_v54 = vadd.f32 %v6981_v25, %v6492_v27  ;;  %v5236_v45 = vpop.f32.mrb[169].mxu0  ;;  %v8788_v48 = vld [vmem:[%s11260_s1 + $0x68] sm:$0xff] }
 0x8f0   : > { %8517 = vrcp.f32 %v5436_v59  ;;  %v5301_v39 = vadd.f32 %v6489_v7, %v5236_v45 }
 0x8f1   : > { %v8508_v22 = vpop.eup %8507  ;;  %8519 = vrcp.f32 %v5433_v53  ;;  %v6572_v60 = vmul.f32 -1.442695, %v5304_v54  ;;  %6523 = vmatmul.mubr.msk.f32.gmra.mrb[168].mxu1 %vm228_vm0, %v8787_v52  ;;  %v6464_v52 = vld [vmem:[%s9016_s6 + $0xa88] sm:$0xff] }
 0x8f2   : > { %v8510_v2 = vpop.eup %8509  ;;  %v5442_v10 = vadd.f32 1.0, %v8508_v22  ;;  %8521 = vpow2.f32 %v6563_v4  ;;  %v6569_v9 = vmul.f32 -1.442695, %v5301_v39  ;;  %v6984_v55 = vpop.f32.mrb[170].mxu0  ;;  %5111 = vmatprep.mubr.f32.mxu1 %v8893_v0 }
 0x8f3   : > { %v5439_v19 = vadd.f32 1.0, %v8510_v2  ;;  %8523 = vpow2.f32 %v6572_v60  ;;  %v5310_v58 = vadd.f32 %v6984_v55, %v6498_v8  ;;  %v5246_v43 = vpop.f32.mrb[171].mxu0 }
 0x8f4   : > { %8525 = vrcp.f32 %v5442_v10  ;;  %v5307_v21 = vadd.f32 %v6495_v29, %v5246_v43 }
 0x8f5   : > { %v8512_v32 = vpop.eup %8511  ;;  %8527 = vrcp.f32 %v5439_v19  ;;  %v6578_v50 = vmul.f32 -1.442695, %v5310_v58  ;;  %6524 = vmatmul.mubr.msk.f32.gmra.mrb[170].mxu1 %vm228_vm0, %v8788_v48  ;;  %v8790_v19 = vld [vmem:[%s11260_s1 + $0x78] sm:$0xff] }
 0x8f6   : > { %v8514_v5 = vpop.eup %8513  ;;  %v5448_v18 = vadd.f32 1.0, %v8512_v32  ;;  %8529 = vpow2.f32 %v6569_v9  ;;  %v6575_v56 = vmul.f32 -1.442695, %v5307_v21  ;;  %v6987_v31 = vpop.f32.mrb[172].mxu0  ;;  %5117 = vmatprep.mubr.f32.mxu1 %v8893_v0 }
 0x8f7   : > { %v5445_v38 = vadd.f32 1.0, %v8514_v5  ;;  %8531 = vpow2.f32 %v6578_v50  ;;  %v5316_v33 = vadd.f32 %v6987_v31, %v6504_v17  ;;  %v5256_v3 = vpop.f32.mrb[173].mxu0 }
 0x8f8   : > { %8533 = vrcp.f32 %v5448_v18  ;;  %v5313_v28 = vadd.f32 %v6501_v46, %v5256_v3 }
 0x8f9   : > { %v8516_v36 = vpop.eup %8515  ;;  %8535 = vrcp.f32 %v5445_v38  ;;  %6525 = vmatmul.mubr.msk.f32.gmra.mrb[172].mxu1 %vm228_vm0, %v8789_v35 }
 0x8fa   : > { %v8518_v47 = vpop.eup %8517  ;;  %v5454_v57 = vadd.f32 1.0, %v8516_v36  ;;  %8537 = vpow2.f32 %v6575_v56  ;;  %v6990_v62 = vpop.f32.mrb[174].mxu0  ;;  %5123 = vmatprep.mubr.f32.mxu1 %v8893_v0 }
 0x8fb   : > { %v8520_v12 = vpop.eup %8519  ;;  %8539 = vtanh.f32 %v5316_v33  ;;  %v5322_v11 = vadd.f32 %v6990_v62, %v6510_v40  ;;  %v5266_v15 = vpop.f32.mrb[175].mxu0  ;;  %v6463_v62 = vld [vmem:[%s9016_s6 + $0xa80] sm:$0xff] }
 0x8fc   : > { %v8522_v49 = vpop.eup %8521  ;;  %8541 = vrcp.f32 %v5454_v57  ;;  %v5319_v13 = vadd.f32 %v6507_v42, %v5266_v15  ;;  %v6466_v15 = vld [vmem:[%s9016_s6 + $0xa98] sm:$0xff] }
 0x8fd   : > { %v8524_v61 = vpop.eup %8523  ;;  %v5451_v27 = vadd.f32 1.0, %v8522_v49  ;;  %8543 = vtanh.f32 %v5313_v28  ;;  %6526 = vmatmul.mubr.msk.f32.gmra.mrb[174].mxu1 %vm228_vm0, %v8790_v19  ;;  %v6476_v19 = vld [vmem:[%s9016_s6 + $0xae8] sm:$0xff] }
 0x8fe   : > { %v8526_v1 = vpop.eup %8525  ;;  %8545 = vtanh.f32 %v5322_v11  ;;  %v5460_v39 = vadd.f32 1.0, %v8524_v61  ;;  %v6467_v61 = vld [vmem:[%s9016_s6 + $0xaa0] sm:$0xff] }
 0x8ff   : > { %v8528_v7 = vpop.eup %8527  ;;  %8547 = vrcp.f32 %v5451_v27 }
 0x900   : > { %v8530_v59 = vpop.eup %8529  ;;  %8549 = vtanh.f32 %v5319_v13 }
 0x901   : > { %v8532_v4 = vpop.eup %8531  ;;  %v5457_v22 = vadd.f32 1.0, %v8530_v59  ;;  %8551 = vrcp.f32 %v5460_v39  ;;  %v6470_v59 = vld [vmem:[%s9016_s6 + $0xab8] sm:$0xff] }
 0x902   : > { %v8534_v25 = vpop.eup %8533  ;;  %v5466_v55 = vadd.f32 1.0, %v8532_v4 }
 0x903   : > { %v8536_v53 = vpop.eup %8535  ;;  %v5556_v45 = vmul.f32 %v8534_v25, %v10900_v6  ;;  %8553 = vrcp.f32 %v5457_v22  ;;  %v6472_v25 = vld [vmem:[%s9016_s6 + $0xac8] sm:$0xff] }
 0x904   : > { %v8538_v54 = vpop.eup %8537  ;;  %v5553_v29 = vmul.f32 %v8536_v53, %v10904_v44 }
 0x905   : > { %v8540_v8 = vpop.eup %8539  ;;  %v5463_v21 = vadd.f32 1.0, %v8538_v54 }
 0x906   : > { %v8542_v60 = vpop.eup %8541  ;;  %v5568_v2 = vmul.f32 %v8540_v8, %v8518_v47 }
 0x907   : > { %v8544_v10 = vpop.eup %8543  ;;  %v5562_v9 = vmul.f32 %v8542_v60, %v10906_v30 }
 0x908   : > { %v8546_v6 = vpop.eup %8545  ;;  %v5580_v23 = vadd.f32 %v5568_v2, %v5556_v45  ;;  %v5565_v0 = vmul.f32 %v8544_v10, %v8520_v12  ;;  %v6473_v45 = vld [vmem:[%s9016_s6 + $0xad0] sm:$0xff] }
 0x909   : > { %v8548_v58 = vpop.eup %8547  ;;  %v5574_v43 = vmul.f32 %v8546_v6, %v8526_v1  ;;  %v6469_v1 = vld [vmem:[%s9016_s6 + $0xab0] sm:$0xff] }
 0x90a   : > { %v5559_v44 = vmul.f32 %v8548_v58, %v10910_v37  ;;  %8555 = vtanh.f32 %v5580_v23  ;;  %v5577_v30 = vadd.f32 %v5565_v0, %v5553_v29  ;;  %v8550_v17 = vpop.eup %8549  ;;  %v6475_v29 = vld [vmem:[%s9016_s6 + $0xae0] sm:$0xff] }
 0x90b   : > { %8557 = vrcp.f32 %v5466_v55  ;;  %v5586_v32 = vadd.f32 %v5574_v43, %v5562_v9  ;;  %v5571_v50 = vmul.f32 %v8550_v17, %v8528_v7  ;;  %v8552_v18 = vpop.eup %8551  ;;  %v6478_v43 = vld [vmem:[%s9016_s6 + $0xaf8] sm:$0xff]  ;;  %v6479_v17 = vld [vmem:[%s9016_s6 + $0xb00] sm:$0xff] }
 0x90c   : > { %8559 = vtanh.f32 %v5577_v30 }
 0x90d   : > { %8561 = vtanh.f32 %v5586_v32  ;;  %v5583_v5 = vadd.f32 %v5571_v50, %v5559_v44  ;;  %v8554_v56 = vpop.eup %8553 }
 0x90e   : > { %8563 = vrcp.f32 %v5463_v21 }
 0x90f   : > { %8565 = vtanh.f32 %v5583_v5 }
 0x914   : > { %v8556_v31 = vpop.eup %8555 }
 0x915   : > { %v8558_v46 = vpop.eup %8557  ;;  %v5604_v38 = vmul.f32 %v8556_v31, %v8552_v18  ;;  %v6481_v18 = vld [vmem:[%s9016_s6 + $0xb10] sm:$0xff] }
 0x916   : > { %v8560_v37 = vpop.eup %8559 }
 0x917   : > { %v8562_v51 = vpop.eup %8561  ;;  %5616 = vst [vmem:[%s11131_s19 + $0x28] sm:$0xff] %v5604_v38  ;;  %v5601_v33 = vmul.f32 %v8560_v37, %v8554_v56  ;;  %v6482_v38 = vld [vmem:[%s9016_s6 + $0xb18] sm:$0xff] }
 0x918   : > { %v8564_v3 = vpop.eup %8563  ;;  %v5610_v40 = vmul.f32 %v8562_v51, %v8558_v46 }
 0x919   : > { %5613 = vst [vmem:[%s11131_s19 + $0x10] sm:$0xff] %v5601_v33  ;;  %v8566_v36 = vpop.eup %8565 }
 0x91a   : > { %5622 = vst [vmem:[%s11131_s19 + $0x58] sm:$0xff] %v5610_v40  ;;  %v5607_v28 = vmul.f32 %v8566_v36, %v8564_v3 }
 0x91c   : > { %5619 = vst [vmem:[%s11131_s19 + $0x40] sm:$0xff] %v5607_v28 }
 0x994   : > { %v5035_v47 = vpop.f32.mrb[144].mxu1 }
 0x995   : > { %v5037_v57 = vpop.f32.mrb[145].mxu1  ;;  %v5275_v12 = vadd.f32 %v6463_v62, %v5035_v47 }
 0x996   : > { %v5276_v49 = vadd.f32 %v6464_v52, %v5037_v57 }
 0x997   : > { %v6543_v13 = vmul.f32 -1.442695, %v5275_v12 }
 0x998   : > { %v5041_v42 = vpop.f32.mrb[146].mxu1  ;;  %v6544_v53 = vmul.f32 -1.442695, %v5276_v49 }
 0x999   : > { %v5043_v11 = vpop.f32.mrb[147].mxu1  ;;  %v5278_v48 = vadd.f32 %v6466_v15, %v5041_v42  ;;  %8567 = vpow2.f32 %v6543_v13 }
 0x99a   : > { %v5279_v4 = vadd.f32 %v6467_v61, %v5043_v11  ;;  %8569 = vpow2.f32 %v6544_v53  ;;  %v6484_v61 = vld [vmem:[%s9016_s6 + $0xb28] sm:$0xff] }
 0x99b   : > { %v6546_v22 = vmul.f32 -1.442695, %v5278_v48  ;;  %v6485_v48 = vld [vmem:[%s9016_s6 + $0xb30] sm:$0xff] }
 0x99c   : > { %v5047_v27 = vpop.f32.mrb[148].mxu1  ;;  %v6547_v2 = vmul.f32 -1.442695, %v5279_v4 }
 0x99d   : > { %v5049_v7 = vpop.f32.mrb[149].mxu1  ;;  %v5281_v35 = vadd.f32 %v6469_v1, %v5047_v27  ;;  %8571 = vpow2.f32 %v6546_v22  ;;  %v6487_v22 = vld [vmem:[%s9016_s6 + $0xb40] sm:$0xff] }
 0x99e   : > { %v5282_v39 = vadd.f32 %v6470_v59, %v5049_v7  ;;  %8573 = vpow2.f32 %v6547_v2 }
 0x99f   : > { %v6549_v9 = vmul.f32 -1.442695, %v5281_v35 }
 0x9a0   : > { %v5053_v54 = vpop.f32.mrb[150].mxu1  ;;  %v6550_v6 = vmul.f32 -1.442695, %v5282_v39 }
 0x9a1   : > { %v5055_v8 = vpop.f32.mrb[151].mxu1  ;;  %v5284_v60 = vadd.f32 %v6472_v25, %v5053_v54  ;;  %8575 = vpow2.f32 %v6549_v9 }
 0x9a2   : > { %v5285_v10 = vadd.f32 %v6473_v45, %v5055_v8  ;;  %8577 = vpow2.f32 %v6550_v6 }
 0x9a3   : > { %v6552_v58 = vmul.f32 -1.442695, %v5284_v60  ;;  %v8568_v56 = vpop.eup %8567 }
 0x9a4   : > { %v5059_v55 = vpop.f32.mrb[152].mxu1  ;;  %v6553_v44 = vmul.f32 -1.442695, %v5285_v10  ;;  %v8570_v40 = vpop.eup %8569  ;;  %v5431_v36 = vadd.f32 1.0, %v8568_v56 }
 0x9a5   : > { %v5287_v23 = vadd.f32 %v6475_v29, %v5059_v55  ;;  %v5061_v0 = vpop.f32.mrb[153].mxu1  ;;  %8579 = vpow2.f32 %v6552_v58  ;;  %v5432_v52 = vadd.f32 1.0, %v8570_v40  ;;  %v6488_v29 = vld [vmem:[%s9016_s6 + $0xb48] sm:$0xff] }
 0x9a6   : > { %v5288_v21 = vadd.f32 %v6476_v19, %v5061_v0  ;;  %8581 = vpow2.f32 %v6553_v44 }
 0x9a7   : > { %v6555_v32 = vmul.f32 -1.442695, %v5287_v23  ;;  %v8572_v57 = vpop.eup %8571 }
 0x9a8   : > { %v5065_v30 = vpop.f32.mrb[154].mxu1  ;;  %v6556_v31 = vmul.f32 -1.442695, %v5288_v21  ;;  %v8574_v12 = vpop.eup %8573  ;;  %v5434_v13 = vadd.f32 1.0, %v8572_v57  ;;  %v6494_v57 = vld [vmem:[%s9016_s6 + $0xb78] sm:$0xff] }
 0x9a9   : > { %v5290_v50 = vadd.f32 %v6478_v43, %v5065_v30  ;;  %v5067_v5 = vpop.f32.mrb[155].mxu1  ;;  %8583 = vpow2.f32 %v6555_v32  ;;  %v5435_v7 = vadd.f32 1.0, %v8574_v12  ;;  %v6490_v43 = vld [vmem:[%s9016_s6 + $0xb58] sm:$0xff] }
 0x9aa   : > { %v5291_v46 = vadd.f32 %v6479_v17, %v5067_v5  ;;  %8585 = vpow2.f32 %v6556_v31 }
 0x9ab   : > { %v6558_v37 = vmul.f32 -1.442695, %v5290_v50  ;;  %v8576_v15 = vpop.eup %8575  ;;  %v6491_v50 = vld [vmem:[%s9016_s6 + $0xb60] sm:$0xff] }
 0x9ac   : > { %v5071_v51 = vpop.f32.mrb[156].mxu1  ;;  %v6559_v47 = vmul.f32 -1.442695, %v5291_v46  ;;  %v8578_v27 = vpop.eup %8577  ;;  %v5437_v25 = vadd.f32 1.0, %v8576_v15  ;;  %v6493_v46 = vld [vmem:[%s9016_s6 + $0xb70] sm:$0xff]  ;;  %v6499_v15 = vld [vmem:[%s9016_s6 + $0xba0] sm:$0xff] }
 0x9ad   : > { %v5293_v33 = vadd.f32 %v6481_v18, %v5071_v51  ;;  %v5073_v3 = vpop.f32.mrb[157].mxu1  ;;  %8587 = vpow2.f32 %v6558_v37  ;;  %v5438_v54 = vadd.f32 1.0, %v8578_v27 }
 0x9ae   : > { %v5294_v28 = vadd.f32 %v6482_v38, %v5073_v3  ;;  %8589 = vrcp.f32 %v5431_v36 }
 0x9af   : > { %v6561_v62 = vmul.f32 -1.442695, %v5293_v33  ;;  %8591 = vpow2.f32 %v6559_v47  ;;  %v8580_v1 = vpop.eup %8579 }
 0x9b0   : > { %v5077_v42 = vpop.f32.mrb[158].mxu1  ;;  %v6562_v49 = vmul.f32 -1.442695, %v5294_v28  ;;  %v8582_v4 = vpop.eup %8581  ;;  %v5440_v39 = vadd.f32 1.0, %v8580_v1 }
 0x9b1   : > { %v5079_v11 = vpop.f32.mrb[159].mxu1  ;;  %8593 = vpow2.f32 %v6561_v62  ;;  %v5296_v53 = vadd.f32 %v6484_v61, %v5077_v42  ;;  %v5441_v60 = vadd.f32 1.0, %v8582_v4  ;;  %v6497_v4 = vld [vmem:[%s9016_s6 + $0xb90] sm:$0xff] }
 0x9b2   : > { %8595 = vrcp.f32 %v5432_v52  ;;  %v5297_v8 = vadd.f32 %v6485_v48, %v5079_v11 }
 0x9b3   : > { %8597 = vpow2.f32 %v6562_v49  ;;  %v8584_v45 = vpop.eup %8583  ;;  %v6564_v9 = vmul.f32 -1.442695, %v5296_v53 }
 0x9b4   : > { %v5083_v59 = vpop.f32.mrb[160].mxu1  ;;  %8599 = vrcp.f32 %v5434_v13  ;;  %v8586_v10 = vpop.eup %8585  ;;  %v5443_v6 = vadd.f32 1.0, %v8584_v45  ;;  %v6565_v0 = vmul.f32 -1.442695, %v5297_v8  ;;  %v6496_v13 = vld [vmem:[%s9016_s6 + $0xb88] sm:$0xff] }
 0x9b5   : > { %v5085_v35 = vpop.f32.mrb[161].mxu1  ;;  %8601 = vrcp.f32 %v5435_v7  ;;  %v5299_v23 = vadd.f32 %v6487_v22, %v5083_v59  ;;  %v5444_v21 = vadd.f32 1.0, %v8586_v10  ;;  %v6500_v7 = vld [vmem:[%s9016_s6 + $0xba8] sm:$0xff] }
 0x9b6   : > { %8603 = vrcp.f32 %v5437_v25  ;;  %v5300_v58 = vadd.f32 %v6488_v29, %v5085_v35 }
 0x9b7   : > { %v8588_v19 = vpop.eup %8587  ;;  %8605 = vrcp.f32 %v5438_v54  ;;  %v6567_v56 = vmul.f32 -1.442695, %v5299_v23  ;;  %v6502_v54 = vld [vmem:[%s9016_s6 + $0xbb8] sm:$0xff]  ;;  %v6503_v23 = vld [vmem:[%s9016_s6 + $0xbc0] sm:$0xff] }
 0x9b8   : > { %v5089_v2 = vpop.f32.mrb[162].mxu1  ;;  %8607 = vrcp.f32 %v5440_v39  ;;  %v11156_v44 = vpop.eup %8589  ;;  %v5446_v32 = vadd.f32 1.0, %v8588_v19  ;;  %v6568_v37 = vmul.f32 -1.442695, %v5300_v58 }
 0x9b9   : > { %v5091_v55 = vpop.f32.mrb[163].mxu1  ;;  %8609 = vrcp.f32 %v5441_v60  ;;  %v8592_v17 = vpop.eup %8591  ;;  %v5302_v31 = vadd.f32 %v6490_v43, %v5089_v2  ;;  %v6505_v43 = vld [vmem:[%s9016_s6 + $0xbd0] sm:$0xff] }
 0x9ba   : > { %8611 = vpow2.f32 %v6564_v9  ;;  %v5447_v33 = vadd.f32 1.0, %v8592_v17  ;;  %v5303_v3 = vadd.f32 %v6491_v50, %v5091_v55 }
 0x9bb   : > { %v8594_v18 = vpop.eup %8593  ;;  %8613 = vrcp.f32 %v5443_v6  ;;  %v6570_v12 = vmul.f32 -1.442695, %v5302_v31  ;;  %v6506_v31 = vld [vmem:[%s9016_s6 + $0xbd8] sm:$0xff] }
 0x9bc   : > { %v5095_v30 = vpop.f32.mrb[164].mxu1  ;;  %v11160_v38 = vpop.eup %8595  ;;  %8615 = vpow2.f32 %v6565_v0  ;;  %v5449_v28 = vadd.f32 1.0, %v8594_v18  ;;  %v6571_v61 = vmul.f32 -1.442695, %v5303_v3 }
 0x9bd   : > { %v5097_v5 = vpop.f32.mrb[165].mxu1  ;;  %v8598_v51 = vpop.eup %8597  ;;  %8617 = vrcp.f32 %v5444_v21  ;;  %v5305_v47 = vadd.f32 %v6493_v46, %v5095_v30 }
 0x9be   : > { %v11162_v36 = vpop.eup %8599  ;;  %8619 = vrcp.f32 %v5446_v32  ;;  %v5450_v11 = vadd.f32 1.0, %v8598_v51  ;;  %v5306_v27 = vadd.f32 %v6494_v57, %v5097_v5  ;;  %v6508_v51 = vld [vmem:[%s9016_s6 + $0xbe8] sm:$0xff] }
 0x9bf   : > { %v11165_v42 = vpop.eup %8601  ;;  %8621 = vpow2.f32 %v6567_v56  ;;  %v6573_v59 = vmul.f32 -1.442695, %v5305_v47 }
 0x9c0   : > { %v5101_v40 = vpop.f32.mrb[166].mxu1  ;;  %v11167_v52 = vpop.eup %8603  ;;  %8623 = vpow2.f32 %v6568_v37  ;;  %v6574_v60 = vmul.f32 -1.442695, %v5306_v27 }
 0x9c1   : > { %v5103_v62 = vpop.f32.mrb[167].mxu1  ;;  %v11170_v49 = vpop.eup %8605  ;;  %8625 = vrcp.f32 %v5447_v33  ;;  %v5308_v39 = vadd.f32 %v6496_v13, %v5101_v40 }
 0x9c2   : > { %v11174_v48 = vpop.eup %8607  ;;  %8627 = vrcp.f32 %v5449_v28  ;;  %v5309_v29 = vadd.f32 %v6497_v4, %v5103_v62  ;;  %v6509_v28 = vld [vmem:[%s9016_s6 + $0xbf0] sm:$0xff]  ;;  %s6583_s6 = smul.u32 384, %s8934_s13  ;;  %s5624_s13 = scalar_lea.sflag [#allocation4], %s9012_s29 }
 0x9c3   : > { %v11177_v53 = vpop.eup %8609  ;;  %8629 = vpow2.f32 %v6570_v12  ;;  %v6576_v58 = vmul.f32 -1.442695, %v5308_v39 }
 0x9c4   : > { %v5107_v1 = vpop.f32.mrb[168].mxu1  ;;  %v8612_v45 = vpop.eup %8611  ;;  %8631 = vrcp.f32 %v5450_v11  ;;  %v6577_v30 = vmul.f32 -1.442695, %v5309_v29  ;;  %s11211_s16 = scalar_lea.hbm %s11261_s2, %s6583_s6 }
 0x9c5   : > { %v5109_v25 = vpop.f32.mrb[169].mxu1  ;;  %v5311_v35 = vadd.f32 %v6499_v15, %v5107_v1  ;;  %v8614_v22 = vpop.eup %8613  ;;  %8633 = vpow2.f32 %v6571_v61  ;;  %v5452_v6 = vadd.f32 1.0, %v8612_v45 }
 0x9c6   : > { %v5312_v8 = vadd.f32 %v6500_v7, %v5109_v25  ;;  %v8616_v10 = vpop.eup %8615  ;;  %8635 = vpow2.f32 %v6573_v59  ;;  %v5551_v7 = vmul.f32 %v8614_v22, %v10995_v34 }
 0x9c7   : > { %v8618_v19 = vpop.eup %8617  ;;  %8637 = vtanh.f32 %v5311_v35  ;;  %v5453_v37 = vadd.f32 1.0, %v8616_v10 }
 0x9c8   : > { %v5113_v2 = vpop.f32.mrb[170].mxu1  ;;  %v8620_v0 = vpop.eup %8619  ;;  %8639 = vtanh.f32 %v5312_v8  ;;  %v5552_v25 = vmul.f32 %v8618_v19, %v10998_v24 }
 0x9c9   : > { %v5314_v9 = vadd.f32 %v6502_v54, %v5113_v2  ;;  %v5115_v55 = vpop.f32.mrb[171].mxu1  ;;  %v8622_v21 = vpop.eup %8621  ;;  %8641 = vpow2.f32 %v6574_v60  ;;  %v5554_v60 = vmul.f32 %v8620_v0, %v11002_v26 }
 0x9ca   : > { %v8624_v32 = vpop.eup %8623  ;;  %v5315_v50 = vadd.f32 %v6503_v23, %v5115_v55  ;;  %v5455_v3 = vadd.f32 1.0, %v8622_v21 }
 0x9cb   : > { %8643 = vtanh.f32 %v5314_v9  ;;  %v8626_v18 = vpop.eup %8625  ;;  %v5456_v13 = vadd.f32 1.0, %v8624_v32 }
 0x9cc   : > { %v5119_v17 = vpop.f32.mrb[172].mxu1  ;;  %8645 = vrcp.f32 %v5452_v6  ;;  %v8628_v46 = vpop.eup %8627  ;;  %v5555_v19 = vmul.f32 %v8626_v18, %v11010_v14 }
 0x9cd   : > { %v5121_v5 = vpop.f32.mrb[173].mxu1  ;;  %v5317_v56 = vadd.f32 %v6505_v43, %v5119_v17  ;;  %8647 = vpow2.f32 %v6576_v58  ;;  %v8630_v33 = vpop.eup %8629  ;;  %v5557_v23 = vmul.f32 %v8628_v46, %v11012_v20 }
 0x9ce   : > { %8649 = vpow2.f32 %v6577_v30  ;;  %v8632_v47 = vpop.eup %8631  ;;  %v5318_v57 = vadd.f32 %v6506_v31, %v5121_v5  ;;  %v5458_v45 = vadd.f32 1.0, %v8630_v33 }
 0x9cf   : > { %8651 = vtanh.f32 %v5315_v50  ;;  %v8634_v12 = vpop.eup %8633  ;;  %v5558_v14 = vmul.f32 %v8632_v47, %v11020_v41 }
 0x9d0   : > { %v5125_v40 = vpop.f32.mrb[174].mxu1  ;;  %8653 = vtanh.f32 %v5317_v56  ;;  %v8636_v15 = vpop.eup %8635 }
 0x9d1   : > { %v5127_v62 = vpop.f32.mrb[175].mxu1  ;;  %v5320_v11 = vadd.f32 %v6508_v51, %v5125_v40  ;;  %8655 = vrcp.f32 %v5453_v37  ;;  %v8638_v27 = vpop.eup %8637  ;;  %v5461_v10 = vadd.f32 1.0, %v8636_v15 }
 0x9d2   : > { %v5321_v61 = vadd.f32 %v6509_v28, %v5127_v62  ;;  %8657 = vrcp.f32 %v5455_v3  ;;  %v8640_v1 = vpop.eup %8639  ;;  %v5563_v59 = vmul.f32 %v8638_v27, %v11156_v44  ;;  %v5459_v44 = vadd.f32 1.0, %v8634_v12 }
 0x9d3   : > { %8659 = vtanh.f32 %v5318_v57  ;;  %v8642_v4 = vpop.eup %8641  ;;  %v5564_v35 = vmul.f32 %v8640_v1, %v11160_v38 }
 0x9d4   : > { %8661 = vtanh.f32 %v5320_v11  ;;  %v5575_v39 = vadd.f32 %v5563_v59, %v5551_v7  ;;  %v5462_v9 = vadd.f32 1.0, %v8642_v4 }
 0x9d5   : > { %v8644_v54 = vpop.eup %8643  ;;  %8663 = vtanh.f32 %v5321_v61  ;;  %v5576_v29 = vadd.f32 %v5564_v35, %v5552_v25 }
 0x9d6   : > { %v8646_v8 = vpop.eup %8645  ;;  %8665 = vrcp.f32 %v5456_v13  ;;  %v5566_v34 = vmul.f32 %v8644_v54, %v11162_v36 }
 0x9d7   : > { %v8648_v22 = vpop.eup %8647  ;;  %8667 = vtanh.f32 %v5575_v39  ;;  %v5560_v20 = vmul.f32 %v8646_v8, %v11024_v63 }
 0x9d8   : > { %v8650_v2 = vpop.eup %8649  ;;  %8669 = vtanh.f32 %v5576_v29  ;;  %v5578_v24 = vadd.f32 %v5566_v34, %v5554_v60  ;;  %v5464_v58 = vadd.f32 1.0, %v8648_v22 }
 0x9d9   : > { %v8652_v38 = vpop.eup %8651  ;;  %8671 = vrcp.f32 %v5458_v45  ;;  %v5465_v30 = vadd.f32 1.0, %v8650_v2 }
 0x9da   : > { %v8654_v55 = vpop.eup %8653  ;;  %8673 = vtanh.f32 %v5578_v24  ;;  %v5567_v26 = vmul.f32 %v8652_v38, %v11165_v42 }
 0x9db   : > { %v8656_v6 = vpop.eup %8655  ;;  %8675 = vrcp.f32 %v5459_v44  ;;  %v5569_v36 = vmul.f32 %v8654_v55, %v11167_v52 }
 0x9dc   : > { %v8658_v0 = vpop.eup %8657  ;;  %8677 = vrcp.f32 %v5461_v10  ;;  %v5579_v43 = vadd.f32 %v5567_v26, %v5555_v19  ;;  %v5561_v18 = vmul.f32 %v8656_v6, %v11027_v16 }
 0x9dd   : > { %v8660_v21 = vpop.eup %8659  ;;  %8679 = vrcp.f32 %v5462_v9  ;;  %v5581_v17 = vadd.f32 %v5569_v36, %v5557_v23 }
 0x9de   : > { %v8662_v32 = vpop.eup %8661  ;;  %8681 = vtanh.f32 %v5579_v43  ;;  %v5570_v42 = vmul.f32 %v8660_v21, %v11170_v49 }
 0x9df   : > { %v8664_v50 = vpop.eup %8663  ;;  %8683 = vtanh.f32 %v5581_v17  ;;  %v5572_v52 = vmul.f32 %v8662_v32, %v11174_v48 }
 0x9e0   : > { %v8666_v5 = vpop.eup %8665  ;;  %8685 = vrcp.f32 %v5464_v58  ;;  %v5582_v56 = vadd.f32 %v5570_v42, %v5558_v14  ;;  %v5573_v31 = vmul.f32 %v8664_v50, %v11177_v53 }
 0x9e1   : > { %v8668_v46 = vpop.eup %8667  ;;  %8687 = vrcp.f32 %v5465_v30  ;;  %v5584_v41 = vadd.f32 %v5572_v52, %v5560_v20 }
 0x9e2   : > { %v8670_v49 = vpop.eup %8669  ;;  %v5599_v37 = vmul.f32 %v8668_v46, %v8658_v0  ;;  %8689 = vtanh.f32 %v5582_v56  ;;  %v5585_v63 = vadd.f32 %v5573_v31, %v5561_v18 }
 0x9e3   : > { %v8672_v51 = vpop.eup %8671  ;;  %v5600_v33 = vmul.f32 %v8670_v49, %v8666_v5  ;;  %8691 = vtanh.f32 %v5584_v41 }
 0x9e4   : > { %v8674_v48 = vpop.eup %8673  ;;  %5611 = vst [vmem:[%s11131_s19] sm:$0xff] %v5599_v37  ;;  %8693 = vtanh.f32 %v5585_v63 }
 0x9e5   : > { %v8676_v16 = vpop.eup %8675  ;;  %5612 = vst [vmem:[%s11131_s19 + $0x8] sm:$0xff] %v5600_v33  ;;  %v5602_v53 = vmul.f32 %v8674_v48, %v8672_v51 }
 0x9e6   : > { %v8678_v3 = vpop.eup %8677 }
 0x9e7   : > { %v8680_v40 = vpop.eup %8679  ;;  %5614 = vst [vmem:[%s11131_s19 + $0x18] sm:$0xff] %v5602_v53 }
 0x9e8   : > { %v8682_v28 = vpop.eup %8681 }
 0x9e9   : > { %v8684_v47 = vpop.eup %8683  ;;  %v5603_v57 = vmul.f32 %v8682_v28, %v8676_v16 }
 0x9ea   : > { %v8686_v62 = vpop.eup %8685  ;;  %v5605_v12 = vmul.f32 %v8684_v47, %v8678_v3 }
 0x9eb   : > { %v8688_v11 = vpop.eup %8687  ;;  %5615 = vst [vmem:[%s11131_s19 + $0x20] sm:$0xff] %v5603_v57 }
 0x9ec   : > { %v8690_v15 = vpop.eup %8689  ;;  %5617 = vst [vmem:[%s11131_s19 + $0x30] sm:$0xff] %v5605_v12 }
 0x9ed   : > { %v8692_v61 = vpop.eup %8691  ;;  %v5606_v27 = vmul.f32 %v8690_v15, %v8680_v40 }
 0x9ee   : > { %v8694_v13 = vpop.eup %8693  ;;  %v5608_v1 = vmul.f32 %v8692_v61, %v8686_v62 }
 0x9ef   : > { %5618 = vst [vmem:[%s11131_s19 + $0x38] sm:$0xff] %v5606_v27  ;;  %v5609_v7 = vmul.f32 %v8694_v13, %v8688_v11 }
 0x9f0   : > { %5620 = vst [vmem:[%s11131_s19 + $0x48] sm:$0xff] %v5608_v1 }
 0x9f1   : > { %5621 = vst [vmem:[%s11131_s19 + $0x50] sm:$0xff] %v5609_v7 }
 0x9f2   : > { %8834 = shalt.err (!%p8831_p2)
}
 0x9f3   : > { %s8835_s25 = scalar_lea.hbm %s11211_s16, 1536  ;;  %s8839_s5 = scalar_lea.hbm %s11261_s2, 4608 }
 0x9f4   : > { %p8836_p4 = scmp.ne.s32.totalorder %s11211_s16, %s8835_s25  ;;  %p8840_p13 = scmp.lt.u32.totalorder %s11211_s16, %s11261_s2 }
 0x9f5   : > { %p8841_p1 = scmp.lt.u32.totalorder %s8839_s5, %s8835_s25  ;;  %p8843_p6 = scmp.lt.u32.totalorder %s8835_s25, %s11211_s16 }
 0x9f6   : > { %p8837_p5 = pnand %p8836_p4, %p11268_p10 }
 0x9f7   : > { %p8842_p3 = por %p8841_p1, %p8840_p13 }
 0x9f8   : > { %p8838_p7 = pneg %p8837_p5 }
 0x9f9   : > { %p8844_p11 = por %p8843_p6, %p8842_p3 }
 0x9fb   : > { %p8845_p12 = pnand %p8844_p11, %p8838_p7 }
 0x9fd   : > { %8848 = shalt.err (!%p8845_p12)
}
 0x9fe   : > { %s8895_s30 = smov 384   ;;  %s8896_s3 = smov 1152  }
 0x9ff   : > { %s8897_s19 = smov 24  }
 0xa00   : > { %7108 = dma.vmem_to_hbm [thread:$0]  (%p11268_p10), %s11213_s7, 1536, %s11211_s16, %s5624_s13, %s8895_s30, %s8896_s3, %s8897_s19  }
 0xa01 PF: > { %p7119_p8 = scmp.ge.s32.totalorder %s8887_s12, 2  ;;  %s5652_s6 = sand.u32 1, %s8875_s9  }
 0xa02   : > { %p11269_p9 = scmp.ne.s32.totalorder %s11265_s21, 0  ;;  %s5653_s8 = scalar_lea.sflag [#allocation4], %s5652_s6 }
 0xa04   : > { %p7115_p0 = pnand %p7119_p8, %p11269_p9 }
 0xa06   : > { %8870 = dma.done.wait (!%p7115_p0), %s5653_s8, 1536  }
 0xa07   : > { %8872 = vsyncadd (!%p7115_p0), %s5653_s8, 4294965760  ;;  %p15_p2 = scmp.ge.s32.totalorder %s8938_s15, 5   ;;  %s11270_s9 = smov %s8879_s10 }
 0xa08   : > { %s11271_s10 = smov %s8883_s11  ;;  %s11272_s11 = smov %s8950_s18 }
 0xa09   : > { %s11273_s12 = smov %s8938_s15  ;;  %17 = sbr.rel (!%p15_p2) target bundleno = 5 (0x5), region = 80 }
 0xa10   :  { %5658 = vsyncpa [#allocation3], 1 }
 0xa11   :  { %5660 = vsyncpa [#allocation3 + $0x1], 1 }
 0xa12   :  { %5661 = vsyncpa [#allocation4], 1 }
 0xa13   :  { %5663 = vsyncpa [#allocation4 + $0x1], 1 }

</bundles_post_ra>
